<compile_context>
chip_gen: v7x
topology: tpu7x:2x2x1
jax: 0.10.0
libtpu: 0.0.40
codegen_flags: <defaults>
</compile_context>

<pallas_src>
import functools

import jax
import jax.numpy as jnp
import numpy as np
from jax.experimental import pallas as pl
from jax.experimental.pallas import tpu as pltpu


def nconv_fused_kernel(x_ref, w_ref, b_ref, o_ref, pad_buf, col_buf,
                       *, H, W, Cp, L):
    """Fused nb_Conv x (conv3x3 + folded-BN + ReLU) for one batch element.

    x_ref:   (1, H, W, Cp)     bf16 channel-padded NHWC input tile
    w_ref:   (L, 3, 3*Cp, Cp)  bf16 BN-folded weights, indexed [dy, dx*Cp+ci, co]
    b_ref:   (L, 1, Cp)        f32 folded BN bias per layer
    o_ref:   (1, H, W, Cp)     f32 output tile (channel-padded)
    pad_buf: (H+2, W+2, Cp)    bf16 activation buffer with 1-px zero halo
    col_buf: (H+2, W, 3*Cp)    bf16 dx-packed (lane-concatenated) columns
    """
    # Re-establish the zero halo every grid step: with "parallel" batch
    # sharding each core has its own scratch, so a once-only init is unsafe.
    pad_buf[...] = jnp.zeros_like(pad_buf)
    pad_buf[1:H + 1, 1:W + 1, :] = x_ref[0]

    for l in range(L):
        # Pack the 3 horizontal taps into lanes:
        #   col_buf[h, w, dx*Cp:(dx+1)*Cp] = pad_buf[h, w+dx, :]
        # Only 3 shifted copies per layer (vs. 9 for full im2col); the vertical
        # taps below are free leading-dim offsets of col_buf.
        for dx in range(3):
            col_buf[:, :, dx * Cp:(dx + 1) * Cp] = pad_buf[:, dx:dx + W, :]

        # 3 MXU matmuls with K = 3*Cp, f32 accumulation. The [dy] slice is a
        # leading-dim offset and the (H, W)->(H*W) merge is layout-preserving
        # when W % 8 == 0.
        acc = None
        for dy in range(3):
            part = jnp.dot(col_buf[dy:dy + H].reshape(H * W, 3 * Cp),
                           w_ref[l, dy],
                           preferred_element_type=jnp.float32)
            acc = part if acc is None else acc + part

        # BN scale is pre-folded into the weights; epilogue = bias + ReLU (f32).
        y = jnp.maximum(acc + b_ref[l], 0.0).reshape(H, W, Cp)

        if l + 1 < L:
            # Next layer's input stays resident in VMEM (no HBM round trip).
            pad_buf[1:H + 1, 1:W + 1, :] = y.astype(pad_buf.dtype)
        else:
            o_ref[0] = y.astype(o_ref.dtype)


def init_nconv_params(key, in_channels, out_channels, nb_Conv):
    """Deterministic per-layer (conv + BN) params, unfolded (for reference)."""
    params = []
    cin = in_channels
    for i in range(nb_Conv):
        kw, kb, kg, kbeta = jax.random.split(jax.random.fold_in(key, i), 4)
        params.append(dict(
            w=jax.random.normal(kw, (3, 3, cin, out_channels), jnp.float32) * 0.1,
            b=jax.random.normal(kb, (out_channels,), jnp.float32) * 0.01,
            gamma=1.0 + 0.05 * jax.random.normal(kg, (out_channels,), jnp.float32),
            beta=0.05 * jax.random.normal(kbeta, (out_channels,), jnp.float32),
            mean=jnp.zeros((out_channels,), jnp.float32),
            var=jnp.ones((out_channels,), jnp.float32),
            eps=1e-5,
        ))
        cin = out_channels
    return params


def pack_params_for_kernel(params, Cp):
    """Fold BN into weights/bias, pad channels to Cp, stack across layers.

    Weight layout produced: (L, 3, 3*Cp, Cp) with row index dx*Cp + ci, matching
    the dx-lane-packed im2col buffer in the kernel.
    """
    w_stack, b_stack = [], []
    for p in params:
        _, _, cin, cout = p["w"].shape
        scale = p["gamma"] / jnp.sqrt(p["var"] + p["eps"])
        w_f = p["w"] * scale[None, None, None, :]            # fold BN scale
        bias = (p["b"] - p["mean"]) * scale + p["beta"]      # fold BN shift
        w_pad = jnp.zeros((3, 3, Cp, Cp), jnp.float32).at[:, :, :cin, :cout].set(w_f)
        b_pad = jnp.zeros((Cp,), jnp.float32).at[:cout].set(bias)
        # (dy, dx, ci, co) -> (dy, dx*Cp + ci, co)
        w_stack.append(w_pad.reshape(3, 3 * Cp, Cp).astype(jnp.bfloat16))
        b_stack.append(b_pad.reshape(1, Cp))
    return jnp.stack(w_stack), jnp.stack(b_stack)


def nconv_forward(x_nchw, params):
    """nConv forward. x_nchw: (N, C, H, W), matching the PyTorch module."""
    N, Cin, H, W = x_nchw.shape
    Cout = int(params[-1]["w"].shape[-1])
    L = len(params)

    # Lane-dense channel count (multiple of 128) shared by all layers.
    max_c = max([Cin] + [int(p["w"].shape[-1]) for p in params])
    Cp = max(128, -(-max_c // 128) * 128)

    w_stack, b_stack = pack_params_for_kernel(params, Cp)

    # NCHW -> NHWC, bf16, channel-pad to Cp (aligned, lane-dense DMA blocks).
    x = jnp.transpose(x_nchw, (0, 2, 3, 1)).astype(jnp.bfloat16)
    x = jnp.pad(x, ((0, 0), (0, 0), (0, 0), (0, Cp - Cin)))

    kernel = functools.partial(nconv_fused_kernel, H=H, W=W, Cp=Cp, L=L)
    # TODO(synk): for large H*W add a row-tile grid axis (with an L-row halo)
    # so pad_buf/col_buf stay within VMEM (size for v7x's 64 MiB budget).
    out = pl.pallas_call(
        kernel,
        out_shape=jax.ShapeDtypeStruct((N, H, W, Cp), jnp.float32),
        grid=(N,),
        in_specs=[
            pl.BlockSpec((1, H, W, Cp), lambda b: (b, 0, 0, 0)),
            pl.BlockSpec((L, 3, 3 * Cp, Cp), lambda b: (0, 0, 0, 0)),
            pl.BlockSpec((L, 1, Cp), lambda b: (0, 0, 0)),
        ],
        out_specs=pl.BlockSpec((1, H, W, Cp), lambda b: (b, 0, 0, 0)),
        scratch_shapes=[
            pltpu.VMEM((H + 2, W + 2, Cp), jnp.bfloat16),    # halo'd activation
            pltpu.VMEM((H + 2, W, 3 * Cp), jnp.bfloat16),    # dx-packed columns
        ],
        compiler_params=pltpu.CompilerParams(
            dimension_semantics=("parallel",),
            vmem_limit_bytes=32 * 1024 * 1024,
        ),
    )(x, w_stack, b_stack)

    out = out[..., :Cout]                      # drop padded channels
    return jnp.transpose(out, (0, 3, 1, 2))    # NHWC -> NCHW


def nconv_reference(x_nchw, params):
    """Pure-JAX f32 reference (conv -> BN(inference) -> ReLU per block)."""
    x = jnp.transpose(x_nchw, (0, 2, 3, 1))
    for p in params:
        y = jax.lax.conv_general_dilated(
            x, p["w"], window_strides=(1, 1), padding="SAME",
            dimension_numbers=("NHWC", "HWIO", "NHWC"))
        y = y + p["b"]
        scale = p["gamma"] / jnp.sqrt(p["var"] + p["eps"])
        y = (y - p["mean"]) * scale + p["beta"]
        x = jnp.maximum(y, 0.0)
    return jnp.transpose(x, (0, 3, 1, 2))


if __name__ == "__main__":
    key = jax.random.PRNGKey(0)
    kx, kp = jax.random.split(key)

    N, Cin, Cout, H, W = 2, 4, 8, 16, 16
    nb_Conv = 2

    x = jax.random.normal(kx, (N, Cin, H, W), jnp.float32)
    params = init_nconv_params(kp, Cin, Cout, nb_Conv)

    out = nconv_forward(x, params)
    jax.block_until_ready(out)
    assert out.shape == (N, Cout, H, W)

    ref = nconv_reference(x, params)
    np.testing.assert_allclose(np.asarray(out), np.asarray(ref),
                               rtol=5e-2, atol=5e-2)
    print("KERNEL_OK")
</pallas_src>

<mosaic_0001>
module attributes {stable_mosaic.version = 11 : i64} {
  func.func @nconv_fused_kernel(%arg0: i32, %arg1: memref<1x16x16x128xbf16, #tpu.memory_space<vmem>>, %arg2: memref<2x3x384x128xbf16, #tpu.memory_space<vmem>>, %arg3: memref<2x1x128xf32, #tpu.memory_space<vmem>>, %arg4: memref<1x16x16x128xf32, #tpu.memory_space<vmem>>, %arg5: memref<18x18x128xbf16, #tpu.memory_space<vmem>>, %arg6: memref<18x16x384xbf16, #tpu.memory_space<vmem>>) attributes {dimension_semantics = [#tpu.dimension_semantics<parallel>], iteration_bounds = array<i64: 2>, scalar_prefetch = 0 : i64, scratch_operands = 2 : i64, tpu.core_type = #tpu.core_type<tc>, window_params = [{transform_indices = @transform_0, window_bounds = array<i64: 1, 16, 16, 128>}, {pipeline_mode = #tpu.pipeline_mode<synchronous>, transform_indices = @transform_1, window_bounds = array<i64: 2, 3, 384, 128>}, {pipeline_mode = #tpu.pipeline_mode<synchronous>, transform_indices = @transform_2, window_bounds = array<i64: 2, 1, 128>}, {transform_indices = @transform_3, window_bounds = array<i64: 1, 16, 16, 128>}]} {
    %cst = arith.constant 0.000000e+00 : bf16
    %0 = vector.broadcast %cst : bf16 to vector<18x18x128xbf16>
    %c0 = arith.constant 0 : index
    %c0_0 = arith.constant 0 : index
    %c0_1 = arith.constant 0 : index
    %1 = vector.load %arg5[%c0, %c0_0, %c0_1] : memref<18x18x128xbf16, #tpu.memory_space<vmem>>, vector<18x18x128xbf16>
    tpu.vector_store %arg5[%c0, %c0_0, %c0_1], %0 {strides = array<i32>} : memref<18x18x128xbf16, #tpu.memory_space<vmem>>, vector<18x18x128xbf16>,
    %c0_2 = arith.constant 0 : index
    %c0_3 = arith.constant 0 : index
    %c0_4 = arith.constant 0 : index
    %c0_5 = arith.constant 0 : index
    %2 = vector.load %arg1[%c0_2, %c0_3, %c0_4, %c0_5] : memref<1x16x16x128xbf16, #tpu.memory_space<vmem>>, vector<1x16x16x128xbf16>
    %3 = vector.shape_cast %2 : vector<1x16x16x128xbf16> to vector<16x16x128xbf16>
    %c1 = arith.constant 1 : index
    %c1_6 = arith.constant 1 : index
    %c0_7 = arith.constant 0 : index
    %4 = vector.load %arg5[%c1, %c1_6, %c0_7] : memref<18x18x128xbf16, #tpu.memory_space<vmem>>, vector<16x16x128xbf16>
    tpu.vector_store %arg5[%c1, %c1_6, %c0_7], %3 {strides = array<i32>} : memref<18x18x128xbf16, #tpu.memory_space<vmem>>, vector<16x16x128xbf16>,
    %c0_8 = arith.constant 0 : index
    %c0_9 = arith.constant 0 : index
    %c0_10 = arith.constant 0 : index
    %5 = vector.load %arg5[%c0_8, %c0_9, %c0_10] : memref<18x18x128xbf16, #tpu.memory_space<vmem>>, vector<18x16x128xbf16>
    %c0_11 = arith.constant 0 : index
    %c0_12 = arith.constant 0 : index
    %c0_13 = arith.constant 0 : index
    %6 = vector.load %arg6[%c0_11, %c0_12, %c0_13] : memref<18x16x384xbf16, #tpu.memory_space<vmem>>, vector<18x16x128xbf16>
    tpu.vector_store %arg6[%c0_11, %c0_12, %c0_13], %5 {strides = array<i32>} : memref<18x16x384xbf16, #tpu.memory_space<vmem>>, vector<18x16x128xbf16>,
    %c0_14 = arith.constant 0 : index
    %c1_15 = arith.constant 1 : index
    %c0_16 = arith.constant 0 : index
    %7 = vector.load %arg5[%c0_14, %c1_15, %c0_16] : memref<18x18x128xbf16, #tpu.memory_space<vmem>>, vector<18x16x128xbf16>
    %c0_17 = arith.constant 0 : index
    %c0_18 = arith.constant 0 : index
    %c128 = arith.constant 128 : index
    %8 = vector.load %arg6[%c0_17, %c0_18, %c128] : memref<18x16x384xbf16, #tpu.memory_space<vmem>>, vector<18x16x128xbf16>
    tpu.vector_store %arg6[%c0_17, %c0_18, %c128], %7 {strides = array<i32>} : memref<18x16x384xbf16, #tpu.memory_space<vmem>>, vector<18x16x128xbf16>,
    %c0_19 = arith.constant 0 : index
    %c2 = arith.constant 2 : index
    %c0_20 = arith.constant 0 : index
    %9 = vector.load %arg5[%c0_19, %c2, %c0_20] : memref<18x18x128xbf16, #tpu.memory_space<vmem>>, vector<18x16x128xbf16>
    %c0_21 = arith.constant 0 : index
    %c0_22 = arith.constant 0 : index
    %c256 = arith.constant 256 : index
    %10 = vector.load %arg6[%c0_21, %c0_22, %c256] : memref<18x16x384xbf16, #tpu.memory_space<vmem>>, vector<18x16x128xbf16>
    tpu.vector_store %arg6[%c0_21, %c0_22, %c256], %9 {strides = array<i32>} : memref<18x16x384xbf16, #tpu.memory_space<vmem>>, vector<18x16x128xbf16>,
    %c0_23 = arith.constant 0 : index
    %c0_24 = arith.constant 0 : index
    %c0_25 = arith.constant 0 : index
    %11 = vector.load %arg6[%c0_23, %c0_24, %c0_25] : memref<18x16x384xbf16, #tpu.memory_space<vmem>>, vector<16x16x384xbf16>
    %12 = vector.shape_cast %11 : vector<16x16x384xbf16> to vector<256x384xbf16>
    %c0_26 = arith.constant 0 : index
    %c0_27 = arith.constant 0 : index
    %c0_28 = arith.constant 0 : index
    %c0_29 = arith.constant 0 : index
    %13 = vector.load %arg2[%c0_26, %c0_27, %c0_28, %c0_29] : memref<2x3x384x128xbf16, #tpu.memory_space<vmem>>, vector<1x1x384x128xbf16>
    %14 = vector.shape_cast %13 : vector<1x1x384x128xbf16> to vector<384x128xbf16>
    %cst_30 = arith.constant dense<0.000000e+00> : vector<256x128xf32>
    %15 = tpu.matmul %12, %14, %cst_30 {dimension_numbers = #tpu.dot_dimension_numbers<[1], [0], [0], [1], [0, 0, 1, 1], [], []>} : vector<256x384xbf16>, vector<384x128xbf16>, vector<256x128xf32> -> vector<256x128xf32>
    %c1_31 = arith.constant 1 : index
    %c0_32 = arith.constant 0 : index
    %c0_33 = arith.constant 0 : index
    %16 = vector.load %arg6[%c1_31, %c0_32, %c0_33] : memref<18x16x384xbf16, #tpu.memory_space<vmem>>, vector<16x16x384xbf16>
    %17 = vector.shape_cast %16 : vector<16x16x384xbf16> to vector<256x384xbf16>
    %c0_34 = arith.constant 0 : index
    %c1_35 = arith.constant 1 : index
    %c0_36 = arith.constant 0 : index
    %c0_37 = arith.constant 0 : index
    %18 = vector.load %arg2[%c0_34, %c1_35, %c0_36, %c0_37] : memref<2x3x384x128xbf16, #tpu.memory_space<vmem>>, vector<1x1x384x128xbf16>
    %19 = vector.shape_cast %18 : vector<1x1x384x128xbf16> to vector<384x128xbf16>
    %cst_38 = arith.constant dense<0.000000e+00> : vector<256x128xf32>
    %20 = tpu.matmul %17, %19, %cst_38 {dimension_numbers = #tpu.dot_dimension_numbers<[1], [0], [0], [1], [0, 0, 1, 1], [], []>} : vector<256x384xbf16>, vector<384x128xbf16>, vector<256x128xf32> -> vector<256x128xf32>
    %21 = arith.addf %15, %20 : vector<256x128xf32>
    %c2_39 = arith.constant 2 : index
    %c0_40 = arith.constant 0 : index
    %c0_41 = arith.constant 0 : index
    %22 = vector.load %arg6[%c2_39, %c0_40, %c0_41] : memref<18x16x384xbf16, #tpu.memory_space<vmem>>, vector<16x16x384xbf16>
    %23 = vector.shape_cast %22 : vector<16x16x384xbf16> to vector<256x384xbf16>
    %c0_42 = arith.constant 0 : index
    %c2_43 = arith.constant 2 : index
    %c0_44 = arith.constant 0 : index
    %c0_45 = arith.constant 0 : index
    %24 = vector.load %arg2[%c0_42, %c2_43, %c0_44, %c0_45] : memref<2x3x384x128xbf16, #tpu.memory_space<vmem>>, vector<1x1x384x128xbf16>
    %25 = vector.shape_cast %24 : vector<1x1x384x128xbf16> to vector<384x128xbf16>
    %cst_46 = arith.constant dense<0.000000e+00> : vector<256x128xf32>
    %26 = tpu.matmul %23, %25, %cst_46 {dimension_numbers = #tpu.dot_dimension_numbers<[1], [0], [0], [1], [0, 0, 1, 1], [], []>} : vector<256x384xbf16>, vector<384x128xbf16>, vector<256x128xf32> -> vector<256x128xf32>
    %27 = arith.addf %21, %26 : vector<256x128xf32>
    %c0_47 = arith.constant 0 : index
    %c0_48 = arith.constant 0 : index
    %c0_49 = arith.constant 0 : index
    %28 = vector.load %arg3[%c0_47, %c0_48, %c0_49] : memref<2x1x128xf32, #tpu.memory_space<vmem>>, vector<1x1x128xf32>
    %29 = vector.shape_cast %28 : vector<1x1x128xf32> to vector<1x128xf32>
    %30 = vector.broadcast %29 : vector<1x128xf32> to vector<256x128xf32>
    %31 = arith.addf %27, %30 : vector<256x128xf32>
    %cst_50 = arith.constant 0.000000e+00 : f32
    %32 = vector.broadcast %cst_50 : f32 to vector<256x128xf32>
    %33 = arith.maximumf %31, %32 : vector<256x128xf32>
    %34 = vector.shape_cast %33 : vector<256x128xf32> to vector<16x16x128xf32>
    %35 = arith.truncf %34 : vector<16x16x128xf32> to vector<16x16x128xbf16>
    %c1_51 = arith.constant 1 : index
    %c1_52 = arith.constant 1 : index
    %c0_53 = arith.constant 0 : index
    %36 = vector.load %arg5[%c1_51, %c1_52, %c0_53] : memref<18x18x128xbf16, #tpu.memory_space<vmem>>, vector<16x16x128xbf16>
    tpu.vector_store %arg5[%c1_51, %c1_52, %c0_53], %35 {strides = array<i32>} : memref<18x18x128xbf16, #tpu.memory_space<vmem>>, vector<16x16x128xbf16>,
    %c0_54 = arith.constant 0 : index
    %c0_55 = arith.constant 0 : index
    %c0_56 = arith.constant 0 : index
    %37 = vector.load %arg5[%c0_54, %c0_55, %c0_56] : memref<18x18x128xbf16, #tpu.memory_space<vmem>>, vector<18x16x128xbf16>
    %c0_57 = arith.constant 0 : index
    %c0_58 = arith.constant 0 : index
    %c0_59 = arith.constant 0 : index
    %38 = vector.load %arg6[%c0_57, %c0_58, %c0_59] : memref<18x16x384xbf16, #tpu.memory_space<vmem>>, vector<18x16x128xbf16>
    tpu.vector_store %arg6[%c0_57, %c0_58, %c0_59], %37 {strides = array<i32>} : memref<18x16x384xbf16, #tpu.memory_space<vmem>>, vector<18x16x128xbf16>,
    %c0_60 = arith.constant 0 : index
    %c1_61 = arith.constant 1 : index
    %c0_62 = arith.constant 0 : index
    %39 = vector.load %arg5[%c0_60, %c1_61, %c0_62] : memref<18x18x128xbf16, #tpu.memory_space<vmem>>, vector<18x16x128xbf16>
    %c0_63 = arith.constant 0 : index
    %c0_64 = arith.constant 0 : index
    %c128_65 = arith.constant 128 : index
    %40 = vector.load %arg6[%c0_63, %c0_64, %c128_65] : memref<18x16x384xbf16, #tpu.memory_space<vmem>>, vector<18x16x128xbf16>
    tpu.vector_store %arg6[%c0_63, %c0_64, %c128_65], %39 {strides = array<i32>} : memref<18x16x384xbf16, #tpu.memory_space<vmem>>, vector<18x16x128xbf16>,
    %c0_66 = arith.constant 0 : index
    %c2_67 = arith.constant 2 : index
    %c0_68 = arith.constant 0 : index
    %41 = vector.load %arg5[%c0_66, %c2_67, %c0_68] : memref<18x18x128xbf16, #tpu.memory_space<vmem>>, vector<18x16x128xbf16>
    %c0_69 = arith.constant 0 : index
    %c0_70 = arith.constant 0 : index
    %c256_71 = arith.constant 256 : index
    %42 = vector.load %arg6[%c0_69, %c0_70, %c256_71] : memref<18x16x384xbf16, #tpu.memory_space<vmem>>, vector<18x16x128xbf16>
    tpu.vector_store %arg6[%c0_69, %c0_70, %c256_71], %41 {strides = array<i32>} : memref<18x16x384xbf16, #tpu.memory_space<vmem>>, vector<18x16x128xbf16>,
    %c0_72 = arith.constant 0 : index
    %c0_73 = arith.constant 0 : index
    %c0_74 = arith.constant 0 : index
    %43 = vector.load %arg6[%c0_72, %c0_73, %c0_74] : memref<18x16x384xbf16, #tpu.memory_space<vmem>>, vector<16x16x384xbf16>
    %44 = vector.shape_cast %43 : vector<16x16x384xbf16> to vector<256x384xbf16>
    %c1_75 = arith.constant 1 : index
    %c0_76 = arith.constant 0 : index
    %c0_77 = arith.constant 0 : index
    %c0_78 = arith.constant 0 : index
    %45 = vector.load %arg2[%c1_75, %c0_76, %c0_77, %c0_78] : memref<2x3x384x128xbf16, #tpu.memory_space<vmem>>, vector<1x1x384x128xbf16>
    %46 = vector.shape_cast %45 : vector<1x1x384x128xbf16> to vector<384x128xbf16>
    %cst_79 = arith.constant dense<0.000000e+00> : vector<256x128xf32>
    %47 = tpu.matmul %44, %46, %cst_79 {dimension_numbers = #tpu.dot_dimension_numbers<[1], [0], [0], [1], [0, 0, 1, 1], [], []>} : vector<256x384xbf16>, vector<384x128xbf16>, vector<256x128xf32> -> vector<256x128xf32>
    %c1_80 = arith.constant 1 : index
    %c0_81 = arith.constant 0 : index
    %c0_82 = arith.constant 0 : index
    %48 = vector.load %arg6[%c1_80, %c0_81, %c0_82] : memref<18x16x384xbf16, #tpu.memory_space<vmem>>, vector<16x16x384xbf16>
    %49 = vector.shape_cast %48 : vector<16x16x384xbf16> to vector<256x384xbf16>
    %c1_83 = arith.constant 1 : index
    %c1_84 = arith.constant 1 : index
    %c0_85 = arith.constant 0 : index
    %c0_86 = arith.constant 0 : index
    %50 = vector.load %arg2[%c1_83, %c1_84, %c0_85, %c0_86] : memref<2x3x384x128xbf16, #tpu.memory_space<vmem>>, vector<1x1x384x128xbf16>
    %51 = vector.shape_cast %50 : vector<1x1x384x128xbf16> to vector<384x128xbf16>
    %cst_87 = arith.constant dense<0.000000e+00> : vector<256x128xf32>
    %52 = tpu.matmul %49, %51, %cst_87 {dimension_numbers = #tpu.dot_dimension_numbers<[1], [0], [0], [1], [0, 0, 1, 1], [], []>} : vector<256x384xbf16>, vector<384x128xbf16>, vector<256x128xf32> -> vector<256x128xf32>
    %53 = arith.addf %47, %52 : vector<256x128xf32>
    %c2_88 = arith.constant 2 : index
    %c0_89 = arith.constant 0 : index
    %c0_90 = arith.constant 0 : index
    %54 = vector.load %arg6[%c2_88, %c0_89, %c0_90] : memref<18x16x384xbf16, #tpu.memory_space<vmem>>, vector<16x16x384xbf16>
    %55 = vector.shape_cast %54 : vector<16x16x384xbf16> to vector<256x384xbf16>
    %c1_91 = arith.constant 1 : index
    %c2_92 = arith.constant 2 : index
    %c0_93 = arith.constant 0 : index
    %c0_94 = arith.constant 0 : index
    %56 = vector.load %arg2[%c1_91, %c2_92, %c0_93, %c0_94] : memref<2x3x384x128xbf16, #tpu.memory_space<vmem>>, vector<1x1x384x128xbf16>
    %57 = vector.shape_cast %56 : vector<1x1x384x128xbf16> to vector<384x128xbf16>
    %cst_95 = arith.constant dense<0.000000e+00> : vector<256x128xf32>
    %58 = tpu.matmul %55, %57, %cst_95 {dimension_numbers = #tpu.dot_dimension_numbers<[1], [0], [0], [1], [0, 0, 1, 1], [], []>} : vector<256x384xbf16>, vector<384x128xbf16>, vector<256x128xf32> -> vector<256x128xf32>
    %59 = arith.addf %53, %58 : vector<256x128xf32>
    %c1_96 = arith.constant 1 : index
    %c0_97 = arith.constant 0 : index
    %c0_98 = arith.constant 0 : index
    %60 = vector.load %arg3[%c1_96, %c0_97, %c0_98] : memref<2x1x128xf32, #tpu.memory_space<vmem>>, vector<1x1x128xf32>
    %61 = vector.shape_cast %60 : vector<1x1x128xf32> to vector<1x128xf32>
    %62 = vector.broadcast %61 : vector<1x128xf32> to vector<256x128xf32>
    %63 = arith.addf %59, %62 : vector<256x128xf32>
    %cst_99 = arith.constant 0.000000e+00 : f32
    %64 = vector.broadcast %cst_99 : f32 to vector<256x128xf32>
    %65 = arith.maximumf %63, %64 : vector<256x128xf32>
    %66 = vector.shape_cast %65 : vector<256x128xf32> to vector<16x16x128xf32>
    %c0_100 = arith.constant 0 : index
    %c0_101 = arith.constant 0 : index
    %c0_102 = arith.constant 0 : index
    %c0_103 = arith.constant 0 : index
    %67 = vector.load %arg4[%c0_100, %c0_101, %c0_102, %c0_103] : memref<1x16x16x128xf32, #tpu.memory_space<vmem>>, vector<1x16x16x128xf32>
    %68 = vector.shape_cast %67 : vector<1x16x16x128xf32> to vector<16x16x128xf32>
    %69 = vector.shape_cast %66 : vector<16x16x128xf32> to vector<1x16x16x128xf32>
    tpu.vector_store %arg4[%c0_100, %c0_101, %c0_102, %c0_103], %69 {strides = array<i32>} : memref<1x16x16x128xf32, #tpu.memory_space<vmem>>, vector<1x16x16x128xf32>,
    return
  }
  func.func @transform_0(%arg0: i32) -> (i32, i32, i32, i32) {
    %c0_i32 = arith.constant 0 : i32
    %c0_i32_0 = arith.constant 0 : i32
    %c0_i32_1 = arith.constant 0 : i32
    %c0_i32_2 = arith.constant 0 : i32
    return %arg0, %c0_i32, %c0_i32_0, %c0_i32_1 : i32, i32, i32, i32
  }
  func.func @transform_1(%arg0: i32) -> (i32, i32, i32, i32) {
    %c0_i32 = arith.constant 0 : i32
    %c0_i32_0 = arith.constant 0 : i32
    %c0_i32_1 = arith.constant 0 : i32
    %c0_i32_2 = arith.constant 0 : i32
    %c0_i32_3 = arith.constant 0 : i32
    return %c0_i32, %c0_i32_0, %c0_i32_1, %c0_i32_2 : i32, i32, i32, i32
  }
  func.func @transform_2(%arg0: i32) -> (i32, i32, i32) {
    %c0_i32 = arith.constant 0 : i32
    %c0_i32_0 = arith.constant 0 : i32
    %c0_i32_1 = arith.constant 0 : i32
    %c0_i32_2 = arith.constant 0 : i32
    return %c0_i32, %c0_i32_0, %c0_i32_1 : i32, i32, i32
  }
  func.func @transform_3(%arg0: i32) -> (i32, i32, i32, i32) {
    %c0_i32 = arith.constant 0 : i32
    %c0_i32_0 = arith.constant 0 : i32
    %c0_i32_1 = arith.constant 0 : i32
    %c0_i32_2 = arith.constant 0 : i32
    return %arg0, %c0_i32, %c0_i32_0, %c0_i32_1 : i32, i32, i32, i32
  }
}

</mosaic_0001>

<bundles_post_ra>
// kernel: tpu_custom_call.1
= control target key start
LH: loop header
LB: loop body
LE: loop exit
PB: predicated region body
PF: predicated region fallthrough
CT: control target
= control target key end

     0   :  { %8 = vsyncpa [#allocation5], 0  ;;  %s10864_s0 = inlined_call_operand.hbm [shape: bf16[2,16,16,128], index: 0, kind: input, shape index: {}]   ;;  %s10865_s1 = inlined_call_operand.hbm [shape: bf16[2,3,384,128], index: 1, kind: input, shape index: {}]   ;;  %s10866_s2 = inlined_call_operand.vmem [shape: f32[2,1,128], index: 2, kind: input, shape index: {}]   ;;  %s10867_s3 = inlined_call_operand.hbm [shape: f32[2,16,16,128], index: 3, kind: output, shape index: {}]  }
   0x1   :  { %10 = vsyncpa [#allocation5 + $0x1], 0 }
   0x2   :  { %11 = vsyncpa [#allocation8], 0 }
   0x3   :  { %12 = vsyncpa [#allocation6], 0 }
   0x4   :  { %14 = vsyncpa [#allocation6 + $0x1], 0  ;;  %s9177_s12 = smov 0   ;;  %s9179_s13 = smov 0  }
   0x5   :  { %s9181_s14 = smov 0   ;;  %s9183_s15 = smov 0  }
   0x6 LB: > { %s9198_s16 = sadd.s32 4294967295, %s9147_s15   ;;  %s6777_s17 = sadd.s32 4294967294, %s9147_s15   ;;  %s9147_s15 = sphi %s9183_s15, %s10973_s15   ;;  %s9143_s14 = sphi %s9181_s14, %s10972_s14   ;;  %s9139_s13 = sphi %s9179_s13, %s10971_s13   ;;  %s9135_s12 = sphi %s9177_s12, %s10970_s12  }
   0x7   : > { %p40_p0 = scmp.ne.s32.totalorder %s9139_s13, %s9135_s12  ;;  %p10868_p1 = scmp.eq.s32.totalorder %s9198_s16, 0 }
   0x8   : > { %p112_p3 = scmp.eq.s32.totalorder %s6777_s17, 1  ;;  %p6778_p5 = scmp.ge.s32.totalorder %s9147_s15, 1 }
   0x9   : > { %p9207_p4 = por %p10868_p1, %p40_p0  ;;  %p119_p7 = scmp.lt.s32.totalorder %s9147_s15, 3 }
   0xa   : > { %p9212_p6 = por %p112_p3, %p40_p0  ;;  %s9149_s21 = smov [#allocation7]  }
   0xb   : > { %s10885_s18 = scalar_select %p9207_p4, 1, 0 }
   0xc   : > { %s10886_s19 = scalar_select %p9212_p6, 1, 0 }
   0xd   : > { %p9217_p8 = pnand %p6778_p5, %p119_p7  ;;  %s131_s22 = sshll.u32 %s9149_s21, 4  ;;  %s9221_s22 = int_to_ptr.vmem [resolvable:$true] %s131_s22 }
   0xe   : > { %s9233_s24 = sadd.s32 1, %s9147_s15   ;;  %s27_s25 = sadd.s32 1, %s9143_s14 }
   0xf   : > { %s10887_s20 = scalar_select %p9217_p8, 1, 0 }
  0x10   : > { %p8618_p9 = pneg %p9217_p8  ;;  %s24_s26 = ssub.s32 %s9147_s15, %s9233_s24 }
  0x11   : > { %s9019_s29 = scalar_lea.hbm %s10865_s1, 18432 }
  0x12   : > { %p9228_p11 = pnand %p8618_p9, %p10868_p1  ;;  %p9020_p12 = scmp.ne.s32.totalorder %s10865_s1, %s9019_s29 }
  0x13   : > { %p9026_p5 = scmp.lt.u32.totalorder %s9019_s29, %s10865_s1 }
  0x14   : > { %p9021_p13 = pneg %p9228_p11 }
  0x16   : > { %p9022_p0 = pnand %p9021_p13, %p9020_p12 }
  0x18   : > { %p9023_p3 = pneg %p9022_p0 }
  0x1a   : > { %p9028_p7 = pnand %p9026_p5, %p9023_p3 }
  0x1c   : > { %9031 = shalt.err (!%p9028_p7)
}
  0x1d   : > { %s9032_s7 = scalar_lea.vmem %s9221_s22, 18432  ;;  %p9040_p2 = scmp.lt.s32.totalorder %s9221_s22, %s9221_s22 }
  0x1e   : > { %p9033_p9 = scmp.ne.s32.totalorder %s9221_s22, %s9032_s7  ;;  %p9041_p6 = scmp.lt.s32.totalorder %s9032_s7, %s9032_s7 }
  0x20   : > { %p9035_p10 = pnand %p9033_p9, %p9021_p13  ;;  %p9042_p4 = por %p9041_p6, %p9040_p2 }
  0x22   : > { %p9036_p1 = pneg %p9035_p10 }
  0x24   : > { %p9043_p8 = pnand %p9042_p4, %p9036_p1 }
  0x26   : > { %9046 = shalt.err (!%p9043_p8)
}
  0x27   : > { %s9150_s8 = smov 64   ;;  %s9151_s9 = smov 4  }
  0x28   : > { %8621 = dma.hbm_to_vmem [thread:$0]  (!%p9228_p11), %s10865_s1, 18432, %s9221_s22, [#allocation8], %s9150_s8, %s9150_s8, %s9151_s9  }
  0x29   : > { %p25_p1 = scmp.eq.s32.totalorder %s24_s26, 0  ;;  %p34_p2 = scmp.ne.s32.totalorder %s9143_s14, %s9139_s13 }
  0x2a   : > { %p35_p4 = scmp.eq.s32.totalorder %s9147_s15, 0  ;;  %p8631_p6 = scmp.lt.s32.totalorder %s9147_s15, 2 }
  0x2b   : > { %s9267_s17 = scalar_select %p25_p1, %s9143_s14, %s27_s25  }
  0x2c   : > { %p36_p8 = por %p35_p4, %p34_p2  ;;  %p10889_p10 = scmp.eq.s32.totalorder %s9198_s16, 1 }
  0x2d   : > { %s148_s23 = sand.u32 1, %s9143_s14   ;;  %s7152_s27 = sshll.u32 %s9147_s15, 11 }
  0x2e   : > { %p9271_p12 = por %p10889_p10, %p34_p2  ;;  %s6781_s28 = sshll.u32 %s148_s23, 7 }
  0x2f   : > { %s9280_s4 = scalar_lea.hbm %s10864_s0, %s7152_s27  ;;  %s152_s22 = scalar_lea.vmem [#allocation4], %s6781_s28 }
  0x30   : > { %s159_s25 = sshll.u32 %s152_s22, 4  ;;  %p9282_p11 = pnand %p8631_p6, %p36_p8  ;;  %s9286_s25 = int_to_ptr.vmem [resolvable:$true] %s159_s25 }
  0x31   : > { %s9288_s5 = scalar_lea.sflag [#allocation5], %s148_s23  ;;  %s9047_s6 = scalar_lea.hbm %s9280_s4, 2048 }
  0x32   : > { %p9048_p13 = scmp.ne.s32.totalorder %s9280_s4, %s9047_s6  ;;  %p9049_p0 = pneg %p9282_p11 }
  0x33   : > { %s9052_s11 = scalar_lea.hbm %s10864_s0, 4096  ;;  %p9053_p7 = scmp.lt.u32.totalorder %s9280_s4, %s10864_s0 }
  0x34   : > { %p9050_p3 = pnand %p9049_p0, %p9048_p13  ;;  %p9054_p9 = scmp.lt.u32.totalorder %s9052_s11, %s9047_s6 }
  0x35   : > { %p9056_p2 = scmp.lt.u32.totalorder %s9047_s6, %s9280_s4 }
  0x36   : > { %p9051_p5 = pneg %p9050_p3  ;;  %p9055_p1 = por %p9054_p9, %p9053_p7 }
  0x38   : > { %p9057_p4 = por %p9056_p2, %p9055_p1 }
  0x3a   : > { %p9058_p6 = pnand %p9057_p4, %p9051_p5 }
  0x3c   : > { %9061 = shalt.err (!%p9058_p6)
}
  0x3d   : > { %s9062_s23 = scalar_lea.vmem %s9286_s25, 2048  ;;  %s9152_s29 = smov [#allocation4]  }
  0x3e   : > { %p9063_p8 = scmp.ne.s32.totalorder %s9286_s25, %s9062_s23  ;;  %s9067_s30 = sshll.u32 %s9152_s29, 4  ;;  %s9068_s30 = int_to_ptr.vmem [resolvable:$false] %s9067_s30 }
  0x3f   : > { %s9069_s22 = scalar_lea.vmem %s9068_s30, 4096  ;;  %p9070_p3 = scmp.lt.s32.totalorder %s9286_s25, %s9068_s30 }
  0x40   : > { %p9065_p10 = pnand %p9063_p8, %p9049_p0  ;;  %p9071_p7 = scmp.lt.s32.totalorder %s9069_s22, %s9062_s23 }
  0x42   : > { %p9066_p13 = pneg %p9065_p10  ;;  %p9072_p9 = por %p9071_p7, %p9070_p3 }
  0x44   : > { %p9073_p1 = pnand %p9072_p9, %p9066_p13 }
  0x46   : > { %9076 = shalt.err (!%p9073_p1)
}
  0x47   : > { %8625 = dma.hbm_to_vmem [thread:$0]  (!%p9282_p11), %s9280_s4, 2048, %s9286_s25, %s9288_s5, %s9150_s8, %s9150_s8, %s9151_s9  }
  0x48   : > { %p10892_p0 = scmp.ne.s32.totalorder %s10887_s20, 0 }
  0x4a   : > { %171 = sbr.rel (%p10892_p0) target bundleno = 1196 (0x4ac), region = 32 }
  0x51   : > { %s9322_s6 = sand.u32 1, %s9139_s13   ;;  %p10893_p5 = scmp.ne.s32.totalorder %s10885_s18, 0 }
  0x52   : > { %s6785_s7 = sshll.u32 %s9322_s6, 7  ;;  %s174_s10 = scalar_lea.sflag [#allocation5], %s9322_s6 }
  0x53   : > { %s9326_s11 = scalar_lea.vmem [#allocation4], %s6785_s7 }
  0x54   : > { %9122 = dma.done.wait (%p10893_p5), %s174_s10, 2048  }
  0x55   : > { %9124 = vsyncadd (%p10893_p5), %s174_s10, 4294965248  ;;  %p10894_p11 = scmp.eq.s32.totalorder %s9198_s16, 0 }
  0x57   : > { %9126 = dma.done.wait (%p10894_p11), [#allocation8], 18432   ;;  %p10895_p2 = pmov %p10894_p11 }
  0x58   : > { %v9153_v0 = vmov 0   ;;  %v8672_v1 = vld [vmem:[#allocation7 + $0x100] sm:$0xff]   ;;  %v8676_v5 = vld [vmem:[#allocation7 + $0x108] sm:$0xff]   ;;  %v8680_v9 = vld [vmem:[#allocation7 + $0x110] sm:$0xff]   ;;  %vm291_vm0 = vsmask.f32 256 }
  0x59   : > { %9128 = vsyncadd (%p10895_p2), [#allocation8], 4294948864  ;;  %208 = vst [vmem:[#allocation2 + $0xc] sm:$0xf] %v9153_v0  ;;  %v8673_v2 = vld [vmem:[#allocation7 + $0xc0] sm:$0xff]   ;;  %7186 = vmatprep.subr.bf16.mxu0 %v8672_v1  ;;  %v8677_v6 = vld [vmem:[#allocation7 + $0xc8] sm:$0xff]  }
  0x5a   : > { %209 = vst [vmem:[#allocation2 + $0x10] sm:$0xf] %v9153_v0  ;;  %210 = vst [vmem:[#allocation2 + $0x14] sm:$0x1] %v9153_v0  ;;  %v8674_v3 = vld [vmem:[#allocation7 + $0x40] sm:$0xff]   ;;  %7187 = vmatpush3.bf16.msra.mxu0 %v8673_v2  ;;  %v8678_v7 = vld [vmem:[#allocation7 + $0x48] sm:$0xff]  }
  0x5b   : > { %205 = vst [vmem:[#allocation2] sm:$0xf] %v9153_v0  ;;  %206 = vst [vmem:[#allocation2 + $0x4] sm:$0xf] %v9153_v0  ;;  %v8675_v4 = vld [vmem:[#allocation7] sm:$0xff]   ;;  %7322 = vmatprep.subr.bf16.mxu1 %v8674_v3  ;;  %7188 = vmatprep.subr.bf16.mxu0 %v8676_v5  ;;  %v8679_v8 = vld [vmem:[#allocation7 + $0x8] sm:$0xff]  }
  0x5c   : > { %207 = vst [vmem:[#allocation2 + $0x8] sm:$0x1] %v9153_v0  ;;  %211 = vst [vmem:[#allocation2 + $0x18] sm:$0xf] %v9153_v0  ;;  %7323 = vmatpush3.bf16.msra.mxu1 %v8675_v4  ;;  %v8681_v10 = vld [vmem:[#allocation7 + $0xd0] sm:$0xff]   ;;  %v8684_v13 = vld [vmem:[#allocation7 + $0x118] sm:$0xff]  }
  0x5d   : > { %212 = vst [vmem:[#allocation2 + $0x1c] sm:$0xf] %v9153_v0  ;;  %213 = vst [vmem:[#allocation2 + $0x20] sm:$0x1] %v9153_v0  ;;  %7324 = vmatprep.subr.bf16.mxu1 %v8678_v7  ;;  %v8682_v11 = vld [vmem:[#allocation7 + $0x50] sm:$0xff]   ;;  %v8685_v14 = vld [vmem:[#allocation7 + $0xd8] sm:$0xff]  }
  0x5e   : > { %214 = vst [vmem:[#allocation2 + $0x24] sm:$0xf] %v9153_v0  ;;  %215 = vst [vmem:[#allocation2 + $0x28] sm:$0xf] %v9153_v0  ;;  %7189 = vmatpush3.bf16.msra.mxu0 %v8677_v6  ;;  %v8683_v12 = vld [vmem:[#allocation7 + $0x10] sm:$0xff]   ;;  %v8686_v15 = vld [vmem:[#allocation7 + $0x58] sm:$0xff]  }
  0x5f   : > { %216 = vst [vmem:[#allocation2 + $0x2c] sm:$0x1] %v9153_v0  ;;  %217 = vst [vmem:[#allocation2 + $0x30] sm:$0xf] %v9153_v0  ;;  %7190 = vmatprep.subr.bf16.mxu0 %v8680_v9  ;;  %v8687_v16 = vld [vmem:[#allocation7 + $0x18] sm:$0xff]   ;;  %v8688_v17 = vld [vmem:[#allocation7 + $0x120] sm:$0xff]  }
  0x60   : > { %218 = vst [vmem:[#allocation2 + $0x34] sm:$0xf] %v9153_v0  ;;  %219 = vst [vmem:[#allocation2 + $0x38] sm:$0x1] %v9153_v0  ;;  %7325 = vmatpush3.bf16.msra.mxu1 %v8679_v8  ;;  %v8689_v18 = vld [vmem:[#allocation7 + $0xe0] sm:$0xff]   ;;  %v8692_v21 = vld [vmem:[#allocation7 + $0x128] sm:$0xff]  }
  0x61   : > { %220 = vst [vmem:[#allocation2 + $0x3c] sm:$0xf] %v9153_v0  ;;  %221 = vst [vmem:[#allocation2 + $0x40] sm:$0xf] %v9153_v0  ;;  %7326 = vmatprep.subr.bf16.mxu1 %v8682_v11  ;;  %v8690_v19 = vld [vmem:[#allocation7 + $0x60] sm:$0xff]   ;;  %v8693_v22 = vld [vmem:[#allocation7 + $0xe8] sm:$0xff]  }
  0x62   : > { %222 = vst [vmem:[#allocation2 + $0x44] sm:$0x1] %v9153_v0  ;;  %223 = vst [vmem:[#allocation2 + $0x48] sm:$0xf] %v9153_v0  ;;  %7191 = vmatpush3.bf16.msra.mxu0 %v8681_v10  ;;  %v8691_v20 = vld [vmem:[#allocation7 + $0x20] sm:$0xff]   ;;  %v8694_v23 = vld [vmem:[#allocation7 + $0x68] sm:$0xff]  }
  0x63   : > { %224 = vst [vmem:[#allocation2 + $0x4c] sm:$0xf] %v9153_v0  ;;  %225 = vst [vmem:[#allocation2 + $0x50] sm:$0x1] %v9153_v0  ;;  %7192 = vmatprep.subr.bf16.mxu0 %v8684_v13  ;;  %vm292_vm1 = vsmask.f32 4368 }
  0x64   : > { %226 = vst [vmem:[#allocation2 + $0x54] sm:$0xf] %v9153_v0  ;;  %227 = vst [vmem:[#allocation2 + $0x58] sm:$0xf] %v9153_v0  ;;  %7327 = vmatpush3.bf16.msra.mxu1 %v8683_v12  ;;  %vm616_vm2 = vsmask.f32 7938 }
  0x65   : > { %228 = vst [vmem:[#allocation2 + $0x5c] sm:$0x1] %v9153_v0  ;;  %229 = vst [vmem:[#allocation2 + $0x60] sm:$0xf] %v9153_v0  ;;  %7328 = vmatprep.subr.bf16.mxu1 %v8686_v15  ;;  %v8695_v24 = vld [vmem:[#allocation7 + $0x28] sm:$0xff]   ;;  %v8696_v25 = vld [vmem:[#allocation7 + $0x130] sm:$0xff]  }
  0x66   : > { %230 = vst [vmem:[#allocation2 + $0x64] sm:$0xf] %v9153_v0  ;;  %231 = vst [vmem:[#allocation2 + $0x68] sm:$0x1] %v9153_v0  ;;  %7193 = vmatpush3.bf16.msra.mxu0 %v8685_v14  ;;  %v8697_v26 = vld [vmem:[#allocation7 + $0xf0] sm:$0xff]   ;;  %v8700_v29 = vld [vmem:[#allocation7 + $0x138] sm:$0xff]  }
  0x67   : > { %232 = vst [vmem:[#allocation2 + $0x6c] sm:$0xf] %v9153_v0  ;;  %233 = vst [vmem:[#allocation2 + $0x70] sm:$0xf] %v9153_v0  ;;  %7194 = vmatprep.subr.bf16.mxu0 %v8688_v17  ;;  %v8698_v27 = vld [vmem:[#allocation7 + $0x70] sm:$0xff]   ;;  %v8701_v30 = vld [vmem:[#allocation7 + $0xf8] sm:$0xff]  }
  0x68   : > { %234 = vst [vmem:[#allocation2 + $0x74] sm:$0x1] %v9153_v0  ;;  %235 = vst [vmem:[#allocation2 + $0x78] sm:$0xf] %v9153_v0  ;;  %7329 = vmatpush3.bf16.msra.mxu1 %v8687_v16  ;;  %v8699_v28 = vld [vmem:[#allocation7 + $0x30] sm:$0xff]   ;;  %v8702_v31 = vld [vmem:[#allocation7 + $0x78] sm:$0xff]  }
  0x69   : > { %236 = vst [vmem:[#allocation2 + $0x7c] sm:$0xf] %v9153_v0  ;;  %237 = vst [vmem:[#allocation2 + $0x80] sm:$0x1] %v9153_v0  ;;  %7330 = vmatprep.subr.bf16.mxu1 %v8690_v19  ;;  %vm615_vm3 = vcmask 1043456   ;;  %v8703_v32 = vld [vmem:[#allocation7 + $0x38] sm:$0xff]  }
  0x6a   : > { %238 = vst [vmem:[#allocation2 + $0x84] sm:$0xf] %v9153_v0  ;;  %239 = vst [vmem:[#allocation2 + $0x88] sm:$0xf] %v9153_v0  ;;  %7195 = vmatpush3.bf16.msra.mxu0 %v8689_v18  ;;  %v259_v33 = vld [vmem:[%s9326_s11] sm:$0xf] }
  0x6b   : > { %240 = vst [vmem:[#allocation2 + $0x8c] sm:$0x1] %v9153_v0  ;;  %241 = vst [vmem:[#allocation2 + $0x90] sm:$0xf] %v9153_v0  ;;  %7196 = vmatprep.subr.bf16.mxu0 %v8692_v21  ;;  %v260_v34 = vld [vmem:[%s9326_s11 + $0x4] sm:$0xf] }
  0x6c   : > { %242 = vst [vmem:[#allocation2 + $0x94] sm:$0xf] %v9153_v0  ;;  %243 = vst [vmem:[#allocation2 + $0x98] sm:$0x1] %v9153_v0  ;;  %7331 = vmatpush3.bf16.msra.mxu1 %v8691_v20  ;;  %v10896_v35 = vmov 0  ;;  %vm622_vm5 = vcmask 1040384  }
  0x6d   : > { %244 = vst [vmem:[#allocation2 + $0x9c] sm:$0xf] %v9153_v0  ;;  %245 = vst [vmem:[#allocation2 + $0xa0] sm:$0xf] %v9153_v0  ;;  %7332 = vmatprep.subr.bf16.mxu1 %v8694_v23  ;;  %v295_v36 = vshrl.u32 %v259_v33, 16  ;;  %v298_v37 = vshll.u32 %v259_v33, 16 }
  0x6e   : > { %246 = vst [vmem:[#allocation2 + $0xa4] sm:$0x1] %v9153_v0  ;;  %247 = vst [vmem:[#allocation2 + $0xa8] sm:$0xf] %v9153_v0  ;;  %7197 = vmatpush3.bf16.msra.mxu0 %v8693_v22  ;;  %v303_v38 = vshrl.u32 %v260_v34, 16  ;;  %v306_v39 = vshll.u32 %v260_v34, 16 }
  0x6f   : > { %248 = vst [vmem:[#allocation2 + $0xac] sm:$0xf] %v9153_v0  ;;  %249 = vst [vmem:[#allocation2 + $0xb0] sm:$0x1] %v9153_v0  ;;  %7198 = vmatprep.subr.bf16.mxu0 %v8696_v25  ;;  %v10899_v40 = vmov 0  ;;  %v9349_v43 = vld [vmem:[#allocation7 + $0x140] sm:$0xff]  }
  0x70   : > { %250 = vst [vmem:[#allocation2 + $0xb4] sm:$0xf] %v9153_v0  ;;  %251 = vst [vmem:[#allocation2 + $0xb8] sm:$0xf] %v9153_v0  ;;  %7333 = vmatpush3.bf16.msra.mxu1 %v8695_v24  ;;  %vm1092_vm7 = vsmask.f32 7424 }
  0x71   : > { %252 = vst [vmem:[#allocation2 + $0xbc] sm:$0x1] %v9153_v0  ;;  %253 = vst [vmem:[#allocation2 + $0xc0] sm:$0xf] %v9153_v0  ;;  %7334 = vmatprep.subr.bf16.mxu1 %v8698_v27  ;;  %v618_v41 = vld [vmem:[#allocation2 + $0xc] sm:$0xf] }
  0x72   : > { %254 = vst [vmem:[#allocation2 + $0xc4] sm:$0xf] %v9153_v0  ;;  %255 = vst [vmem:[#allocation2 + $0xc8] sm:$0x1] %v9153_v0  ;;  %7199 = vmatpush3.bf16.msra.mxu0 %v8697_v26  ;;  %v624_v42 = vld [vmem:[#allocation2 + $0x14] sm:$0x1] }
  0x73   : > { %256 = vst [vmem:[#allocation2 + $0xcc] sm:$0xf] %v9153_v0  ;;  %257 = vst [vmem:[#allocation2 + $0xd0] sm:$0xf] %v9153_v0  ;;  %7200 = vmatprep.subr.bf16.mxu0 %v8700_v29  ;;  %v297_v44 = vrot.slane %v295_v36, 7  ;;  %v305_v45 = vrot.slane %v303_v38, 7 }
  0x74   : > { %258 = vst [vmem:[#allocation2 + $0xd4] sm:$0x1] %v9153_v0  ;;  %7335 = vmatpush3.bf16.msra.mxu1 %v8699_v28  ;;  %vm9340_vm4 = vmor %vm291_vm0, %vm292_vm1  ;;  %v10902_v46 = vmov 0  ;;  %v8708_v47 = vld [vmem:[#allocation2] sm:$0xff]   ;;  %v263_v4 = vld [vmem:[%s9326_s11 + $0x10] sm:$0xf] }
  0x75   : > { %7336 = vmatprep.subr.bf16.mxu1 %v8702_v31  ;;  %v10897_v35 = vsel %vm9340_vm4, 4294967295, %v10896_v35  ;;  %vm9345_vm6 = vmand %vm615_vm3, %vm616_vm2  ;;  %v8709_v48 = vld [vmem:[#allocation2 + $0x8] ss:$0 sps:$4 sm:$0x11]   ;;  %v300_v49 = vor.u32 %v298_v37, %v297_v44  ;;  %v301_v50 = vrot.slane %v297_v44, 4  ;;  %v308_v51 = vor.u32 %v306_v39, %v305_v45  ;;  %v8710_v7 = vld [vmem:[#allocation2] sm:$0xff]  }
  0x76   : > { %7201 = vmatpush3.bf16.msra.mxu0 %v8701_v30  ;;  %10898 = vst [vmem:[#allocation13_spill] sm:$0xff] %v10897_v35  ;;  %v10900_v40 = vsel %vm9345_vm6, 4294967295, %v10899_v40  ;;  %vm9352_vm8 = vmand %vm622_vm5, %vm291_vm0  ;;  %v310_v52 = vrot.slane %v305_v45, 4  ;;  %v1094_v53 = vshrl.u32 %v8708_v47, 16  ;;  %v1096_v54 = vshll.u32 %v8708_v47, 16  ;;  %v8739_v31 = vld [vmem:[#allocation7 + $0x80] sm:$0xff]  }
  0x77   : > { %10901 = vst [vmem:[#allocation14_spill] sm:$0xff] %v10900_v40  ;;  %v10903_v46 = vsel %vm9352_vm8, 4294967295, %v10902_v46  ;;  %8002 = vmatprep.subr.bf16.mxu0 %v9349_v43  ;;  %v1101_v55 = vshll.u32 %v8709_v48, 16  ;;  %v261_v56 = vld [vmem:[%s9326_s11 + $0x8] sm:$0xf]  ;;  %v309_v57 = vsel %vm9340_vm4, %v301_v50, %v308_v51  ;;  %v619_v58 = vsel %vm9345_vm6, %v300_v49, %v618_v41  ;;  %v8842_v35 = vld [vmem:[#allocation7 + $0x390] sm:$0xff]  }
  0x78   : > { %7337 = vmatpush3.bf16.msra.mxu1 %v8703_v32  ;;  %10904 = vst [vmem:[#allocation15_spill] sm:$0xff] %v10903_v46  ;;  %v625_v59 = vsel %vm9352_vm8, %v310_v52, %v624_v42  ;;  %v262_v60 = vld [vmem:[%s9326_s11 + $0xc] sm:$0xf]  ;;  %v312_v61 = vshrl.u32 %v261_v56, 16  ;;  %620 = vst [vmem:[#allocation2 + $0xc] sm:$0xf] %v619_v58 }
  0x79   : > { %621 = vst [vmem:[#allocation2 + $0x10] sm:$0xf] %v309_v57  ;;  %626 = vst [vmem:[#allocation2 + $0x14] sm:$0x1] %v625_v59  ;;  %v1098_v62 = vrot.slane %v1096_v54, 1  ;;  %v1103_v63 = vrot.slane %v1101_v55, 1  ;;  %8050 = vmatprep.subr.bf16.mxu1 %v8739_v31 }
  0x7a   : > { %v315_v0 = vshll.u32 %v261_v56, 16  ;;  %v320_v1 = vshrl.u32 %v262_v60, 16  ;;  %v314_v2 = vrot.slane %v312_v61, 7  ;;  %v323_v3 = vshll.u32 %v262_v60, 16  ;;  %v264_v5 = vld [vmem:[%s9326_s11 + $0x14] sm:$0xf] }
  0x7b   : > { %v1099_v6 = vor.u32 %v1098_v62, %v1094_v53  ;;  %v627_v9 = vld [vmem:[#allocation2 + $0x18] sm:$0xf]  ;;  %v329_v10 = vshrl.u32 %v263_v4, 16  ;;  %v332_v11 = vshll.u32 %v263_v4, 16  ;;  %v631_v14 = vld [vmem:[#allocation2 + $0x20] sm:$0x1] }
  0x7c   : > { %v322_v8 = vrot.slane %v320_v1, 7  ;;  %v317_v12 = vor.u32 %v315_v0, %v314_v2  ;;  %v318_v13 = vrot.slane %v314_v2, 4  ;;  %v337_v15 = vshrl.u32 %v264_v5, 16  ;;  %v634_v23 = vld [vmem:[#allocation2 + $0x24] sm:$0xf]  ;;  %s6787_s26 = sshll.u32 %s9322_s6, 8 }
  0x7d   : > { %v340_v16 = vshll.u32 %v264_v5, 16  ;;  %v1104_v17 = vsel %vm1092_vm7, %v1099_v6, %v1103_v63  ;;  %v331_v20 = vrot.slane %v329_v10, 7  ;;  %v638_v28 = vld [vmem:[#allocation2 + $0x2c] sm:$0x1]  ;;  %v265_v29 = vld [vmem:[%s9326_s11 + $0x18] sm:$0xf] }
  0x7e   : > { %v325_v18 = vor.u32 %v323_v3, %v322_v8  ;;  %v327_v19 = vrot.slane %v322_v8, 4  ;;  %2470 = vmatprep.mubr.bf16.mxu1 %v1104_v17  ;;  %v628_v21 = vsel %vm9345_vm6, %v317_v12, %v627_v9  ;;  %v339_v22 = vrot.slane %v337_v15, 7  ;;  %v266_v30 = vld [vmem:[%s9326_s11 + $0x1c] sm:$0xf]  ;;  %v267_v48 = vld [vmem:[%s9326_s11 + $0x20] sm:$0xf] }
  0x7f   : > { %2471 = vmatmul.mubr.bf16.vlgmr.msra.gmra.mrb[0].mxu1 %v8710_v7  ;;  %629 = vst [vmem:[#allocation2 + $0x18] sm:$0xf] %v628_v21  ;;  %v334_v26 = vor.u32 %v332_v11, %v331_v20  ;;  %v335_v27 = vrot.slane %v331_v20, 4  ;;  %v346_v39 = vshrl.u32 %v265_v29, 16  ;;  %v349_v41 = vshll.u32 %v265_v29, 16  ;;  %v8717_v6 = vld [vmem:[#allocation7 + $0x148] sm:$0xff]  }
  0x80   : > { %v326_v24 = vsel %vm9340_vm4, %v318_v13, %v325_v18  ;;  %v632_v25 = vsel %vm9352_vm8, %v327_v19, %v631_v14  ;;  %v342_v32 = vor.u32 %v340_v16, %v339_v22  ;;  %v8704_v33 = vld [vmem:[#allocation2 + $0xc] sm:$0xff]   ;;  %v8705_v34 = vld [vmem:[#allocation2 + $0x14] ss:$0 sps:$4 sm:$0x11]   ;;  %v344_v38 = vrot.slane %v339_v22, 4  ;;  %8051 = vmatpush3.bf16.msra.mxu1 %v8739_v31  ;;  %v8747_v21 = vld [vmem:[#allocation7 + $0x88] sm:$0xff]  }
  0x81   : > { %630 = vst [vmem:[#allocation2 + $0x1c] sm:$0xf] %v326_v24  ;;  %633 = vst [vmem:[#allocation2 + $0x20] sm:$0x1] %v632_v25  ;;  %v635_v36 = vsel %vm9345_vm6, %v334_v26, %v634_v23  ;;  %v1106_v42 = vshrl.u32 %v8704_v33, 16  ;;  %v1108_v44 = vshll.u32 %v8704_v33, 16  ;;  %8052 = vmatprep.subr.bf16.mxu1 %v8747_v21 }
  0x82   : > { %v343_v37 = vsel %vm9340_vm4, %v335_v27, %v342_v32  ;;  %636 = vst [vmem:[#allocation2 + $0x24] sm:$0xf] %v635_v36  ;;  %v1113_v45 = vshll.u32 %v8705_v34, 16  ;;  %v354_v47 = vshrl.u32 %v266_v30, 16  ;;  %v639_v49 = vsel %vm9352_vm8, %v344_v38, %v638_v28  ;;  %v641_v52 = vld [vmem:[#allocation2 + $0x30] sm:$0xf] }
  0x83   : > { %637 = vst [vmem:[#allocation2 + $0x28] sm:$0xf] %v343_v37  ;;  %v348_v50 = vrot.slane %v346_v39, 7  ;;  %v357_v51 = vshll.u32 %v266_v30, 16  ;;  %v363_v53 = vshrl.u32 %v267_v48, 16  ;;  %v1110_v54 = vrot.slane %v1108_v44, 1 }
  0x84   : > { %v1115_v55 = vrot.slane %v1113_v45, 1  ;;  %v8706_v56 = vld [vmem:[#allocation2 + $0xc] sm:$0xff]   ;;  %640 = vst [vmem:[#allocation2 + $0x2c] sm:$0x1] %v639_v49  ;;  %v356_v57 = vrot.slane %v354_v47, 7  ;;  %v366_v59 = vshll.u32 %v267_v48, 16  ;;  %8053 = vmatpush3.bf16.msra.mxu1 %v8747_v21 }
  0x85   : > { %v645_v58 = vld [vmem:[#allocation2 + $0x38] sm:$0x1]  ;;  %v648_v60 = vld [vmem:[#allocation2 + $0x3c] sm:$0xf]  ;;  %v351_v61 = vor.u32 %v349_v41, %v348_v50  ;;  %v352_v62 = vrot.slane %v348_v50, 4  ;;  %v365_v0 = vrot.slane %v363_v53, 7  ;;  %v1111_v1 = vor.u32 %v1110_v54, %v1106_v42 }
  0x86   : > { %v268_v63 = vld [vmem:[%s9326_s11 + $0x24] sm:$0xf]  ;;  %v359_v3 = vor.u32 %v357_v51, %v356_v57  ;;  %v361_v4 = vrot.slane %v356_v57, 4  ;;  %v8724_v24 = vld [vmem:[#allocation7 + $0x150] sm:$0xff]   ;;  %v652_v30 = vld [vmem:[#allocation2 + $0x44] sm:$0x1] }
  0x87   : > { %v642_v7 = vsel %vm9345_vm6, %v351_v61, %v641_v52  ;;  %v368_v8 = vor.u32 %v366_v59, %v365_v0  ;;  %v1116_v9 = vsel %vm1092_vm7, %v1111_v1, %v1115_v55  ;;  %v369_v18 = vrot.slane %v365_v0, 4  ;;  %v8755_v32 = vld [vmem:[#allocation7 + $0x90] sm:$0xff]   ;;  %v269_v37 = vld [vmem:[%s9326_s11 + $0x28] sm:$0xf]  ;;  %v270_v38 = vld [vmem:[%s9326_s11 + $0x2c] sm:$0xf] }
  0x88   : > { %v8711_v2 = vld [vmem:[#allocation2 + $0x18] sm:$0xff]   ;;  %v8712_v5 = vld [vmem:[#allocation2 + $0x20] ss:$0 sps:$4 sm:$0x11]   ;;  %v360_v12 = vsel %vm9340_vm4, %v352_v62, %v359_v3  ;;  %643 = vst [vmem:[#allocation2 + $0x30] sm:$0xf] %v642_v7  ;;  %2004 = vmatprep.mubr.bf16.mxu0 %v1116_v9  ;;  %2478 = vmatprep.mubr.bf16.mxu1 %v1116_v9  ;;  %v646_v15 = vsel %vm9352_vm8, %v361_v4, %v645_v58 }
  0x89   : > { %v1118_v10 = vshrl.u32 %v8711_v2, 16  ;;  %v1120_v11 = vshll.u32 %v8711_v2, 16  ;;  %v1125_v13 = vshll.u32 %v8712_v5, 16  ;;  %644 = vst [vmem:[#allocation2 + $0x34] sm:$0xf] %v360_v12  ;;  %v649_v16 = vsel %vm9345_vm6, %v368_v8, %v648_v60  ;;  %2005 = vmatmul.mubr.bf16.vlgmr.msra.gmra.mrb[0].mxu0 %v8706_v56  ;;  %2479 = vmatmul.mubr.bf16.gmra.mrb[4].mxu1 %v8706_v56  ;;  %v8713_v26 = vld [vmem:[#allocation2 + $0x18] sm:$0xff]  }
  0x8a   : > { %v8714_v14 = vld [vmem:[#allocation2 + $0x24] sm:$0xff]   ;;  %647 = vst [vmem:[#allocation2 + $0x38] sm:$0x1] %v646_v15  ;;  %v371_v19 = vshrl.u32 %v268_v63, 16  ;;  %v374_v20 = vshll.u32 %v268_v63, 16  ;;  %8003 = vmatpush3.bf16.msra.mxu0 %v9349_v43  ;;  %v380_v41 = vshrl.u32 %v269_v37, 16  ;;  %8054 = vmatprep.subr.bf16.mxu1 %v8755_v32 }
  0x8b   : > { %v1122_v17 = vrot.slane %v1120_v11, 1  ;;  %650 = vst [vmem:[#allocation2 + $0x3c] sm:$0xf] %v649_v16  ;;  %v1127_v22 = vrot.slane %v1125_v13, 1  ;;  %v1130_v27 = vshrl.u32 %v8714_v14, 16  ;;  %v1132_v28 = vshll.u32 %v8714_v14, 16  ;;  %8004 = vmatprep.subr.bf16.mxu0 %v8717_v6  ;;  %8055 = vmatpush3.bf16.msra.mxu1 %v8755_v32 }
  0x8c   : > { %v8715_v23 = vld [vmem:[#allocation2 + $0x2c] ss:$0 sps:$4 sm:$0x11]   ;;  %v373_v29 = vrot.slane %v371_v19, 7  ;;  %v8731_v42 = vld [vmem:[#allocation7 + $0x158] sm:$0xff]   ;;  %v383_v50 = vshll.u32 %v269_v37, 16 }
  0x8d   : > { %v1123_v25 = vor.u32 %v1122_v17, %v1118_v10  ;;  %v1137_v31 = vshll.u32 %v8715_v23, 16  ;;  %v1134_v43 = vrot.slane %v1132_v28, 1  ;;  %v382_v55 = vrot.slane %v380_v41, 7  ;;  %v655_v59 = vld [vmem:[#allocation2 + $0x48] sm:$0xf]  ;;  %v8759_v61 = vld [vmem:[#allocation7 + $0x98] sm:$0xff]  }
  0x8e   : > { %v376_v34 = vor.u32 %v374_v20, %v373_v29  ;;  %v378_v36 = vrot.slane %v373_v29, 4  ;;  %8005 = vmatpush3.bf16.msra.mxu0 %v8717_v6  ;;  %v388_v56 = vshrl.u32 %v270_v38, 16  ;;  %v391_v57 = vshll.u32 %v270_v38, 16  ;;  %v271_v60 = vld [vmem:[%s9326_s11 + $0x30] sm:$0xf]  ;;  %v8738_v3 = vld [vmem:[#allocation7 + $0x160] sm:$0xff]   ;;  %8056 = vmatprep.subr.bf16.mxu1 %v8759_v61 }
  0x8f   : > { %v9395_v33 = vsel %vm1092_vm7, %v1123_v25, %v1127_v22  ;;  %v1139_v39 = vrot.slane %v1137_v31, 1  ;;  %v1135_v44 = vor.u32 %v1134_v43, %v1130_v27  ;;  %8006 = vmatprep.subr.bf16.mxu0 %v8724_v24  ;;  %v385_v63 = vor.u32 %v383_v50, %v382_v55  ;;  %v272_v2 = vld [vmem:[%s9326_s11 + $0x34] sm:$0xf]  ;;  %v8716_v4 = vld [vmem:[#allocation2 + $0x24] sm:$0xff]   ;;  %v659_v6 = vld [vmem:[#allocation2 + $0x50] sm:$0x1]  ;;  %8057 = vmatpush3.bf16.msra.mxu1 %v8759_v61 }
  0x90   : > { %2012 = vmatprep.mubr.bf16.mxu0 %v9395_v33  ;;  %2486 = vmatprep.mubr.bf16.mxu1 %v9395_v33  ;;  %v8718_v45 = vld [vmem:[#allocation2 + $0x30] sm:$0xff]   ;;  %v377_v47 = vsel %vm9340_vm4, %v369_v18, %v376_v34  ;;  %v653_v48 = vsel %vm9352_vm8, %v378_v36, %v652_v30  ;;  %v386_v0 = vrot.slane %v382_v55, 4  ;;  %v390_v1 = vrot.slane %v388_v56, 7  ;;  %v8764_v9 = vld [vmem:[#allocation7 + $0xa0] sm:$0xff]   ;;  %v8746_v15 = vld [vmem:[#allocation7 + $0x168] sm:$0xff]   ;;  %s10723_s5 = scalar_lea.vmem [#allocation9], %s6787_s26 }
  0x91   : > { %v8719_v49 = vld [vmem:[#allocation2 + $0x38] ss:$0 sps:$4 sm:$0x11]   ;;  %651 = vst [vmem:[#allocation2 + $0x40] sm:$0xf] %v377_v47  ;;  %2013 = vmatmul.mubr.bf16.gmra.mrb[4].mxu0 %v8713_v26  ;;  %v9406_v51 = vsel %vm1092_vm7, %v1135_v44, %v1139_v39  ;;  %2487 = vmatmul.mubr.bf16.gmra.mrb[8].mxu1 %v8713_v26  ;;  %v1142_v52 = vshrl.u32 %v8718_v45, 16  ;;  %v656_v12 = vsel %vm9345_vm6, %v385_v63, %v655_v59 }
  0x92   : > { %654 = vst [vmem:[#allocation2 + $0x44] sm:$0x1] %v653_v48  ;;  %v1144_v53 = vshll.u32 %v8718_v45, 16  ;;  %2020 = vmatprep.mubr.bf16.mxu0 %v9406_v51  ;;  %v1149_v54 = vshll.u32 %v8719_v49, 16  ;;  %2494 = vmatprep.mubr.bf16.mxu1 %v9406_v51  ;;  %v397_v7 = vshrl.u32 %v271_v60, 16  ;;  %v400_v8 = vshll.u32 %v271_v60, 16 }
  0x93   : > { %8007 = vmatpush3.bf16.msra.mxu0 %v8724_v24  ;;  %v393_v10 = vor.u32 %v391_v57, %v390_v1  ;;  %v395_v11 = vrot.slane %v390_v1, 4  ;;  %v405_v13 = vshrl.u32 %v272_v2, 16  ;;  %v662_v14 = vld [vmem:[#allocation2 + $0x54] sm:$0xf]  ;;  %657 = vst [vmem:[#allocation2 + $0x48] sm:$0xf] %v656_v12  ;;  %8058 = vmatprep.subr.bf16.mxu1 %v8764_v9 }
  0x94   : > { %v1146_v58 = vrot.slane %v1144_v53, 1  ;;  %v1151_v62 = vrot.slane %v1149_v54, 1  ;;  %8008 = vmatprep.subr.bf16.mxu0 %v8731_v42  ;;  %v399_v18 = vrot.slane %v397_v7, 7  ;;  %v408_v22 = vshll.u32 %v272_v2, 16  ;;  %v8765_v27 = vld [vmem:[#allocation7 + $0xa8] sm:$0xff]   ;;  %v8754_v32 = vld [vmem:[#allocation7 + $0x170] sm:$0xff]   ;;  %8059 = vmatpush3.bf16.msra.mxu1 %v8764_v9 }
  0x95   : > { %v394_v20 = vsel %vm9340_vm4, %v386_v0, %v393_v10  ;;  %v660_v21 = vsel %vm9352_vm8, %v395_v11, %v659_v6  ;;  %v407_v29 = vrot.slane %v405_v13, 7  ;;  %v273_v30 = vld [vmem:[%s9326_s11 + $0x38] sm:$0xf]  ;;  %v274_v31 = vld [vmem:[%s9326_s11 + $0x3c] sm:$0xf]  ;;  %8060 = vmatprep.subr.bf16.mxu1 %v8765_v27  ;;  %v8769_v48 = vld [vmem:[#allocation7 + $0xb0] sm:$0xff]  }
  0x96   : > { %v1147_v5 = vor.u32 %v1146_v58, %v1142_v52  ;;  %658 = vst [vmem:[#allocation2 + $0x4c] sm:$0xf] %v394_v20  ;;  %661 = vst [vmem:[#allocation2 + $0x50] sm:$0x1] %v660_v21  ;;  %v402_v25 = vor.u32 %v400_v8, %v399_v18  ;;  %v403_v26 = vrot.slane %v399_v18, 4  ;;  %v8720_v43 = vld [vmem:[#allocation2 + $0x30] sm:$0xff]  }
  0x97   : > { %8009 = vmatpush3.bf16.msra.mxu0 %v8731_v42  ;;  %v666_v37 = vld [vmem:[#allocation2 + $0x5c] sm:$0x1]  ;;  %v414_v38 = vshrl.u32 %v273_v30, 16  ;;  %v417_v39 = vshll.u32 %v273_v30, 16  ;;  %v410_v42 = vor.u32 %v408_v22, %v407_v29  ;;  %v412_v44 = vrot.slane %v407_v29, 4  ;;  %v8763_v63 = vld [vmem:[#allocation7 + $0x178] sm:$0xff]  }
  0x98   : > { %v9415_v16 = vsel %vm1092_vm7, %v1147_v5, %v1151_v62  ;;  %v8721_v17 = vld [vmem:[#allocation2 + $0x3c] sm:$0xff]   ;;  %8010 = vmatprep.subr.bf16.mxu0 %v8738_v3  ;;  %v663_v36 = vsel %vm9345_vm6, %v402_v25, %v662_v14  ;;  %v422_v45 = vshrl.u32 %v274_v31, 16  ;;  %v425_v52 = vshll.u32 %v274_v31, 16  ;;  %v673_v53 = vld [vmem:[#allocation2 + $0x68] sm:$0x1]  ;;  %8061 = vmatpush3.bf16.msra.mxu1 %v8765_v27  ;;  %v8770_v0 = vld [vmem:[#allocation7 + $0xb8] sm:$0xff]  }
  0x99   : > { %v8722_v19 = vld [vmem:[#allocation2 + $0x44] ss:$0 sps:$4 sm:$0x11]   ;;  %2021 = vmatmul.mubr.bf16.gmra.mrb[8].mxu0 %v8716_v4  ;;  %2495 = vmatmul.mubr.bf16.gmra.mrb[12].mxu1 %v8716_v4  ;;  %v1154_v23 = vshrl.u32 %v8721_v17, 16  ;;  %v1156_v24 = vshll.u32 %v8721_v17, 16  ;;  %v416_v50 = vrot.slane %v414_v38, 7  ;;  %v411_v55 = vsel %vm9340_vm4, %v403_v26, %v410_v42 }
  0x9a   : > { %2028 = vmatprep.mubr.bf16.mxu0 %v9415_v16  ;;  %v1161_v28 = vshll.u32 %v8722_v19, 16  ;;  %2502 = vmatprep.mubr.bf16.mxu1 %v9415_v16  ;;  %664 = vst [vmem:[#allocation2 + $0x54] sm:$0xf] %v663_v36  ;;  %v669_v47 = vld [vmem:[#allocation2 + $0x60] sm:$0xf]  ;;  %v667_v56 = vsel %vm9352_vm8, %v412_v44, %v666_v37  ;;  %v424_v57 = vrot.slane %v422_v45, 7 }
  0x9b   : > { %v1158_v34 = vrot.slane %v1156_v24, 1  ;;  %8011 = vmatpush3.bf16.msra.mxu0 %v8738_v3  ;;  %v275_v54 = vld [vmem:[%s9326_s11 + $0x40] sm:$0xf]  ;;  %665 = vst [vmem:[#allocation2 + $0x58] sm:$0xf] %v411_v55  ;;  %v419_v59 = vor.u32 %v417_v39, %v416_v50  ;;  %v420_v60 = vrot.slane %v416_v50, 4  ;;  %8062 = vmatprep.subr.bf16.mxu1 %v8769_v48 }
  0x9c   : > { %v1163_v41 = vrot.slane %v1161_v28, 1  ;;  %8012 = vmatprep.subr.bf16.mxu0 %v8746_v15  ;;  %668 = vst [vmem:[#allocation2 + $0x5c] sm:$0x1] %v667_v56  ;;  %v276_v61 = vld [vmem:[%s9326_s11 + $0x44] sm:$0xf]  ;;  %v431_v62 = vshrl.u32 %v275_v54, 16  ;;  %v427_v2 = vor.u32 %v425_v52, %v424_v57  ;;  %8063 = vmatpush3.bf16.msra.mxu1 %v8769_v48 }
  0x9d   : > { %v1159_v49 = vor.u32 %v1158_v34, %v1154_v23  ;;  %v8725_v1 = vld [vmem:[#allocation2 + $0x48] sm:$0xff]   ;;  %v429_v3 = vrot.slane %v424_v57, 4  ;;  %v8726_v4 = vld [vmem:[#allocation2 + $0x50] ss:$0 sps:$4 sm:$0x11]   ;;  %v670_v5 = vsel %vm9345_vm6, %v419_v59, %v669_v47  ;;  %v434_v6 = vshll.u32 %v275_v54, 16  ;;  %8064 = vmatprep.subr.bf16.mxu1 %v8770_v0 }
  0x9e   : > { %v1166_v7 = vshrl.u32 %v8725_v1, 16  ;;  %v1168_v8 = vshll.u32 %v8725_v1, 16  ;;  %v428_v9 = vsel %vm9340_vm4, %v420_v60, %v427_v2  ;;  %671 = vst [vmem:[#allocation2 + $0x60] sm:$0xf] %v670_v5  ;;  %v676_v11 = vld [vmem:[#allocation2 + $0x6c] sm:$0xf] }
  0x9f   : > { %v9433_v58 = vsel %vm1092_vm7, %v1159_v49, %v1163_v41  ;;  %8013 = vmatpush3.bf16.msra.mxu0 %v8746_v15  ;;  %v674_v10 = vsel %vm9352_vm8, %v429_v3, %v673_v53  ;;  %v1173_v12 = vshll.u32 %v8726_v4, 16  ;;  %672 = vst [vmem:[#allocation2 + $0x64] sm:$0xf] %v428_v9  ;;  %v433_v13 = vrot.slane %v431_v62, 7  ;;  %v8723_v18 = vld [vmem:[#allocation2 + $0x3c] sm:$0xff]   ;;  %v8727_v45 = vld [vmem:[#allocation2 + $0x48] sm:$0xff]  }
  0xa0   : > { %8014 = vmatprep.subr.bf16.mxu0 %v8754_v32  ;;  %675 = vst [vmem:[#allocation2 + $0x68] sm:$0x1] %v674_v10  ;;  %v1170_v14 = vrot.slane %v1168_v8, 1  ;;  %v439_v15 = vshrl.u32 %v276_v61, 16  ;;  %v442_v17 = vshll.u32 %v276_v61, 16  ;;  %8065 = vmatpush3.bf16.msra.mxu1 %v8770_v0  ;;  %vm1543_vm9 = vcmask 1046528  }
  0xa1   : > { %2029 = vmatmul.mubr.bf16.gmra.mrb[12].mxu0 %v8720_v43  ;;  %2503 = vmatmul.mubr.bf16.gmra.mrb[16].mxu1 %v8720_v43  ;;  %v1175_v19 = vrot.slane %v1173_v12, 1  ;;  %v436_v20 = vor.u32 %v434_v6, %v433_v13  ;;  %v437_v21 = vrot.slane %v433_v13, 4  ;;  %v680_v25 = vld [vmem:[#allocation2 + $0x74] sm:$0x1]  ;;  %v278_v43 = vld [vmem:[%s9326_s11 + $0x4c] sm:$0xf] }
  0xa2   : > { %2036 = vmatprep.mubr.bf16.mxu0 %v9433_v58  ;;  %2510 = vmatprep.mubr.bf16.mxu1 %v9433_v58  ;;  %v1171_v22 = vor.u32 %v1170_v14, %v1166_v7  ;;  %v8728_v23 = vld [vmem:[#allocation2 + $0x54] sm:$0xff]   ;;  %v441_v24 = vrot.slane %v439_v15, 7  ;;  %v456_v54 = vshrl.u32 %v278_v43, 16  ;;  %v459_v55 = vshll.u32 %v278_v43, 16  ;;  %v279_v57 = vld [vmem:[%s9326_s11 + $0x50] sm:$0xf] }
  0xa3   : > { %8015 = vmatpush3.bf16.msra.mxu0 %v8754_v32  ;;  %v8729_v26 = vld [vmem:[#allocation2 + $0x5c] ss:$0 sps:$4 sm:$0x11]   ;;  %v677_v27 = vsel %vm9345_vm6, %v436_v20, %v676_v11  ;;  %v1178_v29 = vshrl.u32 %v8728_v23, 16  ;;  %v1180_v30 = vshll.u32 %v8728_v23, 16  ;;  %v465_v62 = vshrl.u32 %v279_v57, 16 }
  0xa4   : > { %8016 = vmatprep.subr.bf16.mxu0 %v8763_v63  ;;  %v9447_v28 = vsel %vm1092_vm7, %v1171_v22, %v1175_v19  ;;  %v444_v31 = vor.u32 %v442_v17, %v441_v24  ;;  %678 = vst [vmem:[#allocation2 + $0x6c] sm:$0xf] %v677_v27  ;;  %v277_v32 = vld [vmem:[%s9326_s11 + $0x48] sm:$0xf]  ;;  %v1185_v34 = vshll.u32 %v8729_v26, 16  ;;  %v446_v36 = vrot.slane %v441_v24, 4 }
  0xa5   : > { %v1182_v37 = vrot.slane %v1180_v30, 1  ;;  %v448_v50 = vshrl.u32 %v277_v32, 16  ;;  %v451_v53 = vshll.u32 %v277_v32, 16  ;;  %v683_v56 = vld [vmem:[#allocation2 + $0x78] sm:$0xf]  ;;  %v458_v1 = vrot.slane %v456_v54, 7 }
  0xa6   : > { %v8732_v38 = vld [vmem:[#allocation2 + $0x60] sm:$0xff]   ;;  %v445_v39 = vsel %vm9340_vm4, %v437_v21, %v444_v31  ;;  %v1187_v41 = vrot.slane %v1185_v34, 1  ;;  %v681_v44 = vsel %vm9352_vm8, %v446_v36, %v680_v25  ;;  %v280_v61 = vld [vmem:[%s9326_s11 + $0x54] sm:$0xf]  ;;  %v467_v5 = vrot.slane %v465_v62, 7  ;;  %v8730_v25 = vld [vmem:[#allocation2 + $0x54] sm:$0xff]  }
  0xa7   : > { %8017 = vmatpush3.bf16.msra.mxu0 %v8763_v63  ;;  %v8733_v42 = vld [vmem:[#allocation2 + $0x68] ss:$0 sps:$4 sm:$0x11]   ;;  %679 = vst [vmem:[#allocation2 + $0x70] sm:$0xf] %v445_v39  ;;  %v1183_v47 = vor.u32 %v1182_v37, %v1178_v29  ;;  %v1190_v48 = vshrl.u32 %v8732_v38, 16  ;;  %v461_v7 = vor.u32 %v459_v55, %v458_v1 }
  0xa8   : > { %v1192_v49 = vshll.u32 %v8732_v38, 16  ;;  %682 = vst [vmem:[#allocation2 + $0x74] sm:$0x1] %v681_v44  ;;  %v1197_v52 = vshll.u32 %v8733_v42, 16  ;;  %v450_v60 = vrot.slane %v448_v50, 7  ;;  %v8777_v63 = vld [vmem:[#allocation7 + $0x1c0] sm:$0xff]  }
  0xa9   : > { %2037 = vmatmul.mubr.bf16.gmra.mrb[16].mxu0 %v8723_v18  ;;  %2511 = vmatmul.mubr.bf16.gmra.mrb[20].mxu1 %v8723_v18  ;;  %v9460_v0 = vsel %vm1092_vm7, %v1183_v47, %v1187_v41  ;;  %v687_v4 = vld [vmem:[#allocation2 + $0x80] sm:$0x1]  ;;  %v690_v6 = vld [vmem:[#allocation2 + $0x84] sm:$0xf]  ;;  %v463_v8 = vrot.slane %v458_v1, 4  ;;  %v468_v9 = vshll.u32 %v279_v57, 16 }
  0xaa   : > { %2044 = vmatprep.mubr.bf16.mxu0 %v9447_v28  ;;  %2518 = vmatprep.mubr.bf16.mxu1 %v9447_v28  ;;  %v1194_v59 = vrot.slane %v1192_v49, 1  ;;  %v453_v2 = vor.u32 %v451_v53, %v450_v60  ;;  %v454_v3 = vrot.slane %v450_v60, 4  ;;  %v473_v10 = vshrl.u32 %v280_v61, 16  ;;  %v694_v20 = vld [vmem:[#allocation2 + $0x8c] sm:$0x1]  ;;  %s7185_s27 = sshll.u32 %s9198_s16, 12 }
  0xab   : > { %7458 = vmatprep.subr.bf16.mxu0 %v8777_v63  ;;  %v1199_v12 = vrot.slane %v1197_v52, 1  ;;  %v688_v18 = vsel %vm9352_vm8, %v463_v8, %v687_v4  ;;  %v470_v19 = vor.u32 %v468_v9, %v467_v5  ;;  %v471_v22 = vrot.slane %v467_v5, 4  ;;  %v281_v43 = vld [vmem:[%s9326_s11 + $0x58] sm:$0xf]  ;;  %v282_v34 = vld [vmem:[%s9326_s11 + $0x5c] sm:$0xf]  ;;  %s10815_s30 = scalar_lea.hbm %s10867_s3, %s7185_s27 }
  0xac   : > { %v1195_v11 = vor.u32 %v1194_v59, %v1190_v48  ;;  %v684_v14 = vsel %vm9345_vm6, %v453_v2, %v683_v56  ;;  %v462_v17 = vsel %vm9340_vm4, %v454_v3, %v461_v7  ;;  %689 = vst [vmem:[#allocation2 + $0x80] sm:$0x1] %v688_v18  ;;  %v475_v23 = vrot.slane %v473_v10, 7  ;;  %v283_v47 = vld [vmem:[%s9326_s11 + $0x60] sm:$0xf]  ;;  %v8734_v56 = vld [vmem:[#allocation2 + $0x60] sm:$0xff]  }
  0xad   : > { %685 = vst [vmem:[#allocation2 + $0x78] sm:$0xf] %v684_v14  ;;  %686 = vst [vmem:[#allocation2 + $0x7c] sm:$0xf] %v462_v17  ;;  %v476_v24 = vshll.u32 %v280_v61, 16  ;;  %v691_v27 = vsel %vm9345_vm6, %v470_v19, %v690_v6  ;;  %v482_v37 = vshrl.u32 %v281_v43, 16 }
  0xae   : > { %v8735_v13 = vld [vmem:[#allocation2 + $0x6c] sm:$0xff]   ;;  %v9473_v29 = vsel %vm1092_vm7, %v1195_v11, %v1199_v12  ;;  %v480_v32 = vrot.slane %v475_v23, 4  ;;  %692 = vst [vmem:[#allocation2 + $0x84] sm:$0xf] %v691_v27  ;;  %v485_v38 = vshll.u32 %v281_v43, 16  ;;  %v490_v39 = vshrl.u32 %v282_v34, 16 }
  0xaf   : > { %v8736_v15 = vld [vmem:[#allocation2 + $0x74] ss:$0 sps:$4 sm:$0x11]   ;;  %v1204_v21 = vshll.u32 %v8735_v13, 16  ;;  %v1202_v30 = vshrl.u32 %v8735_v13, 16  ;;  %v478_v31 = vor.u32 %v476_v24, %v475_v23  ;;  %v493_v44 = vshll.u32 %v282_v34, 16 }
  0xb0   : > { %v1209_v26 = vshll.u32 %v8736_v15, 16  ;;  %v695_v42 = vsel %vm9352_vm8, %v480_v32, %v694_v20  ;;  %v484_v49 = vrot.slane %v482_v37, 7  ;;  %v492_v50 = vrot.slane %v490_v39, 7  ;;  %v284_v52 = vld [vmem:[%s9326_s11 + $0x64] sm:$0xf]  ;;  %s6694_s28 = sshll.u32 %s10723_s5, 4  ;;  %s10817_s28 = int_to_ptr.vmem [resolvable:$true] %s6694_s28 }
  0xb1   : > { %2045 = vmatmul.mubr.bf16.gmra.mrb[20].mxu0 %v8727_v45  ;;  %2519 = vmatmul.mubr.bf16.gmra.mrb[24].mxu1 %v8727_v45  ;;  %v1206_v36 = vrot.slane %v1204_v21, 1  ;;  %v479_v41 = vsel %vm9340_vm4, %v471_v22, %v478_v31  ;;  %v697_v45 = vld [vmem:[#allocation2 + $0x90] sm:$0xf]  ;;  %696 = vst [vmem:[#allocation2 + $0x8c] sm:$0x1] %v695_v42  ;;  %v499_v53 = vshrl.u32 %v283_v47, 16 }
  0xb2   : > { %2052 = vmatprep.mubr.bf16.mxu0 %v9460_v0  ;;  %2526 = vmatprep.mubr.bf16.mxu1 %v9460_v0  ;;  %v1211_v48 = vrot.slane %v1209_v26, 1  ;;  %693 = vst [vmem:[#allocation2 + $0x88] sm:$0xf] %v479_v41  ;;  %v502_v54 = vshll.u32 %v283_v47, 16  ;;  %v507_v55 = vshrl.u32 %v284_v52, 16  ;;  %v487_v60 = vor.u32 %v485_v38, %v484_v49  ;;  %s6681_s16 = scalar_lea.sflag [#allocation6], %s9322_s6 }
  0xb3   : > { %v1207_v57 = vor.u32 %v1206_v36, %v1202_v30  ;;  %v488_v61 = vrot.slane %v484_v49, 4  ;;  %v495_v62 = vor.u32 %v493_v44, %v492_v50  ;;  %v701_v63 = vld [vmem:[#allocation2 + $0x98] sm:$0x1]  ;;  %v8741_v1 = vld [vmem:[#allocation2 + $0x80] ss:$0 sps:$4 sm:$0x11]  }
  0xb4   : > { %v8740_v59 = vld [vmem:[#allocation2 + $0x78] sm:$0xff]   ;;  %v510_v2 = vshll.u32 %v284_v52, 16  ;;  %v698_v6 = vsel %vm9345_vm6, %v487_v60, %v697_v45  ;;  %v1221_v7 = vshll.u32 %v8741_v1, 16  ;;  %v497_v8 = vrot.slane %v492_v50, 4  ;;  %v708_v14 = vld [vmem:[#allocation2 + $0xa4] sm:$0x1] }
  0xb5   : > { %v1214_v3 = vshrl.u32 %v8740_v59, 16  ;;  %v1216_v4 = vshll.u32 %v8740_v59, 16  ;;  %v496_v5 = vsel %vm9340_vm4, %v488_v61, %v495_v62  ;;  %699 = vst [vmem:[#allocation2 + $0x90] sm:$0xf] %v698_v6  ;;  %v501_v9 = vrot.slane %v499_v53, 7  ;;  %v8737_v30 = vld [vmem:[#allocation2 + $0x6c] sm:$0xff]  }
  0xb6   : > { %700 = vst [vmem:[#allocation2 + $0x94] sm:$0xf] %v496_v5  ;;  %v509_v10 = vrot.slane %v507_v55, 7  ;;  %v704_v11 = vld [vmem:[#allocation2 + $0x9c] sm:$0xf]  ;;  %v9490_v12 = vsel %vm1092_vm7, %v1207_v57, %v1211_v48  ;;  %v702_v17 = vsel %vm9352_vm8, %v497_v8, %v701_v63  ;;  %v1223_v20 = vrot.slane %v1221_v7, 1 }
  0xb7   : > { %v1218_v13 = vrot.slane %v1216_v4, 1  ;;  %v504_v18 = vor.u32 %v502_v54, %v501_v9  ;;  %703 = vst [vmem:[#allocation2 + $0x98] sm:$0x1] %v702_v17  ;;  %v505_v24 = vrot.slane %v501_v9, 4  ;;  %v285_v43 = vld [vmem:[%s9326_s11 + $0x68] sm:$0xf] }
  0xb8   : > { %v512_v19 = vor.u32 %v510_v2, %v509_v10  ;;  %v8744_v21 = vld [vmem:[#allocation2 + $0x8c] ss:$0 sps:$4 sm:$0x11]   ;;  %v286_v34 = vld [vmem:[%s9326_s11 + $0x6c] sm:$0xf]  ;;  %v516_v41 = vshrl.u32 %v285_v43, 16 }
  0xb9   : > { %2053 = vmatmul.mubr.bf16.gmra.mrb[24].mxu0 %v8730_v25  ;;  %2527 = vmatmul.mubr.bf16.gmra.mrb[28].mxu1 %v8730_v25  ;;  %v8743_v15 = vld [vmem:[#allocation2 + $0x84] sm:$0xff]   ;;  %v1219_v22 = vor.u32 %v1218_v13, %v1214_v3  ;;  %v514_v25 = vrot.slane %v509_v10, 4  ;;  %v1233_v26 = vshll.u32 %v8744_v21, 16  ;;  %v705_v27 = vsel %vm9345_vm6, %v504_v18, %v704_v11  ;;  %v715_v54 = vld [vmem:[#allocation2 + $0xb0] sm:$0x1]  ;;  %v8742_v60 = vld [vmem:[#allocation2 + $0x78] sm:$0xff]  }
  0xba   : > { %2060 = vmatprep.mubr.bf16.mxu0 %v9473_v29  ;;  %2534 = vmatprep.mubr.bf16.mxu1 %v9473_v29  ;;  %v1228_v23 = vshll.u32 %v8743_v15, 16  ;;  %v513_v31 = vsel %vm9340_vm4, %v505_v24, %v512_v19  ;;  %706 = vst [vmem:[#allocation2 + $0x9c] sm:$0xf] %v705_v27  ;;  %v1226_v36 = vshrl.u32 %v8743_v15, 16  ;;  %v519_v45 = vshll.u32 %v285_v43, 16  ;;  %v8745_v24 = vld [vmem:[#allocation2 + $0x84] sm:$0xff]  }
  0xbb   : > { %v709_v32 = vsel %vm9352_vm8, %v514_v25, %v708_v14  ;;  %707 = vst [vmem:[#allocation2 + $0xa0] sm:$0xf] %v513_v31  ;;  %v9505_v38 = vsel %vm1092_vm7, %v1219_v22, %v1223_v20  ;;  %v1235_v42 = vrot.slane %v1233_v26, 1  ;;  %v524_v47 = vshrl.u32 %v286_v34, 16  ;;  %v711_v53 = vld [vmem:[#allocation2 + $0xa8] sm:$0xf] }
  0xbc   : > { %710 = vst [vmem:[#allocation2 + $0xa4] sm:$0x1] %v709_v32  ;;  %v1230_v39 = vrot.slane %v1228_v23, 1  ;;  %v518_v49 = vrot.slane %v516_v41, 7  ;;  %v527_v52 = vshll.u32 %v286_v34, 16  ;;  %s9077_s22 = scalar_lea.vmem %s10817_s28, 4096 }
  0xbd   : > { %v8748_v37 = vld [vmem:[#allocation2 + $0x90] sm:$0xff]   ;;  %v526_v50 = vrot.slane %v524_v47, 7  ;;  %v287_v9 = vld [vmem:[%s9326_s11 + $0x70] sm:$0xf]  ;;  %v288_v10 = vld [vmem:[%s9326_s11 + $0x74] sm:$0xf]  ;;  %p9078_p4 = scmp.ne.s32.totalorder %s10817_s28, %s9077_s22 }
  0xbe   : > { %v1240_v44 = vshll.u32 %v8748_v37, 16  ;;  %v8749_v48 = vld [vmem:[#allocation2 + $0x98] ss:$0 sps:$4 sm:$0x11]   ;;  %v1231_v55 = vor.u32 %v1230_v39, %v1226_v36  ;;  %v521_v57 = vor.u32 %v519_v45, %v518_v49  ;;  %v522_v59 = vrot.slane %v518_v49, 4  ;;  %s9154_s7 = smov [#allocation9]  }
  0xbf   : > { %v529_v61 = vor.u32 %v527_v52, %v526_v50  ;;  %v531_v62 = vrot.slane %v526_v50, 4  ;;  %v1238_v2 = vshrl.u32 %v8748_v37, 16  ;;  %v533_v13 = vshrl.u32 %v287_v9, 16  ;;  %v718_v19 = vld [vmem:[#allocation2 + $0xb4] sm:$0xf]  ;;  %p9079_p6 = pnand %p9078_p4, %p9271_p12  ;;  %s9081_s10 = sshll.u32 %s9154_s7, 4  ;;  %s9082_s10 = int_to_ptr.vmem [resolvable:$false] %s9081_s10 }
  0xc0   : > { %v712_v1 = vsel %vm9345_vm6, %v521_v57, %v711_v53  ;;  %v9518_v6 = vsel %vm1092_vm7, %v1231_v55, %v1235_v42  ;;  %v1242_v7 = vrot.slane %v1240_v44, 1  ;;  %v536_v14 = vshll.u32 %v287_v9, 16  ;;  %v722_v22 = vld [vmem:[#allocation2 + $0xbc] sm:$0x1]  ;;  %v289_v31 = vld [vmem:[%s9326_s11 + $0x78] sm:$0xf]  ;;  %p9084_p10 = scmp.lt.s32.totalorder %s10817_s28, %s9082_s10 }
  0xc1   : > { %2061 = vmatmul.mubr.bf16.gmra.mrb[28].mxu0 %v8734_v56  ;;  %2535 = vmatmul.mubr.bf16.gmra.mrb[32].mxu1 %v8734_v56  ;;  %v1245_v56 = vshll.u32 %v8749_v48, 16  ;;  %v530_v4 = vsel %vm9340_vm4, %v522_v59, %v529_v61  ;;  %713 = vst [vmem:[#allocation2 + $0xa8] sm:$0xf] %v712_v1  ;;  %v716_v5 = vsel %vm9352_vm8, %v531_v62, %v715_v54  ;;  %v541_v15 = vshrl.u32 %v288_v10, 16  ;;  %v290_v32 = vld [vmem:[%s9326_s11 + $0x7c] sm:$0xf]  ;;  %p9080_p8 = pneg %p9079_p6 }
  0xc2   : > { %2068 = vmatprep.mubr.bf16.mxu0 %v9490_v12  ;;  %2542 = vmatprep.mubr.bf16.mxu1 %v9490_v12  ;;  %v9509_v63 = vld [vmem:[#allocation2 + $0x9c] sm:$0xff]   ;;  %714 = vst [vmem:[#allocation2 + $0xac] sm:$0xf] %v530_v4  ;;  %717 = vst [vmem:[#allocation2 + $0xb0] sm:$0x1] %v716_v5  ;;  %v544_v18 = vshll.u32 %v288_v10, 16  ;;  %v1243_v23 = vor.u32 %v1242_v7, %v1238_v2 }
  0xc3   : > { %v8752_v3 = vld [vmem:[#allocation2 + $0xa4] ss:$0 sps:$4 sm:$0x11]   ;;  %v1247_v8 = vrot.slane %v1245_v56, 1  ;;  %v1252_v11 = vshll.u32 %v9509_v63, 16  ;;  %v535_v20 = vrot.slane %v533_v13, 7 }
  0xc4   : > { %v1257_v17 = vshll.u32 %v8752_v3, 16  ;;  %v543_v21 = vrot.slane %v541_v15, 7  ;;  %v550_v39 = vshrl.u32 %v289_v31, 16  ;;  %v1250_v42 = vshrl.u32 %v9509_v63, 16  ;;  %v725_v53 = vld [vmem:[#allocation2 + $0xc0] sm:$0xf] }
  0xc5   : > { %v538_v25 = vor.u32 %v536_v14, %v535_v20  ;;  %v539_v26 = vrot.slane %v535_v20, 4  ;;  %v9534_v41 = vsel %vm1092_vm7, %v1243_v23, %v1247_v8  ;;  %v1254_v44 = vrot.slane %v1252_v11, 1  ;;  %v9537_v54 = vld [vmem:[#allocation7 + $0x200] sm:$0xff]   ;;  %v729_v57 = vld [vmem:[#allocation2 + $0xc8] sm:$0x1]  ;;  %v8750_v63 = vld [vmem:[#allocation2 + $0x90] sm:$0xff]  }
  0xc6   : > { %v546_v27 = vor.u32 %v544_v18, %v543_v21  ;;  %v1259_v45 = vrot.slane %v1257_v17, 1  ;;  %v552_v47 = vrot.slane %v550_v39, 7  ;;  %v553_v48 = vshll.u32 %v289_v31, 16  ;;  %8098 = vmatprep.subr.bf16.mxu1 %v9537_v54  ;;  %v8753_v17 = vld [vmem:[#allocation2 + $0x9c] sm:$0xff]   ;;  %s9083_s11 = scalar_lea.vmem %s9082_s10, 8192 }
  0xc7   : > { %v719_v36 = vsel %vm9345_vm6, %v538_v25, %v718_v19  ;;  %v558_v50 = vshrl.u32 %v290_v32, 16  ;;  %v561_v52 = vshll.u32 %v290_v32, 16  ;;  %v1255_v61 = vor.u32 %v1254_v44, %v1250_v42  ;;  %v8776_v31 = vld [vmem:[#allocation2 + $0x8] ss:$0 sps:$4 sm:$0x11]   ;;  %p9085_p13 = scmp.lt.s32.totalorder %s9083_s11, %s9077_s22 }
  0xc8   : > { %v547_v34 = vsel %vm9340_vm4, %v539_v26, %v546_v27  ;;  %720 = vst [vmem:[#allocation2 + $0xb4] sm:$0xf] %v719_v36  ;;  %v555_v56 = vor.u32 %v553_v48, %v552_v47  ;;  %v556_v59 = vrot.slane %v552_v47, 4  ;;  %v1545_v44 = vrot.slane %v8776_v31, 1  ;;  %v8771_v48 = vld [vmem:[#allocation2 + $0xc] sm:$0xfe]  }
  0xc9   : > { %2069 = vmatmul.mubr.bf16.gmra.mrb[32].mxu0 %v8737_v30  ;;  %2543 = vmatmul.mubr.bf16.gmra.mrb[36].mxu1 %v8737_v30  ;;  %v548_v30 = vrot.slane %v543_v21, 4  ;;  %v8756_v43 = vld [vmem:[#allocation2 + $0xa8] sm:$0xff]   ;;  %721 = vst [vmem:[#allocation2 + $0xb8] sm:$0xf] %v547_v34  ;;  %v9549_v5 = vsel %vm1092_vm7, %v1255_v61, %v1259_v45  ;;  %p9086_p3 = por %p9085_p13, %p9084_p10 }
  0xca   : > { %2076 = vmatprep.mubr.bf16.mxu0 %v9505_v38  ;;  %2550 = vmatprep.mubr.bf16.mxu1 %v9505_v38  ;;  %v1264_v49 = vshll.u32 %v8756_v43, 16  ;;  %v8757_v55 = vld [vmem:[#allocation2 + $0xb0] ss:$0 sps:$4 sm:$0x11]   ;;  %v726_v62 = vsel %vm9345_vm6, %v555_v56, %v725_v53  ;;  %v1262_v7 = vshrl.u32 %v8756_v43, 16  ;;  %v8758_v27 = vld [vmem:[#allocation2 + $0xa8] sm:$0xff]  }
  0xcb   : > { %v723_v37 = vsel %vm9352_vm8, %v548_v30, %v722_v22  ;;  %727 = vst [vmem:[#allocation2 + $0xc0] sm:$0xf] %v726_v62  ;;  %v1269_v9 = vshll.u32 %v8757_v55, 16  ;;  %v8775_v30 = vld [vmem:[#allocation2] sm:$0xfe]   ;;  %v1547_v55 = vrot.slane %v8771_v48, 1  ;;  %p9087_p7 = pnand %p9086_p3, %p9080_p8 }
  0xcc   : > { %724 = vst [vmem:[#allocation2 + $0xbc] sm:$0x1] %v723_v37  ;;  %v1266_v8 = vrot.slane %v1264_v49, 1  ;;  %v1544_v42 = vrot.slane %v8775_v30, 1  ;;  %v8789_v30 = vld [vmem:[#allocation7 + $0x1d0] sm:$0xff]   ;;  %v8796_v48 = vld [vmem:[#allocation7 + $0x198] sm:$0xff]  }
  0xcd   : > { %v1271_v14 = vrot.slane %v1269_v9, 1  ;;  %v8772_v47 = vld [vmem:[#allocation2 + $0x14] ss:$0 sps:$4 sm:$0x11]   ;;  %v8811_v9 = vld [vmem:[#allocation7 + $0x210] sm:$0xff]  }
  0xce   : > { %v1267_v13 = vor.u32 %v1266_v8, %v1262_v7  ;;  %v8774_v53 = vld [vmem:[#allocation2 + $0x20] ss:$0 sps:$4 sm:$0x11]   ;;  %v1548_v56 = vrot.slane %v8772_v47, 1  ;;  %v8781_v7 = vld [vmem:[#allocation2 + $0x30] sm:$0xfe]  }
  0xcf   : > { %v1551_v62 = vrot.slane %v8774_v53, 1  ;;  %v8782_v8 = vld [vmem:[#allocation2 + $0x38] ss:$0 sps:$4 sm:$0x11]   ;;  %v8790_v31 = vld [vmem:[#allocation7 + $0x190] sm:$0xff]   ;;  %v8820_v53 = vld [vmem:[#allocation7 + $0x228] sm:$0xff]  }
  0xd0   : > { %v8760_v10 = vld [vmem:[#allocation2 + $0xb4] sm:$0xff]   ;;  %v9554_v18 = vsel %vm1092_vm7, %v1267_v13, %v1271_v14 }
  0xd1   : > { %2077 = vmatmul.mubr.bf16.gmra.mrb[36].mxu0 %v8742_v60  ;;  %2551 = vmatmul.mubr.bf16.gmra.mrb[40].mxu1 %v8742_v60  ;;  %v560_v60 = vrot.slane %v558_v50, 7  ;;  %v1276_v15 = vshll.u32 %v8760_v10, 16  ;;  %v1274_v19 = vshrl.u32 %v8760_v10, 16  ;;  %v8762_v45 = vld [vmem:[#allocation2 + $0xb4] sm:$0xff]   ;;  %v8785_v10 = vld [vmem:[#allocation2 + $0x3c] sm:$0xfe]  }
  0xd2   : > { %2084 = vmatprep.mubr.bf16.mxu0 %v9518_v6  ;;  %2558 = vmatprep.mubr.bf16.mxu1 %v9518_v6  ;;  %v8773_v50 = vld [vmem:[#allocation2 + $0x18] sm:$0xfe]  }
  0xd3   : > { %v563_v1 = vor.u32 %v561_v52, %v560_v60  ;;  %v565_v2 = vrot.slane %v560_v60, 4  ;;  %v8761_v11 = vld [vmem:[#allocation2 + $0xbc] ss:$0 sps:$4 sm:$0x11]   ;;  %v1278_v20 = vrot.slane %v1276_v15, 1  ;;  %v1546_v52 = vsel %vm1543_vm9, %v1544_v42, %v1545_v44 }
  0xd4   : > { %v1281_v21 = vshll.u32 %v8761_v11, 16  ;;  %v8780_v60 = vld [vmem:[#allocation2 + $0x2c] ss:$0 sps:$4 sm:$0x11]   ;;  %v8778_v13 = vld [vmem:[#allocation7 + $0x180] sm:$0xff]   ;;  %v1556_v15 = vrot.slane %v8781_v7, 1 }
  0xd5   : > { %v564_v3 = vsel %vm9340_vm4, %v556_v59, %v563_v1  ;;  %v730_v4 = vsel %vm9352_vm8, %v565_v2, %v729_v57  ;;  %v1550_v57 = vrot.slane %v8773_v50, 1  ;;  %v8779_v59 = vld [vmem:[#allocation2 + $0x24] sm:$0xfe]   ;;  %v8786_v11 = vld [vmem:[#allocation2 + $0x44] ss:$0 sps:$4 sm:$0x11]  }
  0xd6   : > { %728 = vst [vmem:[#allocation2 + $0xc4] sm:$0xf] %v564_v3  ;;  %731 = vst [vmem:[#allocation2 + $0xc8] sm:$0x1] %v730_v4  ;;  %v1283_v25 = vrot.slane %v1281_v21, 1  ;;  %v1553_v1 = vrot.slane %v8779_v59, 1 }
  0xd7   : > { %v8804_v2 = vld [vmem:[#allocation7 + $0x208] sm:$0xff]   ;;  %v9570_v3 = vsel %vm1543_vm9, %v1550_v57, %v1551_v62  ;;  %v1554_v4 = vrot.slane %v8780_v60, 1  ;;  %v1559_v21 = vrot.slane %v8785_v10, 1  ;;  %v8819_v42 = vld [vmem:[#allocation7 + $0x220] sm:$0xff]   ;;  %v8797_v50 = vld [vmem:[#allocation2 + $0x6c] sm:$0xfe]  }
  0xd8   : > { %v8793_v44 = vld [vmem:[#allocation2 + $0x60] sm:$0xfe]   ;;  %v8799_v57 = vld [vmem:[#allocation2 + $0x78] sm:$0xfe]   ;;  %v1571_v62 = vrot.slane %v8797_v50, 1 }
  0xd9   : > { %2085 = vmatmul.mubr.bf16.gmra.mrb[40].mxu0 %v8745_v24  ;;  %2559 = vmatmul.mubr.bf16.gmra.mrb[44].mxu1 %v8745_v24  ;;  %v1279_v24 = vor.u32 %v1278_v20, %v1274_v19  ;;  %v9575_v14 = vsel %vm1543_vm9, %v1553_v1, %v1554_v4  ;;  %v8783_v19 = vld [vmem:[#allocation7 + $0x1c8] sm:$0xff]   ;;  %v1568_v60 = vrot.slane %v8793_v44, 1  ;;  %v8802_v1 = vld [vmem:[#allocation7 + $0x1a0] sm:$0xff]   ;;  %v8806_v7 = vld [vmem:[#allocation2 + $0x8c] ss:$0 sps:$4 sm:$0x11]  }
  0xda   : > { %2092 = vmatprep.mubr.bf16.mxu0 %v9534_v41  ;;  %2566 = vmatprep.mubr.bf16.mxu1 %v9534_v41  ;;  %v8784_v20 = vld [vmem:[#allocation7 + $0x188] sm:$0xff]   ;;  %v1574_v10 = vrot.slane %v8799_v57, 1 }
  0xdb   : > { %v9559_v32 = vsel %vm1092_vm7, %v1279_v24, %v1283_v25  ;;  %v1560_v24 = vrot.slane %v8786_v11, 1  ;;  %v8800_v59 = vld [vmem:[#allocation2 + $0x80] ss:$0 sps:$4 sm:$0x11]   ;;  %v8805_v4 = vld [vmem:[#allocation2 + $0x84] sm:$0xfe]  }
  0xdc   : > { %v8807_v11 = vld [vmem:[#allocation2 + $0x90] sm:$0xfe]  }
  0xdd   : > { %v8766_v22 = vld [vmem:[#allocation2 + $0xc0] sm:$0xff]   ;;  %v8767_v23 = vld [vmem:[#allocation2 + $0xc8] ss:$0 sps:$4 sm:$0x11]  }
  0xde   : > { %v1288_v26 = vshll.u32 %v8766_v22, 16  ;;  %v1286_v43 = vshrl.u32 %v8766_v22, 16  ;;  %v1293_v36 = vshll.u32 %v8767_v23, 16  ;;  %v8768_v61 = vld [vmem:[#allocation2 + $0xc0] sm:$0xff]   ;;  %v8787_v22 = vld [vmem:[#allocation2 + $0x48] sm:$0xfe]  }
  0xdf   : > { %v8812_v23 = vld [vmem:[#allocation7 + $0x218] sm:$0xff]  }
  0xe0   : > { %v1290_v34 = vrot.slane %v1288_v26, 1  ;;  %v1295_v39 = vrot.slane %v1293_v36, 1  ;;  %v8791_v26 = vld [vmem:[#allocation2 + $0x54] sm:$0xfe]   ;;  %v1562_v36 = vrot.slane %v8787_v22, 1  ;;  %v8810_v22 = vld [vmem:[#allocation7 + $0x1a8] sm:$0xff]  }
  0xe1   : > { %2093 = vmatmul.mubr.bf16.gmra.mrb[44].mxu0 %v8750_v63  ;;  %2567 = vmatmul.mubr.bf16.gmra.mrb[48].mxu1 %v8750_v63  ;;  %v1549_v63 = vsel %vm1543_vm9, %v1547_v55, %v1548_v56  ;;  %v8801_v55 = vld [vmem:[#allocation7 + $0x1e0] sm:$0xff]  }
  0xe2   : > { %2100 = vmatprep.mubr.bf16.mxu0 %v9549_v5  ;;  %2574 = vmatprep.mubr.bf16.mxu1 %v9549_v5  ;;  %v1291_v37 = vor.u32 %v1290_v34, %v1286_v43  ;;  %v8795_v43 = vld [vmem:[#allocation7 + $0x1d8] sm:$0xff]   ;;  %v9585_v34 = vsel %vm1543_vm9, %v1559_v21, %v1560_v24  ;;  %v8822_v24 = vld [vmem:[#allocation2 + $0xbc] ss:$0 sps:$4 sm:$0x11]  }
  0xe4   : > { %v9564_v49 = vsel %vm1092_vm7, %v1291_v37, %v1295_v39  ;;  %v1565_v39 = vrot.slane %v8791_v26, 1  ;;  %v8821_v26 = vld [vmem:[#allocation2 + $0xb4] sm:$0xfe]  }
  0xe5   : > { %v1589_v50 = vrot.slane %v8821_v26, 1 }
  0xe9   : > { %2101 = vmatmul.mubr.bf16.gmra.mrb[48].mxu0 %v8753_v17  ;;  %2575 = vmatmul.mubr.bf16.gmra.mrb[52].mxu1 %v8753_v17  ;;  %v1557_v17 = vrot.slane %v8782_v8, 1  ;;  %v8809_v8 = vld [vmem:[#allocation7 + $0x1e8] sm:$0xff]  }
  0xea   : > { %2108 = vmatprep.mubr.bf16.mxu0 %v9554_v18  ;;  %2582 = vmatprep.mubr.bf16.mxu1 %v9554_v18 }
  0xeb   : > { %v9581_v25 = vsel %vm1543_vm9, %v1556_v15, %v1557_v17  ;;  %v8813_v15 = vld [vmem:[#allocation2 + $0x9c] sm:$0xfe]   ;;  %v8814_v17 = vld [vmem:[#allocation2 + $0xa4] ss:$0 sps:$4 sm:$0x11]  }
  0xf1   : > { %2109 = vmatmul.mubr.bf16.gmra.mrb[52].mxu0 %v8758_v27  ;;  %2583 = vmatmul.mubr.bf16.gmra.mrb[56].mxu1 %v8758_v27  ;;  %v8792_v27 = vld [vmem:[#allocation2 + $0x5c] ss:$0 sps:$4 sm:$0x11]  }
  0xf2   : > { %2116 = vmatprep.mubr.bf16.mxu0 %v9559_v32  ;;  %2590 = vmatprep.mubr.bf16.mxu1 %v9559_v32  ;;  %v1566_v47 = vrot.slane %v8792_v27, 1  ;;  %v8828_v27 = vld [vmem:[#allocation7 + $0x238] sm:$0xff]  }
  0xf9   : > { %2117 = vmatmul.mubr.bf16.gmra.mrb[56].mxu0 %v8762_v45  ;;  %2591 = vmatmul.mubr.bf16.gmra.mrb[60].mxu1 %v8762_v45  ;;  %v8794_v45 = vld [vmem:[#allocation2 + $0x68] ss:$0 sps:$4 sm:$0x11]  }
  0xfa   : > { %2124 = vmatprep.mubr.bf16.mxu0 %v9564_v49  ;;  %8066 = vmatprep.mubr.bf16.mxu1 %v1546_v52  ;;  %v8798_v52 = vld [vmem:[#allocation2 + $0x74] ss:$0 sps:$4 sm:$0x11]  }
 0x101   : > { %2125 = vmatmul.mubr.bf16.gmra.mrb[60].mxu0 %v8768_v61  ;;  %8067 = vmatmul.mubr.bf16.vlgmr.msra.gmra.mrb[64].mxu1 %v1549_v63  ;;  %v1569_v61 = vrot.slane %v8794_v45, 1 }
 0x102   : > { %8018 = vmatprep.mubr.bf16.mxu0 %v1549_v63  ;;  %8070 = vmatprep.mubr.bf16.mxu1 %v9570_v3  ;;  %v1572_v63 = vrot.slane %v8798_v52, 1  ;;  %v1590_v52 = vrot.slane %v8822_v24, 1 }
 0x103   : > { %8099 = vmatpush3.bf16.msra.mxu1 %v9537_v54  ;;  %v8788_v54 = vld [vmem:[#allocation2 + $0x50] ss:$0 sps:$4 sm:$0x11]   ;;  %v9599_v21 = vsel %vm1543_vm9, %v1568_v60, %v1569_v61 }
 0x104   : > { %8100 = vmatprep.subr.bf16.mxu1 %v8804_v2  ;;  %v1563_v37 = vrot.slane %v8788_v54, 1  ;;  %v8817_v54 = vld [vmem:[#allocation7 + $0x1f0] sm:$0xff]   ;;  %v9605_v44 = vsel %vm1543_vm9, %v1571_v62, %v1572_v63  ;;  %v8823_v62 = vld [vmem:[#allocation2 + $0xc0] sm:$0xfe]  }
 0x105   : > { %v8824_v63 = vld [vmem:[#allocation2 + $0xc8] ss:$0 sps:$4 sm:$0x11]  }
 0x106   : > { %v9591_v56 = vsel %vm1543_vm9, %v1562_v36, %v1563_v37  ;;  %v1583_v37 = vrot.slane %v8813_v15, 1 }
 0x107   : > { %8101 = vmatpush3.bf16.msra.mxu1 %v8804_v2  ;;  %v9595_v2 = vsel %vm1543_vm9, %v1565_v39, %v1566_v47  ;;  %v1584_v39 = vrot.slane %v8814_v17, 1 }
 0x108   : > { %8102 = vmatprep.subr.bf16.mxu1 %v8811_v9 }
 0x109   : > { %8019 = vmatmul.mubr.bf16.vlgmr.msra.gmra.mrb[64].mxu0 %v9570_v3  ;;  %8071 = vmatmul.mubr.bf16.gmra.mrb[68].mxu1 %v9575_v14  ;;  %v9614_v60 = vsel %vm1543_vm9, %v1583_v37, %v1584_v39 }
 0x10a   : > { %7459 = vmatpush3.bf16.msra.mxu0 %v8778_v13  ;;  %8022 = vmatprep.mubr.bf16.mxu0 %v9575_v14  ;;  %v8808_v13 = vld [vmem:[#allocation2 + $0x98] ss:$0 sps:$4 sm:$0x11]  }
 0x10b   : > { %7460 = vmatprep.subr.bf16.mxu0 %v8783_v19  ;;  %8074 = vmatprep.mubr.bf16.mxu1 %v9581_v25  ;;  %v1575_v19 = vrot.slane %v8800_v59, 1  ;;  %v1581_v36 = vrot.slane %v8808_v13, 1 }
 0x10c   : > { %8103 = vmatpush3.bf16.msra.mxu1 %v8811_v9  ;;  %v8827_v9 = vld [vmem:[#allocation7 + $0x230] sm:$0xff]  }
 0x10d   : > { %8104 = vmatprep.subr.bf16.mxu1 %v8812_v23 }
 0x10e   : > { %7461 = vmatpush3.bf16.msra.mxu0 %v8784_v20  ;;  %v8816_v20 = vld [vmem:[#allocation2 + $0xb0] ss:$0 sps:$4 sm:$0x11]  }
 0x10f   : > { %7462 = vmatprep.subr.bf16.mxu0 %v8789_v30  ;;  %v1577_v30 = vrot.slane %v8805_v4, 1  ;;  %v1587_v47 = vrot.slane %v8816_v20, 1  ;;  %v1592_v4 = vrot.slane %v8823_v62, 1 }
 0x110   : > { %8105 = vmatpush3.bf16.msra.mxu1 %v8812_v23  ;;  %v8815_v23 = vld [vmem:[#allocation2 + $0xa8] sm:$0xfe]  }
 0x111   : > { %8023 = vmatmul.mubr.bf16.gmra.mrb[68].mxu0 %v9581_v25  ;;  %8075 = vmatmul.mubr.bf16.gmra.mrb[72].mxu1 %v9585_v34  ;;  %v1586_v45 = vrot.slane %v8815_v23, 1 }
 0x112   : > { %8026 = vmatprep.mubr.bf16.mxu0 %v9585_v34  ;;  %7463 = vmatpush3.bf16.msra.mxu0 %v8790_v31  ;;  %v1578_v31 = vrot.slane %v8806_v7, 1  ;;  %v1593_v7 = vrot.slane %v8824_v63, 1 }
 0x113   : > { %8078 = vmatprep.mubr.bf16.mxu1 %v9591_v56  ;;  %7464 = vmatprep.subr.bf16.mxu0 %v8795_v43  ;;  %v1580_v43 = vrot.slane %v8807_v11, 1  ;;  %v9617_v61 = vsel %vm1543_vm9, %v1586_v45, %v1587_v47  ;;  %v9000_v47 = vld [vmem:[#allocation2 + $0x48] sm:$0xff]  }
 0x114   : > { %8106 = vmatprep.subr.bf16.mxu1 %v8819_v42  ;;  %v1579_v57 = vsel %vm1543_vm9, %v1577_v30, %v1578_v31 }
 0x115   : > { %8107 = vmatpush3.bf16.msra.mxu1 %v8819_v42  ;;  %v8818_v42 = vld [vmem:[#allocation7 + $0x1b0] sm:$0xff]   ;;  %v1582_v59 = vsel %vm1543_vm9, %v1580_v43, %v1581_v36 }
 0x116   : > { %7465 = vmatpush3.bf16.msra.mxu0 %v8796_v48  ;;  %8108 = vmatprep.subr.bf16.mxu1 %v8820_v53  ;;  %v8825_v48 = vld [vmem:[#allocation7 + $0x1f8] sm:$0xff]  }
 0x117   : > { %7466 = vmatprep.subr.bf16.mxu0 %v8801_v55  ;;  %v8826_v55 = vld [vmem:[#allocation7 + $0x1b8] sm:$0xff]  }
 0x119   : > { %8027 = vmatmul.mubr.bf16.gmra.mrb[72].mxu0 %v9591_v56  ;;  %8079 = vmatmul.mubr.bf16.gmra.mrb[76].mxu1 %v9595_v2 }
 0x11a   : > { %8030 = vmatprep.mubr.bf16.mxu0 %v9595_v2  ;;  %8082 = vmatprep.mubr.bf16.mxu1 %v9599_v21 }
 0x11b   : > { %7467 = vmatpush3.bf16.msra.mxu0 %v8802_v1  ;;  %8109 = vmatpush3.bf16.msra.mxu1 %v8820_v53  ;;  %v1576_v53 = vsel %vm1543_vm9, %v1574_v10, %v1575_v19  ;;  %v9623_v1 = vsel %vm1543_vm9, %v1589_v50, %v1590_v52  ;;  %v8997_v10 = vld [vmem:[#allocation2 + $0x24] sm:$0xff]   ;;  %v8829_v52 = vld [vmem:[#allocation2 + $0xcc] sm:$0xfe]  }
 0x11c   : > { %7468 = vmatprep.subr.bf16.mxu0 %v8809_v8  ;;  %8110 = vmatprep.subr.bf16.mxu1 %v8827_v9  ;;  %v9630_v8 = vsel %vm1543_vm9, %v1592_v4, %v1593_v7 }
 0x11f   : > { %7469 = vmatpush3.bf16.msra.mxu0 %v8810_v22  ;;  %8111 = vmatpush3.bf16.msra.mxu1 %v8827_v9  ;;  %v8996_v9 = vld [vmem:[#allocation2 + $0x18] sm:$0xff]  }
 0x120   : > { %7470 = vmatprep.subr.bf16.mxu0 %v8817_v54  ;;  %8112 = vmatprep.subr.bf16.mxu1 %v8828_v27  ;;  %v8999_v54 = vld [vmem:[#allocation2 + $0x3c] sm:$0xff]  }
 0x121   : > { %8031 = vmatmul.mubr.bf16.gmra.mrb[76].mxu0 %v9599_v21  ;;  %8083 = vmatmul.mubr.bf16.gmra.mrb[80].mxu1 %v9605_v44 }
 0x122   : > { %8034 = vmatprep.mubr.bf16.mxu0 %v9605_v44  ;;  %8086 = vmatprep.mubr.bf16.mxu1 %v1576_v53 }
 0x123   : > { %7471 = vmatpush3.bf16.msra.mxu0 %v8818_v42  ;;  %8113 = vmatpush3.bf16.msra.mxu1 %v8828_v27 }
 0x124   : > { %7472 = vmatprep.subr.bf16.mxu0 %v8825_v48 }
 0x127   : > { %7473 = vmatpush3.bf16.msra.mxu0 %v8826_v55 }
 0x129   : > { %8035 = vmatmul.mubr.bf16.gmra.mrb[80].mxu0 %v1576_v53  ;;  %8087 = vmatmul.mubr.bf16.gmra.mrb[84].mxu1 %v1579_v57 }
 0x12a   : > { %8038 = vmatprep.mubr.bf16.mxu0 %v1579_v57  ;;  %8090 = vmatprep.mubr.bf16.mxu1 %v1582_v59 }
 0x131   : > { %8039 = vmatmul.mubr.bf16.gmra.mrb[84].mxu0 %v1582_v59  ;;  %8091 = vmatmul.mubr.bf16.gmra.mrb[88].mxu1 %v9614_v60 }
 0x132   : > { %8042 = vmatprep.mubr.bf16.mxu0 %v9614_v60  ;;  %8094 = vmatprep.mubr.bf16.mxu1 %v9617_v61 }
 0x139   : > { %8043 = vmatmul.mubr.bf16.gmra.mrb[88].mxu0 %v9617_v61  ;;  %8095 = vmatmul.mubr.bf16.gmra.mrb[92].mxu1 %v9623_v1 }
 0x13a   : > { %8046 = vmatprep.mubr.bf16.mxu0 %v9623_v1  ;;  %8114 = vmatprep.mubr.bf16.mxu1 %v9570_v3 }
 0x141   : > { %8047 = vmatmul.mubr.bf16.gmra.mrb[92].mxu0 %v9630_v8  ;;  %8115 = vmatmul.mubr.bf16.vlgmr.msra.gmra.mrb[64].mxu1 %v9575_v14 }
 0x142   : > { %3034 = vmatprep.mubr.bf16.mxu0 %v9395_v33  ;;  %8118 = vmatprep.mubr.bf16.mxu1 %v9581_v25 }
 0x149   : > { %3035 = vmatmul.mubr.bf16.vlgmr.msra.gmra.mrb[96].mxu0 %v8996_v9  ;;  %8119 = vmatmul.mubr.bf16.gmra.mrb[68].mxu1 %v9585_v34  ;;  %v8998_v34 = vld [vmem:[#allocation2 + $0x30] sm:$0xff]  }
 0x14a   : > { %3042 = vmatprep.mubr.bf16.mxu0 %v9406_v51  ;;  %8122 = vmatprep.mubr.bf16.mxu1 %v9591_v56 }
 0x151   : > { %3043 = vmatmul.mubr.bf16.gmra.mrb[100].mxu0 %v8997_v10  ;;  %8123 = vmatmul.mubr.bf16.gmra.mrb[72].mxu1 %v9595_v2 }
 0x152   : > { %v7338_v3 = vpop.f32.mrb[0].mxu1  ;;  %3050 = vmatprep.mubr.bf16.mxu0 %v9415_v16  ;;  %8126 = vmatprep.mubr.bf16.mxu1 %v9599_v21 }
 0x153   : > { %v7339_v11 = vpop.f32.mrb[1].mxu1 }
 0x154   : > { %v9642_v33 = vadd.f32 %v7339_v11, %v7338_v3  ;;  %v7341_v14 = vpop.f32.mrb[2].mxu1 }
 0x155   : > { %v7342_v25 = vpop.f32.mrb[3].mxu1 }
 0x156   : > { %v9644_v13 = vadd.f32 %v7342_v25, %v7341_v14 }
 0x159   : > { %3051 = vmatmul.mubr.bf16.gmra.mrb[104].mxu0 %v8998_v34  ;;  %8127 = vmatmul.mubr.bf16.gmra.mrb[76].mxu1 %v9605_v44 }
 0x15a   : > { %3058 = vmatprep.mubr.bf16.mxu0 %v9433_v58  ;;  %8130 = vmatprep.mubr.bf16.mxu1 %v1576_v53 }
 0x15c   : > { %v7202_v51 = vpop.f32.mrb[0].mxu0  ;;  %v7344_v56 = vpop.f32.mrb[4].mxu1 }
 0x15d   : > { %v7203_v2 = vpop.f32.mrb[1].mxu0  ;;  %v7345_v15 = vpop.f32.mrb[5].mxu1 }
 0x15e   : > { %v7205_v16 = vpop.f32.mrb[2].mxu0  ;;  %v9648_v17 = vadd.f32 %v7345_v15, %v7344_v56  ;;  %v7347_v19 = vpop.f32.mrb[6].mxu1  ;;  %v9650_v20 = vadd.f32 %v7203_v2, %v7202_v51 }
 0x15f   : > { %v7206_v21 = vpop.f32.mrb[3].mxu0  ;;  %v7348_v22 = vpop.f32.mrb[7].mxu1 }
 0x160   : > { %v9652_v23 = vadd.f32 %v7348_v22, %v7347_v19  ;;  %v9654_v24 = vadd.f32 %v7206_v21, %v7205_v16 }
 0x161   : > { %3059 = vmatmul.mubr.bf16.gmra.mrb[108].mxu0 %v8999_v54  ;;  %8131 = vmatmul.mubr.bf16.gmra.mrb[80].mxu1 %v1579_v57  ;;  %v8830_v57 = vld [vmem:[#allocation2 + $0xd4] ss:$0 sps:$4 sm:$0x11]  }
 0x162   : > { %3066 = vmatprep.mubr.bf16.mxu0 %v9447_v28  ;;  %8134 = vmatprep.mubr.bf16.mxu1 %v1582_v59  ;;  %v1596_v3 = vrot.slane %v8830_v57, 1 }
 0x164   : > { %v7208_v58 = vpop.f32.mrb[4].mxu0  ;;  %v7350_v26 = vpop.f32.mrb[8].mxu1 }
 0x165   : > { %v7209_v27 = vpop.f32.mrb[5].mxu0  ;;  %v7351_v30 = vpop.f32.mrb[9].mxu1 }
 0x166   : > { %v7211_v31 = vpop.f32.mrb[6].mxu0  ;;  %v9657_v43 = vadd.f32 %v7351_v30, %v7350_v26  ;;  %v7353_v36 = vpop.f32.mrb[10].mxu1  ;;  %v9659_v37 = vadd.f32 %v7209_v27, %v7208_v58 }
 0x167   : > { %v7212_v39 = vpop.f32.mrb[7].mxu0  ;;  %v7354_v42 = vpop.f32.mrb[11].mxu1 }
 0x168   : > { %v9661_v44 = vadd.f32 %v7354_v42, %v7353_v36  ;;  %v9663_v45 = vadd.f32 %v7212_v39, %v7211_v31 }
 0x169   : > { %3067 = vmatmul.mubr.bf16.gmra.mrb[112].mxu0 %v9000_v47  ;;  %8135 = vmatmul.mubr.bf16.gmra.mrb[84].mxu1 %v9614_v60 }
 0x16a   : > { %3074 = vmatprep.mubr.bf16.mxu0 %v9460_v0  ;;  %8138 = vmatprep.mubr.bf16.mxu1 %v9617_v61  ;;  %v9001_v0 = vld [vmem:[#allocation2 + $0x54] sm:$0xff]   ;;  %v1595_v61 = vrot.slane %v8829_v52, 1 }
 0x16c   : > { %v7214_v28 = vpop.f32.mrb[8].mxu0  ;;  %v7356_v48 = vpop.f32.mrb[12].mxu1  ;;  %v1597_v51 = vsel %vm1543_vm9, %v1595_v61, %v1596_v3  ;;  %v9004_v3 = vld [vmem:[#allocation2 + $0x78] sm:$0xff]  }
 0x16d   : > { %v7215_v50 = vpop.f32.mrb[9].mxu0  ;;  %v7357_v53 = vpop.f32.mrb[13].mxu1 }
 0x16e   : > { %v7217_v55 = vpop.f32.mrb[10].mxu0  ;;  %v9668_v59 = vadd.f32 %v7357_v53, %v7356_v48  ;;  %v7359_v62 = vpop.f32.mrb[14].mxu1  ;;  %v9670_v63 = vadd.f32 %v7215_v50, %v7214_v28  ;;  %v9003_v28 = vld [vmem:[#allocation2 + $0x6c] sm:$0xff]  }
 0x16f   : > { %v7218_v4 = vpop.f32.mrb[11].mxu0  ;;  %v7360_v7 = vpop.f32.mrb[15].mxu1 }
 0x170   : > { %v9672_v9 = vadd.f32 %v7360_v7, %v7359_v62  ;;  %v9674_v60 = vadd.f32 %v7218_v4, %v7217_v55 }
 0x171   : > { %3075 = vmatmul.mubr.bf16.gmra.mrb[116].mxu0 %v9001_v0  ;;  %8139 = vmatmul.mubr.bf16.gmra.mrb[88].mxu1 %v9623_v1 }
 0x172   : > { %3082 = vmatprep.mubr.bf16.mxu0 %v9473_v29  ;;  %8142 = vmatprep.mubr.bf16.mxu1 %v9630_v8  ;;  %v9002_v8 = vld [vmem:[#allocation2 + $0x60] sm:$0xff]  }
 0x174   : > { %v7220_v10 = vpop.f32.mrb[12].mxu0  ;;  %v7362_v11 = vpop.f32.mrb[16].mxu1 }
 0x175   : > { %v7221_v14 = vpop.f32.mrb[13].mxu0  ;;  %v7363_v25 = vpop.f32.mrb[17].mxu1 }
 0x176   : > { %v7223_v34 = vpop.f32.mrb[14].mxu0  ;;  %v9680_v56 = vadd.f32 %v7363_v25, %v7362_v11  ;;  %v7365_v2 = vpop.f32.mrb[18].mxu1  ;;  %v9682_v15 = vadd.f32 %v7221_v14, %v7220_v10 }
 0x177   : > { %v7224_v16 = vpop.f32.mrb[15].mxu0  ;;  %v7366_v1 = vpop.f32.mrb[19].mxu1 }
 0x178   : > { %v9684_v19 = vadd.f32 %v7366_v1, %v7365_v2  ;;  %v9686_v29 = vadd.f32 %v7224_v16, %v7223_v34 }
 0x179   : > { %3083 = vmatmul.mubr.bf16.gmra.mrb[120].mxu0 %v9002_v8  ;;  %8143 = vmatmul.mubr.bf16.gmra.mrb[92].mxu1 %v1597_v51 }
 0x17a   : > { %3090 = vmatprep.mubr.bf16.mxu0 %v9490_v12 }
 0x17c   : > { %v7226_v21 = vpop.f32.mrb[16].mxu0  ;;  %v7368_v22 = vpop.f32.mrb[20].mxu1 }
 0x17d   : > { %v7227_v54 = vpop.f32.mrb[17].mxu0  ;;  %v7369_v58 = vpop.f32.mrb[21].mxu1 }
 0x17e   : > { %v7229_v26 = vpop.f32.mrb[18].mxu0  ;;  %v9689_v27 = vadd.f32 %v7369_v58, %v7368_v22  ;;  %v7371_v30 = vpop.f32.mrb[22].mxu1  ;;  %v9691_v31 = vadd.f32 %v7227_v54, %v7226_v21  ;;  %v9005_v22 = vld [vmem:[#allocation2 + $0x84] sm:$0xff]  }
 0x17f   : > { %v7230_v36 = vpop.f32.mrb[19].mxu0  ;;  %v7372_v39 = vpop.f32.mrb[23].mxu1 }
 0x180   : > { %v9693_v42 = vadd.f32 %v7372_v39, %v7371_v30  ;;  %v9695_v47 = vadd.f32 %v7230_v36, %v7229_v26 }
 0x181   : > { %3091 = vmatmul.mubr.bf16.gmra.mrb[124].mxu0 %v9003_v28 }
 0x182   : > { %3098 = vmatprep.mubr.bf16.mxu0 %v9505_v38 }
 0x184   : > { %v7232_v12 = vpop.f32.mrb[20].mxu0  ;;  %v7374_v48 = vpop.f32.mrb[24].mxu1 }
 0x185   : > { %v7233_v50 = vpop.f32.mrb[21].mxu0  ;;  %v7375_v52 = vpop.f32.mrb[25].mxu1 }
 0x186   : > { %v7235_v53 = vpop.f32.mrb[22].mxu0  ;;  %v9698_v55 = vadd.f32 %v7375_v52, %v7374_v48  ;;  %v7377_v57 = vpop.f32.mrb[26].mxu1  ;;  %v9700_v62 = vadd.f32 %v7233_v50, %v7232_v12 }
 0x187   : > { %v7236_v4 = vpop.f32.mrb[23].mxu0  ;;  %v7378_v7 = vpop.f32.mrb[27].mxu1 }
 0x188   : > { %v9702_v0 = vadd.f32 %v7378_v7, %v7377_v57  ;;  %v9704_v61 = vadd.f32 %v7236_v4, %v7235_v53  ;;  %v9006_v53 = vld [vmem:[#allocation2 + $0x90] sm:$0xff]  }
 0x189   : > { %3099 = vmatmul.mubr.bf16.gmra.mrb[128].mxu0 %v9004_v3 }
 0x18a   : > { %3106 = vmatprep.mubr.bf16.mxu0 %v9518_v6 }
 0x18c   : > { %v7238_v38 = vpop.f32.mrb[24].mxu0  ;;  %v7380_v10 = vpop.f32.mrb[28].mxu1 }
 0x18d   : > { %v7239_v11 = vpop.f32.mrb[25].mxu0  ;;  %v7381_v14 = vpop.f32.mrb[29].mxu1 }
 0x18e   : > { %v7241_v25 = vpop.f32.mrb[26].mxu0  ;;  %v9707_v34 = vadd.f32 %v7381_v14, %v7380_v10  ;;  %v7383_v51 = vpop.f32.mrb[30].mxu1  ;;  %v9709_v2 = vadd.f32 %v7239_v11, %v7238_v38 }
 0x18f   : > { %v7242_v16 = vpop.f32.mrb[27].mxu0  ;;  %v7384_v1 = vpop.f32.mrb[31].mxu1 }
 0x190   : > { %v9711_v8 = vadd.f32 %v7384_v1, %v7383_v51  ;;  %v9713_v21 = vadd.f32 %v7242_v16, %v7241_v25  ;;  %v9007_v1 = vld [vmem:[#allocation2 + $0x9c] sm:$0xff]  }
 0x191   : > { %3107 = vmatmul.mubr.bf16.gmra.mrb[132].mxu0 %v9005_v22  ;;  %v8835_v22 = vld [vmem:[#allocation7 + $0x300] sm:$0xff]  }
 0x192   : > { %3114 = vmatprep.mubr.bf16.mxu0 %v9534_v41 }
 0x194   : > { %v7244_v6 = vpop.f32.mrb[28].mxu0  ;;  %v7386_v54 = vpop.f32.mrb[32].mxu1 }
 0x195   : > { %v7245_v58 = vpop.f32.mrb[29].mxu0  ;;  %v7387_v26 = vpop.f32.mrb[33].mxu1 }
 0x196   : > { %v7247_v30 = vpop.f32.mrb[30].mxu0  ;;  %v9716_v36 = vadd.f32 %v7387_v26, %v7386_v54  ;;  %v7389_v39 = vpop.f32.mrb[34].mxu1  ;;  %v9718_v28 = vadd.f32 %v7245_v58, %v7244_v6 }
 0x197   : > { %v7248_v12 = vpop.f32.mrb[31].mxu0  ;;  %v7390_v48 = vpop.f32.mrb[35].mxu1 }
 0x198   : > { %v9720_v50 = vadd.f32 %v7390_v48, %v7389_v39  ;;  %v9722_v52 = vadd.f32 %v7248_v12, %v7247_v30 }
 0x199   : > { %3115 = vmatmul.mubr.bf16.gmra.mrb[136].mxu0 %v9006_v53  ;;  %v8836_v53 = vld [vmem:[#allocation7 + $0x380] sm:$0xff]  }
 0x19a   : > { %3122 = vmatprep.mubr.bf16.mxu0 %v9549_v5  ;;  %v8834_v5 = vld [vmem:[#allocation7 + $0x340] sm:$0xff]   ;;  %8146 = vmatprep.subr.bf16.mxu1 %v8836_v53 }
 0x19b   : > { %7594 = vmatprep.subr.bf16.mxu0 %v8834_v5  ;;  %8147 = vmatpush3.bf16.msra.mxu1 %v8836_v53 }
 0x19c   : > { %v7250_v41 = vpop.f32.mrb[32].mxu0  ;;  %v7392_v57 = vpop.f32.mrb[36].mxu1  ;;  %7595 = vmatpush3.bf16.msra.mxu0 %v8835_v22  ;;  %v8840_v22 = vld [vmem:[#allocation7 + $0x350] sm:$0xff]  }
 0x19d   : > { %v7251_v4 = vpop.f32.mrb[33].mxu0  ;;  %v7393_v7 = vpop.f32.mrb[37].mxu1 }
 0x19e   : > { %v9725_v3 = vadd.f32 %v7251_v4, %v7250_v41  ;;  %v7253_v38 = vpop.f32.mrb[34].mxu0  ;;  %v9727_v10 = vadd.f32 %v7393_v7, %v7392_v57  ;;  %v7395_v11 = vpop.f32.mrb[38].mxu1  ;;  %v8831_v57 = vld [vmem:[#allocation2 + $0xcc] sm:$0xff]   ;;  %v8837_v7 = vld [vmem:[#allocation7 + $0x348] sm:$0xff]  }
 0x19f   : > { %v7254_v14 = vpop.f32.mrb[35].mxu0  ;;  %v7396_v25 = vpop.f32.mrb[39].mxu1  ;;  %7596 = vmatprep.subr.bf16.mxu0 %v8837_v7  ;;  %v1300_v5 = vshll.u32 %v8831_v57, 16  ;;  %v1298_v53 = vshrl.u32 %v8831_v57, 16  ;;  %v8845_v57 = vld [vmem:[#allocation7 + $0x398] sm:$0xff]  }
 0x1a0   : > { %v9729_v51 = vadd.f32 %v7254_v14, %v7253_v38  ;;  %v9731_v16 = vadd.f32 %v7396_v25, %v7395_v11  ;;  %v8838_v11 = vld [vmem:[#allocation7 + $0x308] sm:$0xff]   ;;  %v9008_v14 = vld [vmem:[#allocation2 + $0xa8] sm:$0xff]  }
 0x1a1   : > { %3123 = vmatmul.mubr.bf16.gmra.mrb[140].mxu0 %v9007_v1  ;;  %v8839_v25 = vld [vmem:[#allocation7 + $0x388] sm:$0xff]   ;;  %v8832_v1 = vld [vmem:[#allocation2 + $0xd4] ss:$0 sps:$4 sm:$0x11]  }
 0x1a2   : > { %3130 = vmatprep.mubr.bf16.mxu0 %v9554_v18  ;;  %7597 = vmatpush3.bf16.msra.mxu0 %v8838_v11  ;;  %v1305_v46 = vshll.u32 %v8832_v1, 16 }
 0x1a3   : > { %8148 = vmatprep.subr.bf16.mxu1 %v8839_v25  ;;  %7598 = vmatprep.subr.bf16.mxu0 %v8840_v22  ;;  %v9009_v22 = vld [vmem:[#allocation2 + $0xb4] sm:$0xff]  }
 0x1a4   : > { %v7256_v6 = vpop.f32.mrb[36].mxu0  ;;  %v7398_v54 = vpop.f32.mrb[40].mxu1  ;;  %8149 = vmatpush3.bf16.msra.mxu1 %v8839_v25 }
 0x1a5   : > { %v7257_v58 = vpop.f32.mrb[37].mxu0  ;;  %v7399_v26 = vpop.f32.mrb[41].mxu1  ;;  %8150 = vmatprep.subr.bf16.mxu1 %v8842_v35 }
 0x1a6   : > { %v9734_v30 = vadd.f32 %v7257_v58, %v7256_v6  ;;  %v7259_v39 = vpop.f32.mrb[38].mxu0  ;;  %v9736_v12 = vadd.f32 %v7399_v26, %v7398_v54  ;;  %v7401_v48 = vpop.f32.mrb[42].mxu1  ;;  %v8841_v58 = vld [vmem:[#allocation7 + $0x310] sm:$0xff]  }
 0x1a7   : > { %v7260_v41 = vpop.f32.mrb[39].mxu0  ;;  %v7402_v4 = vpop.f32.mrb[43].mxu1  ;;  %7599 = vmatpush3.bf16.msra.mxu0 %v8841_v58  ;;  %v8846_v58 = vld [vmem:[#allocation7 + $0x360] sm:$0xff]  }
 0x1a8   : > { %10905 = vst [vmem:[#allocation16_spill] sm:$0xff] %v9736_v12  ;;  %v9738_v18 = vadd.f32 %v7260_v41, %v7259_v39  ;;  %v9740_v38 = vadd.f32 %v7402_v4, %v7401_v48  ;;  %v8843_v12 = vld [vmem:[#allocation7 + $0x358] sm:$0xff]   ;;  %8151 = vmatpush3.bf16.msra.mxu1 %v8842_v35 }
 0x1a9   : > { %3131 = vmatmul.mubr.bf16.gmra.mrb[144].mxu0 %v9008_v14  ;;  %v1302_v14 = vrot.slane %v1300_v5, 1  ;;  %7600 = vmatprep.subr.bf16.mxu0 %v8843_v12  ;;  %v8848_v12 = vld [vmem:[#allocation7 + $0x3a0] sm:$0xff]  }
 0x1aa   : > { %10906 = vst [vmem:[#allocation17_spill] sm:$0xff] %v9740_v38  ;;  %3138 = vmatprep.mubr.bf16.mxu0 %v9559_v32  ;;  %8152 = vmatprep.subr.bf16.mxu1 %v8845_v57 }
 0x1ab   : > { %v1303_v25 = vor.u32 %v1302_v14, %v1298_v53 }
 0x1ac   : > { %v7262_v6 = vpop.f32.mrb[40].mxu0  ;;  %v7404_v54 = vpop.f32.mrb[44].mxu1  ;;  %8153 = vmatpush3.bf16.msra.mxu1 %v8845_v57 }
 0x1ad   : > { %v7263_v26 = vpop.f32.mrb[41].mxu0  ;;  %v7405_v39 = vpop.f32.mrb[45].mxu1  ;;  %8154 = vmatprep.subr.bf16.mxu1 %v8848_v12 }
 0x1ae   : > { %v9743_v48 = vadd.f32 %v7263_v26, %v7262_v6  ;;  %v7265_v41 = vpop.f32.mrb[42].mxu0  ;;  %v9745_v4 = vadd.f32 %v7405_v39, %v7404_v54  ;;  %v7407_v7 = vpop.f32.mrb[46].mxu1  ;;  %v8844_v6 = vld [vmem:[#allocation7 + $0x318] sm:$0xff]   ;;  %v1307_v54 = vrot.slane %v1305_v46, 1 }
 0x1af   : > { %v7266_v32 = vpop.f32.mrb[43].mxu0  ;;  %v7408_v11 = vpop.f32.mrb[47].mxu1  ;;  %7601 = vmatpush3.bf16.msra.mxu0 %v8844_v6  ;;  %v8849_v6 = vld [vmem:[#allocation7 + $0x368] sm:$0xff]  }
 0x1b0   : > { %v9747_v40 = vadd.f32 %v7266_v32, %v7265_v41  ;;  %v9749_v38 = vadd.f32 %v7408_v11, %v7407_v7  ;;  %v8847_v41 = vld [vmem:[#allocation7 + $0x320] sm:$0xff]   ;;  %7602 = vmatprep.subr.bf16.mxu0 %v8846_v58  ;;  %v1308_v46 = vsel %vm1092_vm7, %v1303_v25, %v1307_v54  ;;  %8155 = vmatpush3.bf16.msra.mxu1 %v8848_v12  ;;  %v8852_v54 = vld [vmem:[#allocation7 + $0x370] sm:$0xff]  }
 0x1b1   : > { %3139 = vmatmul.mubr.bf16.gmra.mrb[148].mxu0 %v9009_v22  ;;  %v8854_v12 = vld [vmem:[#allocation7 + $0x3b0] sm:$0xff]  }
 0x1b2   : > { %10907 = vst [vmem:[#allocation18_spill] sm:$0xff] %v9749_v38  ;;  %3146 = vmatprep.mubr.bf16.mxu0 %v9564_v49  ;;  %v9010_v38 = vld [vmem:[#allocation2 + $0xc0] sm:$0xff]  }
 0x1b3   : > { %7603 = vmatpush3.bf16.msra.mxu0 %v8847_v41  ;;  %v8853_v41 = vld [vmem:[#allocation7 + $0x330] sm:$0xff]  }
 0x1b4   : > { %v7268_v1 = vpop.f32.mrb[44].mxu0  ;;  %v7410_v5 = vpop.f32.mrb[48].mxu1  ;;  %7604 = vmatprep.subr.bf16.mxu0 %v8849_v6 }
 0x1b5   : > { %v7269_v26 = vpop.f32.mrb[45].mxu0  ;;  %v7411_v39 = vpop.f32.mrb[49].mxu1 }
 0x1b6   : > { %v9752_v7 = vadd.f32 %v7269_v26, %v7268_v1  ;;  %v7271_v32 = vpop.f32.mrb[46].mxu0  ;;  %v9754_v11 = vadd.f32 %v7411_v39, %v7410_v5  ;;  %v7413_v22 = vpop.f32.mrb[50].mxu1  ;;  %v8850_v1 = vld [vmem:[#allocation7 + $0x328] sm:$0xff]   ;;  %v8833_v26 = vld [vmem:[#allocation2 + $0xcc] sm:$0xff]  }
 0x1b7   : > { %v7272_v49 = vpop.f32.mrb[47].mxu0  ;;  %v7414_v35 = vpop.f32.mrb[51].mxu1  ;;  %7605 = vmatpush3.bf16.msra.mxu0 %v8850_v1  ;;  %v8851_v5 = vld [vmem:[#allocation7 + $0x3a8] sm:$0xff]  }
 0x1b8   : > { %10908 = vst [vmem:[#allocation19_spill] sm:$0xff] %v9754_v11  ;;  %v9757_v53 = vadd.f32 %v7272_v49, %v7271_v32  ;;  %v9759_v14 = vadd.f32 %v7414_v35, %v7413_v22  ;;  %8156 = vmatprep.subr.bf16.mxu1 %v8851_v5  ;;  %7606 = vmatprep.subr.bf16.mxu0 %v8852_v54  ;;  %v8858_v11 = vld [vmem:[#allocation7 + $0x338] sm:$0xff]  }
 0x1b9   : > { %3147 = vmatmul.mubr.bf16.gmra.mrb[152].mxu0 %v9010_v38  ;;  %8157 = vmatpush3.bf16.msra.mxu1 %v8851_v5 }
 0x1ba   : > { %10909 = vst [vmem:[#allocation20_spill] sm:$0xff] %v9759_v14  ;;  %3154 = vmatprep.mubr.bf16.mxu0 %v1308_v46  ;;  %v8857_v14 = vld [vmem:[#allocation7 + $0x378] sm:$0xff]   ;;  %8158 = vmatprep.subr.bf16.mxu1 %v8854_v12 }
 0x1bb   : > { %7607 = vmatpush3.bf16.msra.mxu0 %v8853_v41 }
 0x1bc   : > { %v7274_v58 = vpop.f32.mrb[48].mxu0  ;;  %v7416_v25 = vpop.f32.mrb[52].mxu1  ;;  %7608 = vmatprep.subr.bf16.mxu0 %v8857_v14 }
 0x1bd   : > { %v7275_v57 = vpop.f32.mrb[49].mxu0  ;;  %v7417_v39 = vpop.f32.mrb[53].mxu1  ;;  %8159 = vmatpush3.bf16.msra.mxu1 %v8854_v12 }
 0x1be   : > { %v9761_v32 = vadd.f32 %v7275_v57, %v7274_v58  ;;  %v7277_v22 = vpop.f32.mrb[50].mxu0  ;;  %v9763_v49 = vadd.f32 %v7417_v39, %v7416_v25  ;;  %v7419_v38 = vpop.f32.mrb[54].mxu1 }
 0x1bf   : > { %v7278_v46 = vpop.f32.mrb[51].mxu0  ;;  %v7420_v35 = vpop.f32.mrb[55].mxu1  ;;  %7609 = vmatpush3.bf16.msra.mxu0 %v8858_v11 }
 0x1c0   : > { %10910 = vst [vmem:[#allocation21_spill] sm:$0xff] %v9761_v32  ;;  %10911 = vst [vmem:[#allocation22_spill] sm:$0xff] %v9763_v49  ;;  %v9765_v6 = vadd.f32 %v7278_v46, %v7277_v22  ;;  %v9767_v1 = vadd.f32 %v7420_v35, %v7419_v38 }
 0x1c1   : > { %3155 = vmatmul.mubr.bf16.gmra.mrb[156].mxu0 %v8833_v26 }
 0x1c2   : > { %10912 = vst [vmem:[#allocation23_spill] sm:$0xff] %v9765_v6  ;;  %10913 = vst [vmem:[#allocation24_spill] sm:$0xff] %v9767_v1  ;;  %v8861_v1 = vld [vmem:[#allocation7 + $0x3b8] sm:$0xff]  }
 0x1c3   : > { %8160 = vmatprep.subr.bf16.mxu1 %v8861_v1 }
 0x1c4   : > { %v7280_v58 = vpop.f32.mrb[52].mxu0  ;;  %v7422_v25 = vpop.f32.mrb[56].mxu1  ;;  %8161 = vmatpush3.bf16.msra.mxu1 %v8861_v1 }
 0x1c5   : > { %v7281_v57 = vpop.f32.mrb[53].mxu0  ;;  %v7423_v54 = vpop.f32.mrb[57].mxu1 }
 0x1c6   : > { %v9769_v39 = vadd.f32 %v7281_v57, %v7280_v58  ;;  %v7283_v5 = vpop.f32.mrb[54].mxu0  ;;  %v9771_v41 = vadd.f32 %v7423_v54, %v7422_v25  ;;  %v7425_v22 = vpop.f32.mrb[58].mxu1 }
 0x1c7   : > { %v7284_v46 = vpop.f32.mrb[55].mxu0  ;;  %v7426_v38 = vpop.f32.mrb[59].mxu1 }
 0x1c8   : > { %10914 = vst [vmem:[#allocation25_spill] sm:$0xff] %v9771_v41  ;;  %v9773_v35 = vadd.f32 %v7284_v46, %v7283_v5  ;;  %v9775_v26 = vadd.f32 %v7426_v38, %v7425_v22 }
 0x1ca   : > { %10915 = vst [vmem:[#allocation26_spill] sm:$0xff] %v9773_v35  ;;  %10916 = vst [vmem:[#allocation27_spill] sm:$0xff] %v9775_v26 }
 0x1cc   : > { %v7286_v14 = vpop.f32.mrb[56].mxu0  ;;  %v7428_v11 = vpop.f32.mrb[60].mxu1 }
 0x1cd   : > { %v7287_v12 = vpop.f32.mrb[57].mxu0  ;;  %v7429_v6 = vpop.f32.mrb[61].mxu1 }
 0x1ce   : > { %v9777_v49 = vadd.f32 %v7287_v12, %v7286_v14  ;;  %v7289_v58 = vpop.f32.mrb[58].mxu0  ;;  %v9779_v57 = vadd.f32 %v7429_v6, %v7428_v11  ;;  %v7431_v25 = vpop.f32.mrb[62].mxu1 }
 0x1cf   : > { %v7290_v54 = vpop.f32.mrb[59].mxu0  ;;  %v7432_v41 = vpop.f32.mrb[63].mxu1 }
 0x1d0   : > { %10917 = vst [vmem:[#allocation28_spill] sm:$0xff] %v9779_v57  ;;  %v9781_v32 = vadd.f32 %v7290_v54, %v7289_v58  ;;  %v9783_v5 = vadd.f32 %v7432_v41, %v7431_v25 }
 0x1d4   : > { %v7292_v22 = vpop.f32.mrb[60].mxu0 }
 0x1d5   : > { %v7293_v46 = vpop.f32.mrb[61].mxu0 }
 0x1d6   : > { %v9785_v38 = vadd.f32 %v7293_v46, %v7292_v22  ;;  %v7295_v26 = vpop.f32.mrb[62].mxu0 }
 0x1d7   : > { %v7296_v1 = vpop.f32.mrb[63].mxu0 }
 0x1d8   : > { %v9787_v35 = vadd.f32 %v7296_v1, %v7295_v26 }
 0x1dc   : > { %v8020_v14 = vpop.f32.mrb[64].mxu0 }
 0x1dd   : > { %v2176_v12 = vadd.f32 %v8020_v14, %v9659_v37  ;;  %v2167_v6 = vpop.f32.mrb[65].mxu0 }
 0x1de   : > { %v2168_v11 = vadd.f32 %v9650_v20, %v2167_v6  ;;  %v8021_v57 = vpop.f32.mrb[66].mxu0 }
 0x1df   : > { %v9792_v58 = vadd.f32 %v9648_v17, %v2176_v12  ;;  %v2179_v41 = vadd.f32 %v8021_v57, %v9663_v45  ;;  %v2170_v25 = vpop.f32.mrb[67].mxu0 }
 0x1e0   : > { %v9796_v54 = vadd.f32 %v9642_v33, %v2168_v11  ;;  %v2171_v22 = vadd.f32 %v9654_v24, %v2170_v25 }
 0x1e1   : > { %v9800_v26 = vadd.f32 %v9652_v23, %v2179_v41 }
 0x1e2   : > { %v9803_v37 = vadd.f32 %v9644_v13, %v2171_v22 }
 0x1e4   : > { %v8024_v46 = vpop.f32.mrb[68].mxu0 }
 0x1e5   : > { %v2192_v20 = vadd.f32 %v8024_v46, %v9682_v15  ;;  %v2183_v1 = vpop.f32.mrb[69].mxu0 }
 0x1e6   : > { %v2184_v17 = vadd.f32 %v9670_v63, %v2183_v1  ;;  %v8025_v14 = vpop.f32.mrb[70].mxu0 }
 0x1e7   : > { %v9808_v45 = vadd.f32 %v9668_v59, %v2192_v20  ;;  %v2195_v33 = vadd.f32 %v8025_v14, %v9686_v29  ;;  %v2186_v57 = vpop.f32.mrb[71].mxu0 }
 0x1e8   : > { %v9812_v24 = vadd.f32 %v9657_v43, %v2184_v17  ;;  %v2187_v23 = vadd.f32 %v9674_v60, %v2186_v57 }
 0x1e9   : > { %v9816_v13 = vadd.f32 %v9672_v9, %v2195_v33 }
 0x1ea   : > { %v9819_v15 = vadd.f32 %v9661_v44, %v2187_v23 }
 0x1ec   : > { %v8028_v12 = vpop.f32.mrb[72].mxu0 }
 0x1ed   : > { %v2208_v63 = vadd.f32 %v8028_v12, %v9700_v62  ;;  %v2199_v6 = vpop.f32.mrb[73].mxu0 }
 0x1ee   : > { %v2200_v59 = vadd.f32 %v9691_v31, %v2199_v6  ;;  %v8029_v11 = vpop.f32.mrb[74].mxu0 }
 0x1ef   : > { %v9824_v29 = vadd.f32 %v9689_v27, %v2208_v63  ;;  %v2211_v43 = vadd.f32 %v8029_v11, %v9704_v61  ;;  %v2202_v41 = vpop.f32.mrb[75].mxu0  ;;  %v10920_v11 = vld [vmem:[#allocation17_spill] sm:$0xff] }
 0x1f0   : > { %v9828_v60 = vadd.f32 %v9680_v56, %v2200_v59  ;;  %v2203_v9 = vadd.f32 %v9695_v47, %v2202_v41 }
 0x1f1   : > { %v9832_v44 = vadd.f32 %v9693_v42, %v2211_v43 }
 0x1f2   : > { %v9835_v62 = vadd.f32 %v9684_v19, %v2203_v9 }
 0x1f4   : > { %v8032_v25 = vpop.f32.mrb[76].mxu0 }
 0x1f5   : > { %v2224_v31 = vadd.f32 %v8032_v25, %v9718_v28  ;;  %v2215_v22 = vpop.f32.mrb[77].mxu0 }
 0x1f6   : > { %v2216_v27 = vadd.f32 %v9709_v2, %v2215_v22  ;;  %v8033_v46 = vpop.f32.mrb[78].mxu0  ;;  %v10924_v22 = vld [vmem:[#allocation26_spill] sm:$0xff] }
 0x1f7   : > { %v9840_v61 = vadd.f32 %v9707_v34, %v2224_v31  ;;  %v2227_v56 = vadd.f32 %v8033_v46, %v9722_v52  ;;  %v2218_v20 = vpop.f32.mrb[79].mxu0 }
 0x1f8   : > { %v9844_v47 = vadd.f32 %v9698_v55, %v2216_v27  ;;  %v2219_v42 = vadd.f32 %v9713_v21, %v2218_v20  ;;  %v10927_v20 = vld [vmem:[#allocation23_spill] sm:$0xff] }
 0x1f9   : > { %v9848_v19 = vadd.f32 %v9711_v8, %v2227_v56 }
 0x1fa   : > { %v9851_v28 = vadd.f32 %v9702_v0, %v2219_v42 }
 0x1fc   : > { %v8036_v1 = vpop.f32.mrb[80].mxu0 }
 0x1fd   : > { %v2240_v2 = vadd.f32 %v8036_v1, %v9734_v30  ;;  %v2231_v17 = vpop.f32.mrb[81].mxu0  ;;  %v10928_v1 = vld [vmem:[#allocation24_spill] sm:$0xff] }
 0x1fe   : > { %v2232_v34 = vadd.f32 %v9725_v3, %v2231_v17  ;;  %v8037_v14 = vpop.f32.mrb[82].mxu0  ;;  %v10930_v17 = vld [vmem:[#allocation20_spill] sm:$0xff] }
 0x1ff   : > { %v9856_v52 = vadd.f32 %v9727_v10, %v2240_v2  ;;  %v2243_v55 = vadd.f32 %v8037_v14, %v9738_v18  ;;  %v2234_v33 = vpop.f32.mrb[83].mxu0 }
 0x200   : > { %v9860_v21 = vadd.f32 %v9716_v36, %v2232_v34  ;;  %v2235_v8 = vadd.f32 %v9729_v51, %v2234_v33  ;;  %v10918_v51 = vld [vmem:[#allocation16_spill] sm:$0xff] }
 0x201   : > { %v9864_v0 = vadd.f32 %v9731_v16, %v2243_v55 }
 0x202   : > { %v9867_v30 = vadd.f32 %v9720_v50, %v2235_v8  ;;  %v10919_v50 = vld [vmem:[#allocation18_spill] sm:$0xff] }
 0x204   : > { %v8040_v57 = vpop.f32.mrb[84].mxu0 }
 0x205   : > { %v2256_v3 = vadd.f32 %v8040_v57, %v9752_v7  ;;  %v2247_v23 = vpop.f32.mrb[85].mxu0 }
 0x206   : > { %v2248_v10 = vadd.f32 %v9743_v48, %v2247_v23  ;;  %v8041_v12 = vpop.f32.mrb[86].mxu0 }
 0x207   : > { %v9872_v18 = vadd.f32 %v9745_v4, %v2256_v3  ;;  %v2259_v36 = vadd.f32 %v8041_v12, %v9757_v53  ;;  %v2250_v63 = vpop.f32.mrb[87].mxu0  ;;  %v10921_v4 = vld [vmem:[#allocation21_spill] sm:$0xff]  ;;  %v10922_v53 = vld [vmem:[#allocation22_spill] sm:$0xff]  ;;  %v10932_v12 = vld [vmem:[#allocation28_spill] sm:$0xff] }
 0x208   : > { %v9876_v6 = vadd.f32 %v10918_v51, %v2248_v10  ;;  %v2251_v16 = vadd.f32 %v9747_v40, %v2250_v63  ;;  %v10925_v40 = vld [vmem:[#allocation19_spill] sm:$0xff]  ;;  %v9903_v10 = vld [vmem:[#allocation7 + $0x2c0] sm:$0xff]  }
 0x209   : > { %v9880_v59 = vadd.f32 %v10919_v50, %v2259_v36  ;;  %v10934_v50 = vld [vmem:[#allocation25_spill] sm:$0xff]  ;;  %8194 = vmatprep.subr.bf16.mxu1 %v9903_v10 }
 0x20a   : > { %v9883_v7 = vadd.f32 %v10920_v11, %v2251_v16 }
 0x20c   : > { %v8044_v43 = vpop.f32.mrb[88].mxu0 }
 0x20d   : > { %v2272_v48 = vadd.f32 %v8044_v43, %v9769_v39  ;;  %v2263_v41 = vpop.f32.mrb[89].mxu0  ;;  %v10937_v43 = vld [vmem:[#allocation27_spill] sm:$0xff] }
 0x20e   : > { %v2264_v9 = vadd.f32 %v10921_v4, %v2263_v41  ;;  %v8045_v25 = vpop.f32.mrb[90].mxu0 }
 0x20f   : > { %v9888_v31 = vadd.f32 %v10922_v53, %v2272_v48  ;;  %v2275_v27 = vadd.f32 %v8045_v25, %v10924_v22  ;;  %v2266_v46 = vpop.f32.mrb[91].mxu0 }
 0x210   : > { %v9892_v56 = vadd.f32 %v10925_v40, %v2264_v9  ;;  %v2267_v42 = vadd.f32 %v10927_v20, %v2266_v46  ;;  %v9932_v40 = vld [vmem:[%s10866_s2] ss:$0 sm:$0xff] }
 0x211   : > { %10923 = vst [vmem:[#allocation16_spill] sm:$0xff] %v9888_v31  ;;  %v9896_v2 = vadd.f32 %v10928_v1, %v2275_v27 }
 0x212   : > { %10926 = vst [vmem:[#allocation18_spill] sm:$0xff] %v9892_v56  ;;  %v9899_v39 = vadd.f32 %v10930_v17, %v2267_v42 }
 0x213   : > { %10929 = vst [vmem:[#allocation17_spill] sm:$0xff] %v9896_v2 }
 0x214   : > { %10931 = vst [vmem:[#allocation21_spill] sm:$0xff] %v9899_v39  ;;  %v8048_v34 = vpop.f32.mrb[92].mxu0  ;;  %v8116_v14 = vpop.f32.mrb[64].mxu1 }
 0x215   : > { %v2288_v55 = vadd.f32 %v8048_v34, %v9785_v38  ;;  %v2279_v33 = vpop.f32.mrb[93].mxu0  ;;  %v3197_v8 = vpop.f32.mrb[65].mxu1 }
 0x216   : > { %v2280_v57 = vadd.f32 %v9777_v49, %v2279_v33  ;;  %v8049_v3 = vpop.f32.mrb[94].mxu0  ;;  %v8117_v23 = vpop.f32.mrb[66].mxu1 }
 0x217   : > { %v9906_v36 = vadd.f32 %v10932_v12, %v2288_v55  ;;  %v2291_v63 = vadd.f32 %v8049_v3, %v9787_v35  ;;  %v2282_v51 = vpop.f32.mrb[95].mxu0  ;;  %v3200_v16 = vpop.f32.mrb[67].mxu1 }
 0x218   : > { %v9910_v11 = vadd.f32 %v10934_v50, %v2280_v57  ;;  %v2283_v38 = vadd.f32 %v9781_v32, %v2282_v51 }
 0x219   : > { %10933 = vst [vmem:[#allocation22_spill] sm:$0xff] %v9906_v36  ;;  %v9915_v49 = vadd.f32 %v9783_v5, %v2291_v63 }
 0x21a   : > { %10935 = vst [vmem:[#allocation26_spill] sm:$0xff] %v9910_v11  ;;  %v9918_v48 = vadd.f32 %v10937_v43, %v2283_v38 }
 0x21b   : > { %10936 = vst [vmem:[#allocation19_spill] sm:$0xff] %v9915_v49 }
 0x21c   : > { %10938 = vst [vmem:[#allocation23_spill] sm:$0xff] %v9918_v48  ;;  %v7474_v41 = vpop.f32.mrb[96].mxu0  ;;  %v9920_v4 = vpop.f32.mrb[68].mxu1 }
 0x21d   : > { %v7475_v9 = vpop.f32.mrb[97].mxu0  ;;  %v9922_v35 = vpop.f32.mrb[69].mxu1 }
 0x21e   : > { %v7476_v25 = vadd.f32 %v7475_v9, %v7474_v41  ;;  %v7477_v53 = vpop.f32.mrb[98].mxu0  ;;  %v9924_v22 = vpop.f32.mrb[70].mxu1 }
 0x21f   : > { %v7478_v27 = vpop.f32.mrb[99].mxu0  ;;  %v9926_v32 = vpop.f32.mrb[71].mxu1 }
 0x220   : > { %v8296_v46 = vadd.f32 %v7476_v25, %v9796_v54  ;;  %v7479_v5 = vadd.f32 %v7478_v27, %v7477_v53 }
 0x222   : > { %v8297_v20 = vadd.f32 %v8296_v46, %v3197_v8  ;;  %v8304_v42 = vadd.f32 %v7479_v5, %v9803_v37 }
 0x224   : > { %v3363_v1 = vadd.f32 %v8297_v20, %v9932_v40  ;;  %v8305_v17 = vadd.f32 %v8304_v42, %v3200_v16  ;;  %v7480_v34 = vpop.f32.mrb[100].mxu0  ;;  %v9936_v55 = vpop.f32.mrb[72].mxu1 }
 0x225   : > { %v7481_v33 = vpop.f32.mrb[101].mxu0  ;;  %v9938_v57 = vpop.f32.mrb[73].mxu1 }
 0x226   : > { %v3395_v3 = vmax.f32 %v3363_v1, 0.0  ;;  %v3364_v54 = vadd.f32 %v8305_v17, %v9932_v40  ;;  %v7482_v12 = vadd.f32 %v7481_v33, %v7480_v34  ;;  %v7483_v63 = vpop.f32.mrb[102].mxu0  ;;  %v9941_v51 = vpop.f32.mrb[74].mxu1  ;;  %v3843_v17 = vld [vmem:[#allocation2 + $0xc] sm:$0xf] }
 0x227   : > { %v7484_v50 = vpop.f32.mrb[103].mxu0  ;;  %v9943_v8 = vpop.f32.mrb[75].mxu1 }
 0x228   : > { %v7153_v37 = vpack.c.bf16 %v3395_v3, %v3395_v3  ;;  %v3396_v38 = vmax.f32 %v3364_v54, 0.0  ;;  %v8292_v16 = vadd.f32 %v7482_v12, %v9792_v58  ;;  %v7485_v43 = vadd.f32 %v7484_v50, %v7483_v63 }
 0x22a   : > { %v3524_v41 = vshrl.u32 %v7153_v37, 16  ;;  %v7154_v9 = vpack.c.bf16 %v3396_v38, %v3396_v38  ;;  %v8293_v25 = vadd.f32 %v8292_v16, %v8116_v14  ;;  %v8300_v53 = vadd.f32 %v7485_v43, %v9800_v26 }
 0x22b   : > { %v3527_v46 = vshll.u32 %v7153_v37, 16  ;;  %v3847_v37 = vld [vmem:[#allocation2 + $0x14] sm:$0x1] }
 0x22c   : > { %v3526_v27 = vrot.slane %v3524_v41, 7  ;;  %v3532_v5 = vshrl.u32 %v7154_v9, 16  ;;  %v3365_v20 = vadd.f32 %v8293_v25, %v9932_v40  ;;  %v7486_v42 = vpop.f32.mrb[104].mxu0  ;;  %v9948_v1 = vpop.f32.mrb[76].mxu1  ;;  %v8301_v34 = vadd.f32 %v8300_v53, %v8117_v23 }
 0x22d   : > { %v7487_v33 = vpop.f32.mrb[105].mxu0  ;;  %v9950_v3 = vpop.f32.mrb[77].mxu1  ;;  %v3535_v12 = vshll.u32 %v7154_v9, 16 }
 0x22e   : > { %v3529_v58 = vor.u32 %v3527_v46, %v3526_v27  ;;  %v3534_v54 = vrot.slane %v3532_v5, 7  ;;  %v3397_v63 = vmax.f32 %v3365_v20, 0.0  ;;  %v7489_v14 = vpop.f32.mrb[106].mxu0  ;;  %v9952_v50 = vpop.f32.mrb[78].mxu1  ;;  %v3530_v26 = vrot.slane %v3526_v27, 4 }
 0x22f   : > { %v3366_v38 = vadd.f32 %v8301_v34, %v9932_v40  ;;  %v7488_v16 = vadd.f32 %v7487_v33, %v7486_v42  ;;  %v7490_v43 = vpop.f32.mrb[107].mxu0  ;;  %v9955_v41 = vpop.f32.mrb[79].mxu1 }
 0x230   : > { %v3844_v23 = vsel %vm9345_vm6, %v3529_v58, %v3843_v17  ;;  %v3537_v53 = vor.u32 %v3535_v12, %v3534_v54  ;;  %v3539_v49 = vrot.slane %v3534_v54, 4  ;;  %v7155_v46 = vpack.c.bf16 %v3397_v63, %v3397_v63 }
 0x231   : > { %3845 = vst [vmem:[#allocation2 + $0xc] sm:$0xf] %v3844_v23  ;;  %v3398_v9 = vmax.f32 %v3366_v38, 0.0  ;;  %v8312_v5 = vadd.f32 %v7488_v16, %v9812_v24  ;;  %v7491_v20 = vadd.f32 %v7490_v43, %v7489_v14  ;;  %v3850_v24 = vld [vmem:[#allocation2 + $0x18] sm:$0xf] }
 0x232   : > { %v3538_v27 = vsel %vm9340_vm4, %v3530_v26, %v3537_v53  ;;  %v3848_v42 = vsel %vm9352_vm8, %v3539_v49, %v3847_v37  ;;  %v3541_v34 = vshrl.u32 %v7155_v46, 16  ;;  %v3544_v12 = vshll.u32 %v7155_v46, 16  ;;  %v8928_v43 = vld [vmem:[#allocation7 + $0x280] sm:$0xff]  }
 0x233   : > { %3846 = vst [vmem:[#allocation2 + $0x10] sm:$0xf] %v3538_v27  ;;  %3849 = vst [vmem:[#allocation2 + $0x14] sm:$0x1] %v3848_v42  ;;  %v7156_v33 = vpack.c.bf16 %v3398_v9, %v3398_v9  ;;  %v8313_v17 = vadd.f32 %v8312_v5, %v9922_v35  ;;  %v8320_v58 = vadd.f32 %v7491_v20, %v9819_v15  ;;  %v3854_v35 = vld [vmem:[#allocation2 + $0x20] sm:$0x1]  ;;  %7730 = vmatprep.subr.bf16.mxu0 %v8928_v43 }
 0x234   : > { %v3543_v54 = vrot.slane %v3541_v34, 7  ;;  %v7492_v63 = vpop.f32.mrb[108].mxu0  ;;  %v9966_v38 = vpop.f32.mrb[80].mxu1 }
 0x235   : > { %v3549_v14 = vshrl.u32 %v7156_v33, 16  ;;  %v3367_v26 = vadd.f32 %v8313_v17, %v9932_v40  ;;  %v8321_v16 = vadd.f32 %v8320_v58, %v9926_v32  ;;  %v7493_v49 = vpop.f32.mrb[109].mxu0  ;;  %v9970_v37 = vpop.f32.mrb[81].mxu1  ;;  %v3552_v53 = vshll.u32 %v7156_v33, 16 }
 0x236   : > { %v3546_v23 = vor.u32 %v3544_v12, %v3543_v54  ;;  %v7494_v9 = vadd.f32 %v7493_v49, %v7492_v63  ;;  %v7495_v15 = vpop.f32.mrb[110].mxu0  ;;  %v9972_v5 = vpop.f32.mrb[82].mxu1  ;;  %v3547_v46 = vrot.slane %v3543_v54, 4 }
 0x237   : > { %v3551_v20 = vrot.slane %v3549_v14, 7  ;;  %v3399_v27 = vmax.f32 %v3367_v26, 0.0  ;;  %v3368_v42 = vadd.f32 %v8321_v16, %v9932_v40  ;;  %v7496_v34 = vpop.f32.mrb[111].mxu0  ;;  %v9975_v17 = vpop.f32.mrb[83].mxu1 }
 0x238   : > { %v3851_v32 = vsel %vm9345_vm6, %v3546_v23, %v3850_v24  ;;  %v8308_v58 = vadd.f32 %v7494_v9, %v9808_v45  ;;  %v7497_v33 = vadd.f32 %v7496_v34, %v7495_v15  ;;  %v3857_v45 = vld [vmem:[#allocation2 + $0x24] sm:$0xf] }
 0x239   : > { %3852 = vst [vmem:[#allocation2 + $0x18] sm:$0xf] %v3851_v32  ;;  %v3554_v12 = vor.u32 %v3552_v53, %v3551_v20  ;;  %v3556_v63 = vrot.slane %v3551_v20, 4  ;;  %v7157_v49 = vpack.c.bf16 %v3399_v27, %v3399_v27  ;;  %v3400_v11 = vmax.f32 %v3368_v42, 0.0 }
 0x23a   : > { %v8309_v54 = vadd.f32 %v8308_v58, %v9920_v4  ;;  %v8316_v14 = vadd.f32 %v7497_v33, %v9816_v13  ;;  %v8855_v26 = vld [vmem:[#allocation2 + $0xc] sm:$0xfe]   ;;  %v8856_v23 = vld [vmem:[#allocation2 + $0x14] ss:$0 sps:$4 sm:$0x11]  }
 0x23b   : > { %v3555_v16 = vsel %vm9340_vm4, %v3547_v46, %v3554_v12  ;;  %v3855_v43 = vsel %vm9352_vm8, %v3556_v63, %v3854_v35  ;;  %v3558_v24 = vshrl.u32 %v7157_v49, 16  ;;  %v7158_v53 = vpack.c.bf16 %v3400_v11, %v3400_v11  ;;  %v8859_v46 = vld [vmem:[#allocation2 + $0xc] sm:$0xff]   ;;  %v8860_v63 = vld [vmem:[#allocation2 + $0x14] ss:$0 sps:$4 sm:$0x11]  }
 0x23c   : > { %3853 = vst [vmem:[#allocation2 + $0x1c] sm:$0xf] %v3555_v16  ;;  %3856 = vst [vmem:[#allocation2 + $0x20] sm:$0x1] %v3855_v43  ;;  %v3369_v9 = vadd.f32 %v8309_v54, %v9932_v40  ;;  %v8317_v15 = vadd.f32 %v8316_v14, %v9924_v22  ;;  %v7498_v4 = vpop.f32.mrb[112].mxu0  ;;  %v4768_v20 = vrot.slane %v8855_v26, 1 }
 0x23d   : > { %v3560_v13 = vrot.slane %v3558_v24, 7  ;;  %v3561_v27 = vshll.u32 %v7157_v49, 16  ;;  %v7499_v42 = vpop.f32.mrb[113].mxu0  ;;  %v4769_v34 = vrot.slane %v8856_v23, 1  ;;  %v3566_v32 = vshrl.u32 %v7158_v53, 16  ;;  %v9989_v16 = vpop.f32.mrb[84].mxu1 }
 0x23e   : > { %v3569_v58 = vshll.u32 %v7158_v53, 16  ;;  %v3401_v35 = vmax.f32 %v3369_v9, 0.0  ;;  %v3370_v33 = vadd.f32 %v8317_v15, %v9932_v40  ;;  %v7501_v12 = vpop.f32.mrb[114].mxu0  ;;  %v3861_v43 = vld [vmem:[#allocation2 + $0x2c] sm:$0x1]  ;;  %v7500_v22 = vadd.f32 %v7499_v42, %v7498_v4  ;;  %v9994_v49 = vpop.f32.mrb[85].mxu1 }
 0x23f   : > { %v3563_v11 = vor.u32 %v3561_v27, %v3560_v13  ;;  %v3564_v54 = vrot.slane %v3560_v13, 4  ;;  %v7502_v14 = vpop.f32.mrb[115].mxu0  ;;  %v9992_v26 = vsel %vm1543_vm9, %v4768_v20, %v4769_v34  ;;  %v3568_v24 = vrot.slane %v3566_v32, 7  ;;  %v9997_v15 = vpop.f32.mrb[86].mxu1 }
 0x240   : > { %10942 = vst [vmem:[#allocation24_spill] sm:$0xff] %v9992_v26  ;;  %v7159_v23 = vpack.c.bf16 %v3401_v35, %v3401_v35  ;;  %v3402_v53 = vmax.f32 %v3370_v33, 0.0  ;;  %v7503_v9 = vadd.f32 %v7502_v14, %v7501_v12  ;;  %8162 = vmatprep.mubr.bf16.mxu1 %v9992_v26  ;;  %10943 = vst [vmem:[#allocation20_spill] sm:$0xff] %v9997_v15  ;;  %v4328_v4 = vshrl.u32 %v8859_v46, 16  ;;  %v10002_v2 = vpop.f32.mrb[87].mxu1 }
 0x241   : > { %v3858_v27 = vsel %vm9345_vm6, %v3563_v11, %v3857_v45  ;;  %v8328_v13 = vadd.f32 %v7500_v22, %v9828_v60  ;;  %v4330_v42 = vshll.u32 %v8859_v46, 16  ;;  %v3571_v20 = vor.u32 %v3569_v58, %v3568_v24  ;;  %v3864_v33 = vld [vmem:[#allocation2 + $0x30] sm:$0xf] }
 0x242   : > { %3859 = vst [vmem:[#allocation2 + $0x24] sm:$0xf] %v3858_v27  ;;  %v3573_v34 = vrot.slane %v3568_v24, 4  ;;  %v3575_v32 = vshrl.u32 %v7159_v23, 16  ;;  %v3578_v35 = vshll.u32 %v7159_v23, 16  ;;  %v7160_v12 = vpack.c.bf16 %v3402_v53, %v3402_v53 }
 0x243   : > { %v8329_v14 = vadd.f32 %v8328_v13, %v9938_v57  ;;  %v8336_v26 = vadd.f32 %v7503_v9, %v9835_v62  ;;  %v4332_v31 = vrot.slane %v4330_v42, 1  ;;  %v3572_v45 = vsel %vm9340_vm4, %v3564_v54, %v3571_v20  ;;  %v8863_v58 = vld [vmem:[#allocation2 + $0x18] sm:$0xfe]   ;;  %v8864_v27 = vld [vmem:[#allocation2 + $0x20] ss:$0 sps:$4 sm:$0x11]  }
 0x244   : > { %v3862_v60 = vsel %vm9352_vm8, %v3573_v34, %v3861_v43  ;;  %v3577_v46 = vrot.slane %v3575_v32, 7  ;;  %v7504_v11 = vpop.f32.mrb[116].mxu0  ;;  %v4335_v22 = vshll.u32 %v8860_v63, 16  ;;  %v10010_v24 = vpop.f32.mrb[88].mxu1  ;;  %3860 = vst [vmem:[#allocation2 + $0x28] sm:$0xf] %v3572_v45 }
 0x245   : > { %10944 = vst [vmem:[#allocation28_spill] sm:$0xff] %v10010_v24  ;;  %3863 = vst [vmem:[#allocation2 + $0x2c] sm:$0x1] %v3862_v60  ;;  %v3583_v23 = vshrl.u32 %v7160_v12, 16  ;;  %v3586_v53 = vshll.u32 %v7160_v12, 16  ;;  %v3371_v57 = vadd.f32 %v8329_v14, %v9932_v40  ;;  %v8337_v62 = vadd.f32 %v8336_v26, %v9943_v8  ;;  %v7505_v9 = vpop.f32.mrb[117].mxu0 }
 0x246   : > { %v8929_v54 = vld [vmem:[#allocation7 + $0x240] sm:$0xff]   ;;  %v3580_v13 = vor.u32 %v3578_v35, %v3577_v46  ;;  %v3581_v42 = vrot.slane %v3577_v46, 4  ;;  %v4333_v20 = vor.u32 %v4332_v31, %v4328_v4  ;;  %v4337_v34 = vrot.slane %v4335_v22, 1  ;;  %v8862_v63 = vld [vmem:[#allocation2 + $0xc] sm:$0xff]   ;;  %v7507_v32 = vpop.f32.mrb[118].mxu0  ;;  %v8933_v45 = vld [vmem:[#allocation7 + $0x288] sm:$0xff]  }
 0x247   : > { %v3868_v43 = vld [vmem:[#allocation2 + $0x38] sm:$0x1]  ;;  %v3585_v60 = vrot.slane %v3583_v23, 7  ;;  %v3403_v24 = vmax.f32 %v3371_v57, 0.0  ;;  %v3372_v12 = vadd.f32 %v8337_v62, %v9932_v40  ;;  %v7506_v14 = vadd.f32 %v7505_v9, %v7504_v11  ;;  %v7508_v56 = vpop.f32.mrb[119].mxu0  ;;  %v10017_v8 = vpop.f32.mrb[89].mxu1 }
 0x248   : > { %v10014_v39 = vld [vmem:[#allocation2 + $0x18] sm:$0xff]   ;;  %v3865_v26 = vsel %vm9345_vm6, %v3580_v13, %v3864_v33  ;;  %v10022_v35 = vsel %vm1092_vm7, %v4333_v20, %v4337_v34  ;;  %v7509_v31 = vadd.f32 %v7508_v56, %v7507_v32  ;;  %v4771_v4 = vrot.slane %v8863_v58, 1  ;;  %v8866_v46 = vld [vmem:[#allocation2 + $0x20] ss:$0 sps:$4 sm:$0x11]   ;;  %v10025_v11 = vpop.f32.mrb[90].mxu1 }
 0x249   : > { %10945 = vst [vmem:[#allocation25_spill] sm:$0xff] %v10022_v35  ;;  %3866 = vst [vmem:[#allocation2 + $0x30] sm:$0xf] %v3865_v26  ;;  %v3588_v22 = vor.u32 %v3586_v53, %v3585_v60  ;;  %v3590_v15 = vrot.slane %v3585_v60, 4  ;;  %v7161_v23 = vpack.c.bf16 %v3403_v24, %v3403_v24  ;;  %v3404_v57 = vmax.f32 %v3372_v12, 0.0  ;;  %5225 = vmatprep.mubr.bf16.mxu0 %v10022_v35  ;;  %v10030_v56 = vpop.f32.mrb[91].mxu1 }
 0x24a   : > { %10946 = vst [vmem:[#allocation27_spill] sm:$0xff] %v10025_v11  ;;  %v8324_v62 = vadd.f32 %v7506_v14, %v9824_v29  ;;  %5226 = vmatmul.mubr.bf16.vlgmr.msra.gmra.mrb[160].mxu0 %v8862_v63  ;;  %v8332_v33 = vadd.f32 %v7509_v31, %v9832_v44  ;;  %v4772_v9 = vrot.slane %v8864_v27, 1  ;;  %v4340_v13 = vshrl.u32 %v10014_v39, 16  ;;  %v8906_v34 = vld [vmem:[#allocation7 + $0x2c8] sm:$0xff]   ;;  %v3871_v29 = vld [vmem:[#allocation2 + $0x3c] sm:$0xf] }
 0x24b   : > { %v3589_v58 = vsel %vm9340_vm4, %v3581_v42, %v3588_v22  ;;  %v3869_v24 = vsel %vm9352_vm8, %v3590_v15, %v3868_v43  ;;  %v3592_v53 = vshrl.u32 %v7161_v23, 16  ;;  %v3595_v20 = vshll.u32 %v7161_v23, 16  ;;  %7731 = vmatpush3.bf16.msra.mxu0 %v8929_v54  ;;  %v8934_v32 = vld [vmem:[#allocation7 + $0x248] sm:$0xff]   ;;  %v8938_v12 = vld [vmem:[#allocation7 + $0x290] sm:$0xff]  }
 0x24c   : > { %3867 = vst [vmem:[#allocation2 + $0x34] sm:$0xf] %v3589_v58  ;;  %3870 = vst [vmem:[#allocation2 + $0x38] sm:$0x1] %v3869_v24  ;;  %v7162_v44 = vpack.c.bf16 %v3404_v57, %v3404_v57  ;;  %v8325_v27 = vadd.f32 %v8324_v62, %v9936_v55  ;;  %v8333_v63 = vadd.f32 %v8332_v33, %v9941_v51  ;;  %v7510_v42 = vpop.f32.mrb[120].mxu0  ;;  %7732 = vmatprep.subr.bf16.mxu0 %v8933_v45  ;;  %v10045_v31 = vld [vmem:[#allocation7 + $0x2d0] sm:$0xff]  }
 0x24d   : > { %v10039_v60 = vsel %vm1543_vm9, %v4771_v4, %v4772_v9  ;;  %v3594_v15 = vrot.slane %v3592_v53, 7  ;;  %v4342_v54 = vshll.u32 %v10014_v39, 16  ;;  %v4347_v43 = vshll.u32 %v8866_v46, 16  ;;  %v7511_v14 = vpop.f32.mrb[121].mxu0  ;;  %v10043_v26 = vld [vmem:[#allocation2 + $0x24] sm:$0xfe]  }
 0x24e   : > { %10947 = vst [vmem:[#allocation14_spill] sm:$0xff] %v10039_v60  ;;  %8163 = vmatmul.mubr.bf16.vlgmr.msra.gmra.mrb[96].mxu1 %v10039_v60  ;;  %v8939_v55 = vld [vmem:[#allocation7 + $0x250] sm:$0xff]   ;;  %v3600_v22 = vshrl.u32 %v7162_v44, 16  ;;  %v3603_v51 = vshll.u32 %v7162_v44, 16  ;;  %v3373_v4 = vadd.f32 %v8325_v27, %v9932_v40  ;;  %v3374_v23 = vadd.f32 %v8333_v63, %v9932_v40  ;;  %v7513_v45 = vpop.f32.mrb[122].mxu0  ;;  %v8943_v62 = vld [vmem:[#allocation7 + $0x298] sm:$0xff]  }
 0x24f   : > { %v10049_v57 = vld [vmem:[#allocation2 + $0x2c] ss:$0 sps:$4 sm:$0x11]   ;;  %8195 = vmatpush3.bf16.msra.mxu1 %v9903_v10  ;;  %v3597_v39 = vor.u32 %v3595_v20, %v3594_v15  ;;  %v3598_v46 = vrot.slane %v3594_v15, 4  ;;  %v3875_v33 = vld [vmem:[#allocation2 + $0x44] sm:$0x1]  ;;  %7733 = vmatpush3.bf16.msra.mxu0 %v8934_v32  ;;  %v7512_v27 = vadd.f32 %v7511_v14, %v7510_v42 }
 0x250   : > { %v4344_v9 = vrot.slane %v4342_v54, 1  ;;  %v4349_v58 = vrot.slane %v4347_v43, 1  ;;  %v7514_v24 = vpop.f32.mrb[123].mxu0  ;;  %8196 = vmatprep.subr.bf16.mxu1 %v8906_v34  ;;  %v3602_v53 = vrot.slane %v3600_v22, 7  ;;  %v3405_v44 = vmax.f32 %v3373_v4, 0.0  ;;  %v10052_v60 = vpop.f32.mrb[92].mxu1  ;;  %7734 = vmatprep.subr.bf16.mxu0 %v8938_v12 }
 0x251   : > { %v3406_v35 = vmax.f32 %v3374_v23, 0.0  ;;  %v3872_v63 = vsel %vm9345_vm6, %v3597_v39, %v3871_v29  ;;  %v7515_v11 = vadd.f32 %v7514_v24, %v7513_v45  ;;  %v4774_v20 = vrot.slane %v10043_v26, 1  ;;  %v10057_v15 = vld [vmem:[#allocation2 + $0x2c] ss:$0 sps:$4 sm:$0x11]   ;;  %v10059_v54 = vld [vmem:[#allocation7 + $0x2d8] sm:$0xff]  }
 0x252   : > { %v4345_v10 = vor.u32 %v4344_v9, %v4340_v13  ;;  %3873 = vst [vmem:[#allocation2 + $0x3c] sm:$0xf] %v3872_v63  ;;  %v3605_v32 = vor.u32 %v3603_v51, %v3602_v53  ;;  %v3607_v43 = vrot.slane %v3602_v53, 4  ;;  %v7163_v22 = vpack.c.bf16 %v3405_v44, %v3405_v44  ;;  %v8867_v42 = vld [vmem:[#allocation2 + $0x18] sm:$0xff]   ;;  %v8870_v14 = vld [vmem:[#allocation2 + $0x24] sm:$0xff]   ;;  %v10061_v23 = vpop.f32.mrb[93].mxu1 }
 0x253   : > { %v7164_v4 = vpack.c.bf16 %v3406_v35, %v3406_v35  ;;  %8197 = vmatpush3.bf16.msra.mxu1 %v8906_v34  ;;  %v8344_v13 = vadd.f32 %v7512_v27, %v9844_v47  ;;  %v8352_v12 = vadd.f32 %v7515_v11, %v9851_v28  ;;  %v4775_v26 = vrot.slane %v10049_v57, 1  ;;  %v10069_v45 = vpop.f32.mrb[94].mxu1  ;;  %7735 = vmatpush3.bf16.msra.mxu0 %v8939_v55  ;;  %v8944_v28 = vld [vmem:[#allocation7 + $0x258] sm:$0xff]   ;;  %v3878_v11 = vld [vmem:[#allocation2 + $0x48] sm:$0xf]  ;;  %v10081_v24 = vld [vmem:[#allocation7 + $0x2e0] sm:$0xff]  }
 0x254   : > { %v10064_v29 = vsel %vm1092_vm7, %v4345_v10, %v4349_v58  ;;  %10949 = vst [vmem:[#allocation15_spill] sm:$0xff] %v10069_v45  ;;  %8198 = vmatprep.subr.bf16.mxu1 %v10045_v31  ;;  %v3606_v35 = vsel %vm9340_vm4, %v3598_v46, %v3605_v32  ;;  %v3876_v34 = vsel %vm9352_vm8, %v3607_v43, %v3875_v33  ;;  %v3609_v51 = vshrl.u32 %v7163_v22, 16  ;;  %v7516_v47 = vpop.f32.mrb[124].mxu0  ;;  %v10077_v9 = vpop.f32.mrb[95].mxu1  ;;  %v8948_v53 = vld [vmem:[#allocation7 + $0x2a0] sm:$0xff]  }
 0x255   : > { %10948 = vst [vmem:[#allocation13_spill] sm:$0xff] %v10064_v29  ;;  %v3612_v39 = vshll.u32 %v7163_v22, 16  ;;  %5233 = vmatprep.mubr.bf16.mxu0 %v10064_v29  ;;  %7736 = vmatprep.subr.bf16.mxu0 %v8943_v62  ;;  %3874 = vst [vmem:[#allocation2 + $0x40] sm:$0xf] %v3606_v35  ;;  %v3617_v57 = vshrl.u32 %v7164_v4, 16  ;;  %v3620_v55 = vshll.u32 %v7164_v4, 16  ;;  %v8345_v58 = vadd.f32 %v8344_v13, %v9950_v3 }
 0x256   : > { %3877 = vst [vmem:[#allocation2 + $0x44] sm:$0x1] %v3876_v34  ;;  %5234 = vmatmul.mubr.bf16.gmra.mrb[164].mxu0 %v8867_v42  ;;  %v8353_v46 = vadd.f32 %v8352_v12, %v9955_v41  ;;  %v7517_v33 = vpop.f32.mrb[125].mxu0  ;;  %v3611_v44 = vrot.slane %v3609_v51, 7  ;;  %v3882_v27 = vld [vmem:[#allocation2 + $0x50] sm:$0x1]  ;;  %v10084_v63 = vsel %vm1543_vm9, %v4774_v20, %v4775_v26 }
 0x257   : > { %10950 = vst [vmem:[#allocation29_spill] sm:$0xff] %v10084_v63  ;;  %v4352_v62 = vshrl.u32 %v8870_v14, 16  ;;  %v4354_v10 = vshll.u32 %v8870_v14, 16  ;;  %v7519_v32 = vpop.f32.mrb[126].mxu0  ;;  %v10086_v43 = vld [vmem:[#allocation2 + $0x30] sm:$0xfe]   ;;  %8199 = vmatpush3.bf16.msra.mxu1 %v10045_v31  ;;  %v3375_v41 = vadd.f32 %v8345_v58, %v9932_v40  ;;  %8166 = vmatprep.mubr.bf16.mxu1 %v10084_v63  ;;  %v7518_v35 = vadd.f32 %v7517_v33, %v7516_v47 }
 0x258   : > { %v8949_v3 = vld [vmem:[#allocation7 + $0x260] sm:$0xff]   ;;  %v3619_v22 = vrot.slane %v3617_v57, 7  ;;  %v3376_v4 = vadd.f32 %v8353_v46, %v9932_v40  ;;  %v4359_v42 = vshll.u32 %v10057_v15, 16  ;;  %v7520_v13 = vpop.f32.mrb[127].mxu0  ;;  %8200 = vmatprep.subr.bf16.mxu1 %v10059_v54  ;;  %v8953_v20 = vld [vmem:[#allocation7 + $0x2a8] sm:$0xff]   ;;  %v3614_v14 = vor.u32 %v3612_v39, %v3611_v44  ;;  %7737 = vmatpush3.bf16.msra.mxu0 %v8944_v28  ;;  %v10101_v47 = vld [vmem:[#allocation2 + $0x30] sm:$0xff]  }
 0x259   : > { %v3615_v12 = vrot.slane %v3611_v44, 4  ;;  %v4356_v26 = vrot.slane %v4354_v10, 1  ;;  %v8874_v34 = vld [vmem:[#allocation2 + $0x38] ss:$0 sps:$4 sm:$0x11]   ;;  %v3407_v57 = vmax.f32 %v3375_v41, 0.0  ;;  %7738 = vmatprep.subr.bf16.mxu0 %v8948_v53  ;;  %v8340_v39 = vadd.f32 %v7518_v35, %v9840_v61 }
 0x25a   : > { %v3622_v31 = vor.u32 %v3620_v55, %v3619_v22  ;;  %v3624_v51 = vrot.slane %v3619_v22, 4  ;;  %v3408_v58 = vmax.f32 %v3376_v4, 0.0  ;;  %v10094_v29 = vld [vmem:[#allocation2 + $0x38] ss:$0 sps:$4 sm:$0x11]   ;;  %v10096_v46 = vld [vmem:[#allocation7 + $0x2e8] sm:$0xff]   ;;  %v3879_v15 = vsel %vm9345_vm6, %v3614_v14, %v3878_v11 }
 0x25b   : > { %v4357_v63 = vor.u32 %v4356_v26, %v4352_v62  ;;  %v4361_v45 = vrot.slane %v4359_v42, 1  ;;  %v8872_v44 = vld [vmem:[#allocation2 + $0x24] sm:$0xff]   ;;  %8201 = vmatpush3.bf16.msra.mxu1 %v10059_v54  ;;  %3880 = vst [vmem:[#allocation2 + $0x48] sm:$0xf] %v3879_v15  ;;  %v7165_v33 = vpack.c.bf16 %v3407_v57, %v3407_v57  ;;  %v8341_v62 = vadd.f32 %v8340_v39, %v9948_v1  ;;  %v3889_v26 = vld [vmem:[#allocation2 + $0x5c] sm:$0x1] }
 0x25c   : > { %v3623_v28 = vsel %vm9340_vm4, %v3615_v12, %v3622_v31  ;;  %v3883_v55 = vsel %vm9352_vm8, %v3624_v51, %v3882_v27  ;;  %v7166_v53 = vpack.c.bf16 %v3408_v58, %v3408_v58  ;;  %8202 = vmatprep.subr.bf16.mxu1 %v10081_v24  ;;  %v8954_v11 = vld [vmem:[#allocation7 + $0x268] sm:$0xff]   ;;  %v7521_v54 = vadd.f32 %v7520_v13, %v7519_v32  ;;  %v7522_v22 = vpop.f32.mrb[128].mxu0  ;;  %v3885_v12 = vld [vmem:[#allocation2 + $0x54] sm:$0xf]  ;;  %v8958_v58 = vld [vmem:[#allocation7 + $0x2b0] sm:$0xff]  }
 0x25d   : > { %3881 = vst [vmem:[#allocation2 + $0x4c] sm:$0xf] %v3623_v28  ;;  %3884 = vst [vmem:[#allocation2 + $0x50] sm:$0x1] %v3883_v55  ;;  %v10110_v61 = vsel %vm1092_vm7, %v4357_v63, %v4361_v45  ;;  %v4777_v10 = vrot.slane %v10086_v43, 1  ;;  %7739 = vmatpush3.bf16.msra.mxu0 %v8949_v3  ;;  %v3626_v41 = vshrl.u32 %v7165_v33, 16  ;;  %v3377_v45 = vadd.f32 %v8341_v62, %v9932_v40 }
 0x25e   : > { %v3629_v4 = vshll.u32 %v7165_v33, 16  ;;  %v3634_v27 = vshrl.u32 %v7166_v53, 16  ;;  %v3637_v42 = vshll.u32 %v7166_v53, 16  ;;  %5241 = vmatprep.mubr.bf16.mxu0 %v10110_v61  ;;  %v7523_v14 = vpop.f32.mrb[129].mxu0  ;;  %7740 = vmatprep.subr.bf16.mxu0 %v8953_v20  ;;  %v8348_v1 = vadd.f32 %v7521_v54, %v9848_v19  ;;  %v8942_v3 = vld [vmem:[#allocation7 + $0x2f0] sm:$0xff]   ;;  %v8880_v54 = vld [vmem:[#allocation2 + $0x3c] sm:$0xff]  }
 0x25f   : > { %5242 = vmatmul.mubr.bf16.gmra.mrb[168].mxu0 %v8872_v44  ;;  %v4778_v63 = vrot.slane %v8874_v34, 1  ;;  %v4364_v32 = vshrl.u32 %v10101_v47, 16  ;;  %v7525_v43 = vpop.f32.mrb[130].mxu0  ;;  %8203 = vmatpush3.bf16.msra.mxu1 %v10081_v24  ;;  %v3628_v13 = vrot.slane %v3626_v41, 7  ;;  %v4366_v31 = vshll.u32 %v10101_v47, 16 }
 0x260   : > { %v3636_v35 = vrot.slane %v3634_v27, 7  ;;  %v4371_v20 = vshll.u32 %v10094_v29, 16  ;;  %v7526_v51 = vpop.f32.mrb[131].mxu0  ;;  %v8878_v57 = vld [vmem:[#allocation2 + $0x3c] sm:$0xfe]   ;;  %8204 = vmatprep.subr.bf16.mxu1 %v10096_v46  ;;  %v3409_v15 = vmax.f32 %v3377_v45, 0.0  ;;  %v8349_v19 = vadd.f32 %v8348_v1, %v9952_v50 }
 0x261   : > { %v10124_v34 = vsel %vm1543_vm9, %v4777_v10, %v4778_v63  ;;  %v7524_v39 = vadd.f32 %v7523_v14, %v7522_v22  ;;  %v8879_v24 = vld [vmem:[#allocation2 + $0x44] ss:$0 sps:$4 sm:$0x11]   ;;  %7741 = vmatpush3.bf16.msra.mxu0 %v8954_v11  ;;  %v3631_v44 = vor.u32 %v3629_v4, %v3628_v13  ;;  %v3632_v28 = vrot.slane %v3628_v13, 4  ;;  %v8952_v50 = vld [vmem:[#allocation7 + $0x2f8] sm:$0xff]   ;;  %v8959_v10 = vld [vmem:[#allocation7 + $0x270] sm:$0xff]  }
 0x262   : > { %v3639_v55 = vor.u32 %v3637_v42, %v3636_v35  ;;  %v3641_v47 = vrot.slane %v3636_v35, 4  ;;  %8167 = vmatmul.mubr.bf16.gmra.mrb[100].mxu1 %v10124_v34  ;;  %7742 = vmatprep.subr.bf16.mxu0 %v8958_v58  ;;  %v7167_v29 = vpack.c.bf16 %v3409_v15, %v3409_v15  ;;  %v3378_v33 = vadd.f32 %v8349_v19, %v9932_v40  ;;  %v3892_v1 = vld [vmem:[#allocation2 + $0x60] sm:$0xf]  ;;  %v8877_v15 = vld [vmem:[#allocation2 + $0x30] sm:$0xff]  }
 0x263   : > { %v4368_v53 = vrot.slane %v4366_v31, 1  ;;  %v4373_v62 = vrot.slane %v4371_v20, 1  ;;  %8205 = vmatpush3.bf16.msra.mxu1 %v10096_v46  ;;  %v3886_v11 = vsel %vm9345_vm6, %v3631_v44, %v3885_v12  ;;  %v8360_v4 = vadd.f32 %v7524_v39, %v9860_v21  ;;  %v8881_v31 = vld [vmem:[#allocation2 + $0x44] ss:$0 sps:$4 sm:$0x11]  }
 0x264   : > { %v3640_v22 = vsel %vm9340_vm4, %v3632_v28, %v3639_v55  ;;  %v3890_v41 = vsel %vm9352_vm8, %v3641_v47, %v3889_v26  ;;  %8206 = vmatprep.subr.bf16.mxu1 %v8942_v3  ;;  %3887 = vst [vmem:[#allocation2 + $0x54] sm:$0xf] %v3886_v11  ;;  %v3643_v27 = vshrl.u32 %v7167_v29, 16  ;;  %v3646_v42 = vshll.u32 %v7167_v29, 16  ;;  %v7528_v45 = vpop.f32.mrb[132].mxu0 }
 0x265   : > { %3888 = vst [vmem:[#allocation2 + $0x58] sm:$0xf] %v3640_v22  ;;  %3891 = vst [vmem:[#allocation2 + $0x5c] sm:$0x1] %v3890_v41  ;;  %v3410_v46 = vmax.f32 %v3378_v33, 0.0  ;;  %v4369_v14 = vor.u32 %v4368_v53, %v4364_v32  ;;  %7743 = vmatpush3.bf16.msra.mxu0 %v8959_v10  ;;  %v8361_v12 = vadd.f32 %v8360_v4, %v9970_v37  ;;  %v4780_v13 = vrot.slane %v8878_v57, 1 }
 0x266   : > { %v7527_v63 = vadd.f32 %v7526_v51, %v7525_v43  ;;  %v4781_v35 = vrot.slane %v8879_v24, 1  ;;  %v7529_v26 = vpop.f32.mrb[133].mxu0  ;;  %v3645_v20 = vrot.slane %v3643_v27, 7  ;;  %v4376_v19 = vshrl.u32 %v8880_v54, 16  ;;  %v8883_v22 = vld [vmem:[#allocation2 + $0x48] sm:$0xfe]  }
 0x267   : > { %v7168_v21 = vpack.c.bf16 %v3410_v46, %v3410_v46  ;;  %v10138_v58 = vsel %vm1092_vm7, %v4369_v14, %v4373_v62  ;;  %v7531_v39 = vpop.f32.mrb[134].mxu0  ;;  %8207 = vmatpush3.bf16.msra.mxu1 %v8942_v3  ;;  %v3379_v32 = vadd.f32 %v8361_v12, %v9932_v40  ;;  %v4378_v51 = vshll.u32 %v8880_v54, 16  ;;  %v3896_v3 = vld [vmem:[#allocation2 + $0x68] sm:$0x1]  ;;  %v8962_v41 = vld [vmem:[#allocation7 + $0x400] sm:$0xff]  }
 0x268   : > { %5249 = vmatprep.mubr.bf16.mxu0 %v10138_v58  ;;  %v8368_v37 = vadd.f32 %v7527_v63, %v9867_v30  ;;  %v10144_v43 = vsel %vm1543_vm9, %v4780_v13, %v4781_v35  ;;  %v7532_v57 = vpop.f32.mrb[135].mxu0  ;;  %8208 = vmatprep.subr.bf16.mxu1 %v8952_v50  ;;  %v3648_v24 = vor.u32 %v3646_v42, %v3645_v20  ;;  %v3649_v44 = vrot.slane %v3645_v20, 4  ;;  %v8884_v30 = vld [vmem:[#allocation2 + $0x50] ss:$0 sps:$4 sm:$0x11]   ;;  %v8882_v63 = vld [vmem:[#allocation2 + $0x3c] sm:$0xff]  }
 0x269   : > { %v3651_v28 = vshrl.u32 %v7168_v21, 16  ;;  %v3654_v55 = vshll.u32 %v7168_v21, 16  ;;  %5250 = vmatmul.mubr.bf16.gmra.mrb[172].mxu0 %v8877_v15  ;;  %8170 = vmatprep.mubr.bf16.mxu1 %v10144_v43  ;;  %v3411_v47 = vmax.f32 %v3379_v32, 0.0  ;;  %v4380_v33 = vrot.slane %v4378_v51, 1  ;;  %v8885_v35 = vld [vmem:[#allocation2 + $0x48] sm:$0xff]  }
 0x26a   : > { %v8369_v29 = vadd.f32 %v8368_v37, %v9975_v17  ;;  %v4383_v53 = vshll.u32 %v8881_v31, 16  ;;  %v3893_v62 = vsel %vm9345_vm6, %v3648_v24, %v3892_v1  ;;  %v7530_v10 = vadd.f32 %v7529_v26, %v7528_v45  ;;  %v8886_v15 = vld [vmem:[#allocation2 + $0x50] ss:$0 sps:$4 sm:$0x11]   ;;  %v3899_v24 = vld [vmem:[#allocation2 + $0x6c] sm:$0xf] }
 0x26b   : > { %v3653_v54 = vrot.slane %v3651_v28, 7  ;;  %v7533_v11 = vadd.f32 %v7532_v57, %v7531_v39  ;;  %8209 = vmatpush3.bf16.msra.mxu1 %v8952_v50  ;;  %3894 = vst [vmem:[#allocation2 + $0x60] sm:$0xf] %v3893_v62  ;;  %v7169_v4 = vpack.c.bf16 %v3411_v47, %v3411_v47  ;;  %v4381_v42 = vor.u32 %v4380_v33, %v4376_v19 }
 0x26c   : > { %v3380_v27 = vadd.f32 %v8369_v29, %v9932_v40  ;;  %v4385_v46 = vrot.slane %v4383_v53, 1  ;;  %v8356_v12 = vadd.f32 %v7530_v10, %v9856_v52  ;;  %v7534_v1 = vpop.f32.mrb[136].mxu0  ;;  %7866 = vmatprep.subr.bf16.mxu1 %v8962_v41  ;;  %v4783_v37 = vrot.slane %v8883_v22, 1  ;;  %v8963_v53 = vld [vmem:[#allocation7 + $0x2b8] sm:$0xff]  }
 0x26d   : > { %v3656_v14 = vor.u32 %v3654_v55, %v3653_v54  ;;  %v3658_v17 = vrot.slane %v3653_v54, 4  ;;  %v8364_v13 = vadd.f32 %v7533_v11, %v9864_v0  ;;  %v3660_v45 = vshrl.u32 %v7169_v4, 16  ;;  %v7535_v20 = vpop.f32.mrb[137].mxu0  ;;  %v8888_v22 = vld [vmem:[#allocation2 + $0x54] sm:$0xfe]   ;;  %7744 = vmatprep.subr.bf16.mxu0 %v8963_v53 }
 0x26e   : > { %v3663_v31 = vshll.u32 %v7169_v4, 16  ;;  %v3412_v50 = vmax.f32 %v3380_v27, 0.0  ;;  %v10154_v26 = vsel %vm1092_vm7, %v4381_v42, %v4385_v46  ;;  %v8357_v52 = vadd.f32 %v8356_v12, %v9966_v38  ;;  %v7537_v19 = vpop.f32.mrb[138].mxu0 }
 0x26f   : > { %v3657_v40 = vsel %vm9340_vm4, %v3649_v44, %v3656_v14  ;;  %v3897_v21 = vsel %vm9352_vm8, %v3658_v17, %v3896_v3  ;;  %5257 = vmatprep.mubr.bf16.mxu0 %v10154_v26  ;;  %v8365_v0 = vadd.f32 %v8364_v13, %v9972_v5  ;;  %v3662_v39 = vrot.slane %v3660_v45, 7  ;;  %v7538_v57 = vpop.f32.mrb[139].mxu0  ;;  %v10166_v44 = vld [vmem:[%s10866_s2] ss:$0 sm:$0xff] }
 0x270   : > { %3895 = vst [vmem:[#allocation2 + $0x64] sm:$0xf] %v3657_v40  ;;  %3898 = vst [vmem:[#allocation2 + $0x68] sm:$0x1] %v3897_v21  ;;  %v7170_v32 = vpack.c.bf16 %v3412_v50, %v3412_v50  ;;  %v4784_v51 = vrot.slane %v8884_v30, 1  ;;  %v3381_v28 = vadd.f32 %v10166_v44, %v8357_v52  ;;  %v4388_v5 = vshrl.u32 %v8885_v35, 16 }
 0x271   : > { %5258 = vmatmul.mubr.bf16.gmra.mrb[176].mxu0 %v8882_v63  ;;  %v3382_v38 = vadd.f32 %v10166_v44, %v8365_v0  ;;  %v4390_v55 = vshll.u32 %v8885_v35, 16  ;;  %v3665_v3 = vor.u32 %v3663_v31, %v3662_v39  ;;  %v3666_v47 = vrot.slane %v3662_v39, 4  ;;  %v3903_v30 = vld [vmem:[#allocation2 + $0x74] sm:$0x1] }
 0x272   : > { %v3668_v29 = vshrl.u32 %v7170_v32, 16  ;;  %v3671_v33 = vshll.u32 %v7170_v32, 16  ;;  %v3413_v62 = vmax.f32 %v3381_v28, 0.0  ;;  %v10171_v10 = vsel %vm1543_vm9, %v4783_v37, %v4784_v51  ;;  %v8889_v63 = vld [vmem:[#allocation2 + $0x5c] ss:$0 sps:$4 sm:$0x11]  }
 0x273   : > { %v3414_v54 = vmax.f32 %v3382_v38, 0.0  ;;  %v4392_v11 = vrot.slane %v4390_v55, 1  ;;  %v3900_v41 = vsel %vm9345_vm6, %v3665_v3, %v3899_v24  ;;  %8171 = vmatmul.mubr.bf16.gmra.mrb[104].mxu1 %v10171_v10  ;;  %v4395_v27 = vshll.u32 %v8886_v15, 16  ;;  %v8890_v40 = vld [vmem:[#allocation2 + $0x54] sm:$0xff]   ;;  %v8887_v28 = vld [vmem:[#allocation2 + $0x48] sm:$0xff]  }
 0x274   : > { %v3670_v4 = vrot.slane %v3668_v29, 7  ;;  %v7536_v42 = vadd.f32 %v7535_v20, %v7534_v1  ;;  %3901 = vst [vmem:[#allocation2 + $0x6c] sm:$0xf] %v3900_v41  ;;  %v7171_v46 = vpack.c.bf16 %v3413_v62, %v3413_v62  ;;  %v7539_v12 = vadd.f32 %v7538_v57, %v7537_v19  ;;  %v7540_v13 = vpop.f32.mrb[140].mxu0  ;;  %v8965_v52 = vld [vmem:[#allocation7 + $0x278] sm:$0xff]  }
 0x275   : > { %v7172_v14 = vpack.c.bf16 %v3414_v54, %v3414_v54  ;;  %v4393_v17 = vor.u32 %v4392_v11, %v4388_v5  ;;  %v4397_v31 = vrot.slane %v4395_v27, 1  ;;  %v7541_v21 = vpop.f32.mrb[141].mxu0  ;;  %v8891_v20 = vld [vmem:[#allocation2 + $0x5c] ss:$0 sps:$4 sm:$0x11]   ;;  %7745 = vmatpush3.bf16.msra.mxu0 %v8965_v52  ;;  %v4787_v53 = vrot.slane %v8889_v63, 1 }
 0x276   : > { %v3673_v35 = vor.u32 %v3671_v33, %v3670_v4  ;;  %v3675_v45 = vrot.slane %v3670_v4, 4  ;;  %v8376_v50 = vadd.f32 %v7536_v42, %v9876_v6  ;;  %v3677_v0 = vshrl.u32 %v7171_v46, 16  ;;  %v7543_v32 = vpop.f32.mrb[142].mxu0  ;;  %v3906_v51 = vld [vmem:[#allocation2 + $0x78] sm:$0xf] }
 0x277   : > { %v3680_v39 = vshll.u32 %v7171_v46, 16  ;;  %v3685_v15 = vshrl.u32 %v7172_v14, 16  ;;  %v3688_v1 = vshll.u32 %v7172_v14, 16  ;;  %v3910_v57 = vld [vmem:[#allocation2 + $0x80] sm:$0x1]  ;;  %v10182_v24 = vsel %vm1092_vm7, %v4393_v17, %v4397_v31  ;;  %v7544_v38 = vpop.f32.mrb[143].mxu0 }
 0x278   : > { %v3674_v37 = vsel %vm9340_vm4, %v3666_v47, %v3673_v35  ;;  %v3904_v19 = vsel %vm9352_vm8, %v3675_v45, %v3903_v30  ;;  %v8377_v6 = vadd.f32 %v8376_v50, %v9994_v49  ;;  %v3679_v5 = vrot.slane %v3677_v0, 7  ;;  %5265 = vmatprep.mubr.bf16.mxu0 %v10182_v24  ;;  %v8893_v29 = vld [vmem:[#allocation2 + $0x60] sm:$0xfe]   ;;  %v8894_v49 = vld [vmem:[#allocation2 + $0x68] ss:$0 sps:$4 sm:$0x11]  }
 0x279   : > { %3902 = vst [vmem:[#allocation2 + $0x70] sm:$0xf] %v3674_v37  ;;  %3905 = vst [vmem:[#allocation2 + $0x74] sm:$0x1] %v3904_v19  ;;  %v3687_v55 = vrot.slane %v3685_v15, 7  ;;  %v8384_v3 = vadd.f32 %v7539_v12, %v9883_v7  ;;  %v4786_v47 = vrot.slane %v8888_v22, 1  ;;  %5266 = vmatmul.mubr.bf16.gmra.mrb[180].mxu0 %v8887_v28 }
 0x27a   : > { %v3383_v33 = vadd.f32 %v10166_v44, %v8377_v6  ;;  %v4400_v30 = vshrl.u32 %v8890_v40, 16  ;;  %v4402_v62 = vshll.u32 %v8890_v40, 16  ;;  %v3682_v54 = vor.u32 %v3680_v39, %v3679_v5  ;;  %v10192_v22 = vld [vmem:[#allocation2 + $0x60] sm:$0xff]  }
 0x27b   : > { %v3683_v11 = vrot.slane %v3679_v5, 4  ;;  %v3690_v41 = vor.u32 %v3688_v1, %v3687_v55  ;;  %v3692_v4 = vrot.slane %v3687_v55, 4  ;;  %v8385_v42 = vadd.f32 %v8384_v3, %v10002_v2  ;;  %v8896_v2 = vld [vmem:[#allocation2 + $0x68] ss:$0 sps:$4 sm:$0x11]   ;;  %v10206_v5 = vld [vmem:[#allocation2 + $0x54] sm:$0xff]  }
 0x27c   : > { %v3415_v27 = vmax.f32 %v3383_v33, 0.0  ;;  %v10190_v46 = vsel %vm1543_vm9, %v4786_v47, %v4787_v53  ;;  %v4404_v7 = vrot.slane %v4402_v62, 1  ;;  %v3907_v14 = vsel %vm9345_vm6, %v3682_v54, %v3906_v51  ;;  %v7546_v35 = vpop.f32.mrb[144].mxu0 }
 0x27d   : > { %v3691_v17 = vsel %vm9340_vm4, %v3683_v11, %v3690_v41  ;;  %v3911_v12 = vsel %vm9352_vm8, %v3692_v4, %v3910_v57  ;;  %8174 = vmatprep.mubr.bf16.mxu1 %v10190_v46  ;;  %v4407_v63 = vshll.u32 %v8891_v20, 16  ;;  %3908 = vst [vmem:[#allocation2 + $0x78] sm:$0xf] %v3907_v14  ;;  %v3384_v31 = vadd.f32 %v10166_v44, %v8385_v42  ;;  %v7547_v52 = vpop.f32.mrb[145].mxu0 }
 0x27e   : > { %3909 = vst [vmem:[#allocation2 + $0x7c] sm:$0xf] %v3691_v17  ;;  %3912 = vst [vmem:[#allocation2 + $0x80] sm:$0x1] %v3911_v12  ;;  %v7173_v45 = vpack.c.bf16 %v3415_v27, %v3415_v27  ;;  %v4405_v50 = vor.u32 %v4404_v7, %v4400_v30  ;;  %v7542_v40 = vadd.f32 %v7541_v21, %v7540_v13  ;;  %v4789_v15 = vrot.slane %v8893_v29, 1  ;;  %v7549_v37 = vpop.f32.mrb[146].mxu0 }
 0x27f   : > { %v4409_v0 = vrot.slane %v4407_v63, 1  ;;  %v7545_v39 = vadd.f32 %v7544_v38, %v7543_v32  ;;  %v4790_v1 = vrot.slane %v8894_v49, 1  ;;  %v3416_v57 = vmax.f32 %v3384_v31, 0.0  ;;  %v7550_v6 = vpop.f32.mrb[147].mxu0  ;;  %v3913_v38 = vld [vmem:[#allocation2 + $0x84] sm:$0xf] }
 0x280   : > { %v3694_v19 = vshrl.u32 %v7173_v45, 16  ;;  %v3697_v51 = vshll.u32 %v7173_v45, 16  ;;  %v8372_v20 = vadd.f32 %v7542_v40, %v9872_v18  ;;  %v4412_v21 = vshrl.u32 %v10192_v22, 16  ;;  %v8898_v29 = vld [vmem:[#allocation2 + $0x6c] sm:$0xfe]   ;;  %v10952_v63 = vld [vmem:[#allocation18_spill] sm:$0xff] }
 0x281   : > { %v10204_v28 = vsel %vm1092_vm7, %v4405_v50, %v4409_v0  ;;  %v8380_v55 = vadd.f32 %v7545_v39, %v9880_v59  ;;  %v10210_v13 = vsel %vm1543_vm9, %v4789_v15, %v4790_v1  ;;  %v7174_v3 = vpack.c.bf16 %v3416_v57, %v3416_v57  ;;  %v10951_v59 = vld [vmem:[#allocation20_spill] sm:$0xff]  ;;  %v3917_v27 = vld [vmem:[#allocation2 + $0x8c] sm:$0x1] }
 0x282   : > { %v3696_v32 = vrot.slane %v3694_v19, 7  ;;  %5273 = vmatprep.mubr.bf16.mxu0 %v10204_v28  ;;  %v8373_v18 = vadd.f32 %v8372_v20, %v9989_v16  ;;  %8175 = vmatmul.mubr.bf16.gmra.mrb[108].mxu1 %v10210_v13  ;;  %v4414_v47 = vshll.u32 %v10192_v22, 16  ;;  %v4419_v53 = vshll.u32 %v8896_v2, 16  ;;  %v8899_v4 = vld [vmem:[#allocation2 + $0x74] ss:$0 sps:$4 sm:$0x11]  }
 0x283   : > { %5274 = vmatmul.mubr.bf16.gmra.mrb[184].mxu0 %v10206_v5  ;;  %v8381_v33 = vadd.f32 %v8380_v55, %v10951_v59  ;;  %v7548_v30 = vadd.f32 %v7547_v52, %v7546_v35  ;;  %v7551_v62 = vadd.f32 %v7550_v6, %v7549_v37  ;;  %v3702_v11 = vshrl.u32 %v7174_v3, 16  ;;  %v10953_v2 = vld [vmem:[#allocation21_spill] sm:$0xff]  ;;  %v10226_v19 = vld [vmem:[#allocation2 + $0x60] sm:$0xff]   ;;  %v10229_v57 = vld [vmem:[#allocation2 + $0x6c] sm:$0xff]  }
 0x284   : > { %v3699_v49 = vor.u32 %v3697_v51, %v3696_v32  ;;  %v3700_v54 = vrot.slane %v3696_v32, 4  ;;  %v3705_v41 = vshll.u32 %v7174_v3, 16  ;;  %v3385_v16 = vadd.f32 %v10166_v44, %v8373_v18  ;;  %v7552_v14 = vpop.f32.mrb[148].mxu0 }
 0x285   : > { %v3386_v42 = vadd.f32 %v10166_v44, %v8381_v33  ;;  %v4416_v7 = vrot.slane %v4414_v47, 1  ;;  %v4421_v22 = vrot.slane %v4419_v53, 1  ;;  %v3704_v12 = vrot.slane %v3702_v11, 7  ;;  %v7553_v31 = vpop.f32.mrb[149].mxu0  ;;  %v3920_v53 = vld [vmem:[#allocation2 + $0x90] sm:$0xf] }
 0x286   : > { %v3914_v17 = vsel %vm9345_vm6, %v3699_v49, %v3913_v38  ;;  %v8392_v35 = vadd.f32 %v7548_v30, %v10952_v63  ;;  %v8400_v45 = vadd.f32 %v7551_v62, %v10953_v2  ;;  %v3417_v50 = vmax.f32 %v3385_v16, 0.0  ;;  %v7555_v39 = vpop.f32.mrb[150].mxu0  ;;  %v3924_v30 = vld [vmem:[#allocation2 + $0x98] sm:$0x1] }
 0x287   : > { %3915 = vst [vmem:[#allocation2 + $0x84] sm:$0xf] %v3914_v17  ;;  %v3418_v40 = vmax.f32 %v3386_v42, 0.0  ;;  %v4417_v52 = vor.u32 %v4416_v7, %v4412_v21  ;;  %v4792_v0 = vrot.slane %v8898_v29, 1  ;;  %v3707_v15 = vor.u32 %v3705_v41, %v3704_v12  ;;  %v7556_v20 = vpop.f32.mrb[151].mxu0 }
 0x288   : > { %v3709_v1 = vrot.slane %v3704_v12, 4  ;;  %v8393_v37 = vadd.f32 %v8392_v35, %v10017_v8  ;;  %v8401_v51 = vadd.f32 %v8400_v45, %v10030_v56  ;;  %v7175_v6 = vpack.c.bf16 %v3417_v50, %v3417_v50  ;;  %v8902_v21 = vld [vmem:[#allocation2 + $0x74] ss:$0 sps:$4 sm:$0x11]   ;;  %v8904_v42 = vld [vmem:[#allocation2 + $0x78] sm:$0xfe]  }
 0x289   : > { %v7176_v55 = vpack.c.bf16 %v3418_v40, %v3418_v40  ;;  %v10232_v32 = vsel %vm1092_vm7, %v4417_v52, %v4421_v22  ;;  %v4793_v38 = vrot.slane %v8899_v4, 1  ;;  %v3708_v3 = vsel %vm9340_vm4, %v3700_v54, %v3707_v15  ;;  %v8905_v7 = vld [vmem:[#allocation2 + $0x80] ss:$0 sps:$4 sm:$0x11]  }
 0x28a   : > { %v3918_v8 = vsel %vm9352_vm8, %v3709_v1, %v3917_v27  ;;  %5281 = vmatprep.mubr.bf16.mxu0 %v10232_v32  ;;  %v3387_v56 = vadd.f32 %v10166_v44, %v8393_v37  ;;  %v3388_v18 = vadd.f32 %v10166_v44, %v8401_v51  ;;  %3916 = vst [vmem:[#allocation2 + $0x88] sm:$0xf] %v3708_v3  ;;  %v3711_v47 = vshrl.u32 %v7175_v6, 16 }
 0x28b   : > { %3919 = vst [vmem:[#allocation2 + $0x8c] sm:$0x1] %v3918_v8  ;;  %v3714_v29 = vshll.u32 %v7175_v6, 16  ;;  %v3719_v59 = vshrl.u32 %v7176_v55, 16  ;;  %v3722_v33 = vshll.u32 %v7176_v55, 16  ;;  %5282 = vmatmul.mubr.bf16.gmra.mrb[188].mxu0 %v10226_v19  ;;  %v10243_v54 = vsel %vm1543_vm9, %v4792_v0, %v4793_v38 }
 0x28c   : > { %v3419_v62 = vmax.f32 %v3387_v56, 0.0  ;;  %v3420_v49 = vmax.f32 %v3388_v18, 0.0  ;;  %v4424_v11 = vshrl.u32 %v10229_v57, 16  ;;  %v3713_v41 = vrot.slane %v3711_v47, 7  ;;  %8178 = vmatprep.mubr.bf16.mxu1 %v10243_v54  ;;  %v10248_v22 = vpop.f32.mrb[152].mxu0  ;;  %v10954_v56 = vld [vmem:[#allocation16_spill] sm:$0xff] }
 0x28d   : > { %v3721_v4 = vrot.slane %v3719_v59, 7  ;;  %v4426_v27 = vshll.u32 %v10229_v57, 16  ;;  %v4431_v16 = vshll.u32 %v8902_v21, 16  ;;  %v7554_v63 = vadd.f32 %v7553_v31, %v7552_v14  ;;  %v7559_v2 = vpop.f32.mrb[153].mxu0  ;;  %v3927_v31 = vld [vmem:[#allocation2 + $0x9c] sm:$0xf] }
 0x28e   : > { %v7177_v17 = vpack.c.bf16 %v3419_v62, %v3419_v62  ;;  %v7178_v12 = vpack.c.bf16 %v3420_v49, %v3420_v49  ;;  %v7557_v35 = vadd.f32 %v7556_v20, %v7555_v39  ;;  %v3716_v45 = vor.u32 %v3714_v29, %v3713_v41  ;;  %v7561_v0 = vpop.f32.mrb[154].mxu0  ;;  %v3931_v39 = vld [vmem:[#allocation2 + $0xa4] sm:$0x1]  ;;  %v8908_v38 = vld [vmem:[#allocation2 + $0x80] ss:$0 sps:$4 sm:$0x11]  }
 0x28f   : > { %v3717_v50 = vrot.slane %v3713_v41, 4  ;;  %v3724_v40 = vor.u32 %v3722_v33, %v3721_v4  ;;  %v3726_v52 = vrot.slane %v3721_v4, 4  ;;  %v7562_v57 = vpop.f32.mrb[155].mxu0  ;;  %v4428_v20 = vrot.slane %v4426_v27, 1  ;;  %v8907_v47 = vld [vmem:[#allocation2 + $0x78] sm:$0xff]  }
 0x290   : > { %v3728_v15 = vshrl.u32 %v7177_v17, 16  ;;  %v3731_v1 = vshll.u32 %v7177_v17, 16  ;;  %v3736_v37 = vshrl.u32 %v7178_v12, 16  ;;  %v3739_v51 = vshll.u32 %v7178_v12, 16  ;;  %v10955_v59 = vld [vmem:[#allocation17_spill] sm:$0xff] }
 0x291   : > { %v3921_v6 = vsel %vm9345_vm6, %v3716_v45, %v3920_v53  ;;  %v3725_v55 = vsel %vm9340_vm4, %v3717_v50, %v3724_v40  ;;  %v3925_v14 = vsel %vm9352_vm8, %v3726_v52, %v3924_v30  ;;  %v4433_v8 = vrot.slane %v4431_v16, 1  ;;  %v8910_v49 = vld [vmem:[#allocation2 + $0x84] sm:$0xfe]   ;;  %v10956_v45 = vld [vmem:[#allocation28_spill] sm:$0xff] }
 0x292   : > { %3922 = vst [vmem:[#allocation2 + $0x90] sm:$0xf] %v3921_v6  ;;  %3923 = vst [vmem:[#allocation2 + $0x94] sm:$0xf] %v3725_v55  ;;  %v3730_v21 = vrot.slane %v3728_v15, 7  ;;  %v3738_v3 = vrot.slane %v3736_v37, 7  ;;  %v8388_v18 = vadd.f32 %v7554_v63, %v10954_v56  ;;  %v4429_v29 = vor.u32 %v4428_v20, %v4424_v11 }
 0x293   : > { %3926 = vst [vmem:[#allocation2 + $0x98] sm:$0x1] %v3925_v14  ;;  %v8396_v33 = vadd.f32 %v7557_v35, %v10955_v59  ;;  %v4795_v53 = vrot.slane %v8904_v42, 1  ;;  %v4796_v62 = vrot.slane %v8905_v7, 1  ;;  %v10262_v16 = vld [vmem:[#allocation2 + $0x6c] sm:$0xff]   ;;  %v4436_v15 = vshrl.u32 %v8907_v47, 16 }
 0x294   : > { %v3733_v30 = vor.u32 %v3731_v1, %v3730_v21  ;;  %v3734_v41 = vrot.slane %v3730_v21, 4  ;;  %v3741_v4 = vor.u32 %v3739_v51, %v3738_v3  ;;  %v3743_v27 = vrot.slane %v3738_v3, 4  ;;  %v8911_v17 = vld [vmem:[#allocation2 + $0x8c] ss:$0 sps:$4 sm:$0x11]   ;;  %v7564_v42 = vpop.f32.mrb[156].mxu0 }
 0x295   : > { %v10259_v12 = vsel %vm1092_vm7, %v4429_v29, %v4433_v8  ;;  %v8389_v50 = vadd.f32 %v8388_v18, %v10956_v45  ;;  %v10957_v63 = vld [vmem:[#allocation27_spill] sm:$0xff]  ;;  %v10266_v11 = vsel %vm1543_vm9, %v4795_v53, %v4796_v62  ;;  %v7565_v37 = vpop.f32.mrb[157].mxu0  ;;  %v4438_v55 = vshll.u32 %v8907_v47, 16  ;;  %v10958_v53 = vld [vmem:[#allocation26_spill] sm:$0xff] }
 0x296   : > { %v8397_v40 = vadd.f32 %v8396_v33, %v10957_v63  ;;  %v3928_v7 = vsel %vm9345_vm6, %v3733_v30, %v3927_v31  ;;  %v3742_v35 = vsel %vm9340_vm4, %v3734_v41, %v3741_v4  ;;  %v3932_v52 = vsel %vm9352_vm8, %v3743_v27, %v3931_v39  ;;  %5289 = vmatprep.mubr.bf16.mxu0 %v10259_v12  ;;  %v8913_v1 = vld [vmem:[#allocation2 + $0x84] sm:$0xff]   ;;  %v7567_v31 = vpop.f32.mrb[158].mxu0  ;;  %v8914_v8 = vld [vmem:[#allocation2 + $0x8c] ss:$0 sps:$4 sm:$0x11]  }
 0x297   : > { %8179 = vmatmul.mubr.bf16.gmra.mrb[112].mxu1 %v10266_v11  ;;  %3929 = vst [vmem:[#allocation2 + $0x9c] sm:$0xf] %v3928_v7  ;;  %3930 = vst [vmem:[#allocation2 + $0xa0] sm:$0xf] %v3742_v35  ;;  %v3389_v51 = vadd.f32 %v10166_v44, %v8389_v50  ;;  %5290 = vmatmul.mubr.bf16.gmra.mrb[192].mxu0 %v10262_v16  ;;  %v4443_v14 = vshll.u32 %v8908_v38, 16  ;;  %v7560_v39 = vadd.f32 %v7559_v2, %v10248_v22  ;;  %v7568_v56 = vpop.f32.mrb[159].mxu0 }
 0x298   : > { %3933 = vst [vmem:[#allocation2 + $0xa4] sm:$0x1] %v3932_v52  ;;  %v3390_v6 = vadd.f32 %v10166_v44, %v8397_v40  ;;  %v7563_v20 = vadd.f32 %v7562_v57, %v7561_v0  ;;  %v4798_v21 = vrot.slane %v8910_v49, 1  ;;  %v4799_v3 = vrot.slane %v8911_v17, 1  ;;  %v10959_v30 = vld [vmem:[#allocation23_spill] sm:$0xff] }
 0x299   : > { %v3421_v18 = vmax.f32 %v3389_v51, 0.0  ;;  %v4440_v59 = vrot.slane %v4438_v55, 1  ;;  %v4445_v33 = vrot.slane %v4443_v14, 1  ;;  %v8408_v62 = vadd.f32 %v7560_v39, %v10958_v53  ;;  %v3934_v7 = vld [vmem:[#allocation2 + $0xa8] sm:$0xf]  ;;  %v10292_v51 = vld [vmem:[#allocation2 + $0x78] sm:$0xff]  }
 0x29a   : > { %v3422_v29 = vmax.f32 %v3390_v6, 0.0  ;;  %v8416_v41 = vadd.f32 %v7563_v20, %v10959_v30  ;;  %v10283_v4 = vsel %vm1543_vm9, %v4798_v21, %v4799_v3  ;;  %v4448_v38 = vshrl.u32 %v8913_v1, 16  ;;  %v3938_v35 = vld [vmem:[#allocation2 + $0xb0] sm:$0x1] }
 0x29b   : > { %v7179_v47 = vpack.c.bf16 %v3421_v18, %v3421_v18  ;;  %v4441_v22 = vor.u32 %v4440_v59, %v4436_v15  ;;  %8182 = vmatprep.mubr.bf16.mxu1 %v10283_v4  ;;  %v4450_v2 = vshll.u32 %v8913_v1, 16  ;;  %v8409_v0 = vadd.f32 %v8408_v62, %v10061_v23  ;;  %v8917_v14 = vld [vmem:[#allocation2 + $0x98] ss:$0 sps:$4 sm:$0x11]  }
 0x29c   : > { %v7180_v27 = vpack.c.bf16 %v3422_v29, %v3422_v29  ;;  %v8417_v57 = vadd.f32 %v8416_v41, %v10077_v9  ;;  %v4455_v49 = vshll.u32 %v8914_v8, 16  ;;  %v7566_v17 = vadd.f32 %v7565_v37, %v7564_v42  ;;  %v10960_v37 = vld [vmem:[#allocation22_spill] sm:$0xff] }
 0x29d   : > { %v3745_v45 = vshrl.u32 %v7179_v47, 16  ;;  %v3748_v50 = vshll.u32 %v7179_v47, 16  ;;  %v10289_v52 = vsel %vm1092_vm7, %v4441_v22, %v4445_v33  ;;  %v3391_v15 = vadd.f32 %v10166_v44, %v8409_v0  ;;  %v8916_v33 = vld [vmem:[#allocation2 + $0x90] sm:$0xfe]  }
 0x29e   : > { %v3753_v63 = vshrl.u32 %v7180_v27, 16  ;;  %v3756_v40 = vshll.u32 %v7180_v27, 16  ;;  %v3392_v1 = vadd.f32 %v10166_v44, %v8417_v57  ;;  %v4452_v23 = vrot.slane %v4450_v2, 1  ;;  %5297 = vmatprep.mubr.bf16.mxu0 %v10289_v52  ;;  %v8919_v47 = vld [vmem:[#allocation2 + $0x90] sm:$0xff]   ;;  %v10351_v36 = vld [vmem:[#allocation2 + $0x9c] sm:$0xff]  }
 0x29f   : > { %v3747_v6 = vrot.slane %v3745_v45, 7  ;;  %v4457_v42 = vrot.slane %v4455_v49, 1  ;;  %v8404_v55 = vadd.f32 %v7566_v17, %v10960_v37  ;;  %v3423_v39 = vmax.f32 %v3391_v15, 0.0  ;;  %5298 = vmatmul.mubr.bf16.gmra.mrb[196].mxu0 %v10292_v51  ;;  %v8920_v27 = vld [vmem:[#allocation2 + $0x98] ss:$0 sps:$4 sm:$0x11]  }
 0x2a0   : > { %v3755_v9 = vrot.slane %v3753_v63, 7  ;;  %v3424_v20 = vmax.f32 %v3392_v1, 0.0  ;;  %v4453_v21 = vor.u32 %v4452_v23, %v4448_v38  ;;  %v7569_v3 = vadd.f32 %v7568_v56, %v7567_v31  ;;  %v10961_v38 = vld [vmem:[#allocation19_spill] sm:$0xff]  ;;  %v3941_v49 = vld [vmem:[#allocation2 + $0xb4] sm:$0xf] }
 0x2a1   : > { %v3750_v8 = vor.u32 %v3748_v50, %v3747_v6  ;;  %v3751_v18 = vrot.slane %v3747_v6, 4  ;;  %v7181_v53 = vpack.c.bf16 %v3423_v39, %v3423_v39  ;;  %v8405_v41 = vadd.f32 %v8404_v55, %v10052_v60  ;;  %v3945_v17 = vld [vmem:[#allocation2 + $0xbc] sm:$0x1]  ;;  %v10311_v50 = vld [vmem:[#allocation2 + $0x84] sm:$0xff]  }
 0x2a2   : > { %v3758_v29 = vor.u32 %v3756_v40, %v3755_v9  ;;  %v3760_v59 = vrot.slane %v3755_v9, 4  ;;  %v7182_v62 = vpack.c.bf16 %v3424_v20, %v3424_v20  ;;  %v10299_v30 = vsel %vm1092_vm7, %v4453_v21, %v4457_v42  ;;  %v10962_v63 = vld [vmem:[#allocation15_spill] sm:$0xff]  ;;  %v8922_v9 = vld [vmem:[#allocation2 + $0x9c] sm:$0xfe]  }
 0x2a3   : > { %v3935_v22 = vsel %vm9345_vm6, %v3750_v8, %v3934_v7  ;;  %5305 = vmatprep.mubr.bf16.mxu0 %v10299_v30  ;;  %v8412_v2 = vadd.f32 %v7569_v3, %v10961_v38  ;;  %v3762_v0 = vshrl.u32 %v7181_v53, 16  ;;  %v3765_v60 = vshll.u32 %v7181_v53, 16  ;;  %v8923_v20 = vld [vmem:[#allocation2 + $0xa4] ss:$0 sps:$4 sm:$0x11]  }
 0x2a4   : > { %v3759_v31 = vsel %vm9340_vm4, %v3751_v18, %v3758_v29  ;;  %v3939_v56 = vsel %vm9352_vm8, %v3760_v59, %v3938_v35  ;;  %3936 = vst [vmem:[#allocation2 + $0xa8] sm:$0xf] %v3935_v22  ;;  %v3770_v57 = vshrl.u32 %v7182_v62, 16  ;;  %v3393_v45 = vadd.f32 %v10166_v44, %v8405_v41  ;;  %v8926_v29 = vld [vmem:[#allocation2 + $0xa4] ss:$0 sps:$4 sm:$0x11]  }
 0x2a5   : > { %3937 = vst [vmem:[#allocation2 + $0xac] sm:$0xf] %v3759_v31  ;;  %3940 = vst [vmem:[#allocation2 + $0xb0] sm:$0x1] %v3939_v56  ;;  %v8413_v40 = vadd.f32 %v8412_v2, %v10962_v63  ;;  %v4801_v7 = vrot.slane %v8916_v33, 1  ;;  %v4802_v35 = vrot.slane %v8917_v14, 1 }
 0x2a6   : > { %v3764_v15 = vrot.slane %v3762_v0, 7  ;;  %v3772_v1 = vrot.slane %v3770_v57, 7  ;;  %v3773_v23 = vshll.u32 %v7182_v62, 16  ;;  %v4462_v6 = vshll.u32 %v8919_v47, 16  ;;  %v8925_v14 = vld [vmem:[#allocation2 + $0x9c] sm:$0xff]  }
 0x2a7   : > { %v3425_v42 = vmax.f32 %v3393_v45, 0.0  ;;  %v3394_v37 = vadd.f32 %v10166_v44, %v8413_v40  ;;  %v10316_v55 = vsel %vm1543_vm9, %v4801_v7, %v4802_v35  ;;  %v4467_v39 = vshll.u32 %v8920_v27, 16  ;;  %5306 = vmatmul.mubr.bf16.gmra.mrb[200].mxu0 %v10311_v50 }
 0x2a8   : > { %v3767_v21 = vor.u32 %v3765_v60, %v3764_v15  ;;  %v3768_v3 = vrot.slane %v3764_v15, 4  ;;  %v3775_v8 = vor.u32 %v3773_v23, %v3772_v1  ;;  %v3777_v18 = vrot.slane %v3772_v1, 4  ;;  %8183 = vmatmul.mubr.bf16.gmra.mrb[116].mxu1 %v10316_v55  ;;  %v10326_v60 = vld [vmem:[#allocation2 + $0x90] sm:$0xff]   ;;  %v3952_v23 = vld [vmem:[#allocation2 + $0xc8] sm:$0x1] }
 0x2a9   : > { %v7183_v59 = vpack.c.bf16 %v3425_v42, %v3425_v42  ;;  %v3426_v33 = vmax.f32 %v3394_v37, 0.0  ;;  %v4460_v53 = vshrl.u32 %v8919_v47, 16  ;;  %v4464_v62 = vrot.slane %v4462_v6, 1  ;;  %v3948_v47 = vld [vmem:[#allocation2 + $0xc0] sm:$0xf] }
 0x2aa   : > { %v3942_v44 = vsel %vm9345_vm6, %v3767_v21, %v3941_v49  ;;  %v3776_v41 = vsel %vm9340_vm4, %v3768_v3, %v3775_v8  ;;  %v3946_v27 = vsel %vm9352_vm8, %v3777_v18, %v3945_v17  ;;  %v4804_v22 = vrot.slane %v8922_v9, 1 }
 0x2ab   : > { %3943 = vst [vmem:[#allocation2 + $0xb4] sm:$0xf] %v3942_v44  ;;  %3944 = vst [vmem:[#allocation2 + $0xb8] sm:$0xf] %v3776_v41  ;;  %v3779_v31 = vshrl.u32 %v7183_v59, 16  ;;  %v7184_v56 = vpack.c.bf16 %v3426_v33, %v3426_v33  ;;  %v4465_v38 = vor.u32 %v4464_v62, %v4460_v53  ;;  %v4469_v2 = vrot.slane %v4467_v39, 1 }
 0x2ac   : > { %3947 = vst [vmem:[#allocation2 + $0xbc] sm:$0x1] %v3946_v27  ;;  %v3782_v0 = vshll.u32 %v7183_v59, 16  ;;  %v4805_v57 = vrot.slane %v8923_v20, 1  ;;  %v4474_v49 = vshll.u32 %v8925_v14, 16  ;;  %v4479_v45 = vshll.u32 %v8926_v29, 16 }
 0x2ad   : > { %v3781_v63 = vrot.slane %v3779_v31, 7  ;;  %v3787_v40 = vshrl.u32 %v7184_v56, 16  ;;  %v10329_v7 = vsel %vm1092_vm7, %v4465_v38, %v4469_v2  ;;  %v4472_v17 = vshrl.u32 %v8925_v14, 16  ;;  %v8930_v35 = vld [vmem:[#allocation2 + $0xa8] sm:$0xfe]  }
 0x2ae   : > { %v8935_v15 = vld [vmem:[#allocation2 + $0xa8] sm:$0xff]   ;;  %v3790_v1 = vshll.u32 %v7184_v56, 16  ;;  %5313 = vmatprep.mubr.bf16.mxu0 %v10329_v7  ;;  %v10333_v6 = vsel %vm1543_vm9, %v4804_v22, %v4805_v57  ;;  %v4476_v9 = vrot.slane %v4474_v49, 1  ;;  %v4481_v42 = vrot.slane %v4479_v45, 1 }
 0x2af   : > { %v8931_v37 = vld [vmem:[#allocation2 + $0xb0] ss:$0 sps:$4 sm:$0x11]   ;;  %v3784_v39 = vor.u32 %v3782_v0, %v3781_v63  ;;  %v3785_v20 = vrot.slane %v3781_v63, 4  ;;  %v3789_v21 = vrot.slane %v3787_v40, 7  ;;  %8186 = vmatprep.mubr.bf16.mxu1 %v10333_v6  ;;  %v4807_v3 = vrot.slane %v8930_v35, 1  ;;  %5314 = vmatmul.mubr.bf16.gmra.mrb[204].mxu0 %v10326_v60 }
 0x2b0   : > { %v4477_v8 = vor.u32 %v4476_v9, %v4472_v17  ;;  %v4808_v18 = vrot.slane %v8931_v37, 1  ;;  %v4484_v14 = vshrl.u32 %v8935_v15, 16  ;;  %v8936_v53 = vld [vmem:[#allocation2 + $0xb0] ss:$0 sps:$4 sm:$0x11]   ;;  %v4486_v62 = vshll.u32 %v8935_v15, 16 }
 0x2b1   : > { %v3949_v29 = vsel %vm9345_vm6, %v3784_v39, %v3948_v47  ;;  %v3792_v59 = vor.u32 %v3790_v1, %v3789_v21  ;;  %v3794_v33 = vrot.slane %v3789_v21, 4  ;;  %v4491_v31 = vshll.u32 %v8936_v53, 16  ;;  %v8960_v0 = vld [vmem:[#allocation2] sm:$0xfe]  }
 0x2b2   : > { %3950 = vst [vmem:[#allocation2 + $0xc0] sm:$0xf] %v3949_v29  ;;  %v10340_v44 = vsel %vm1092_vm7, %v4477_v8, %v4481_v42  ;;  %v10343_v41 = vsel %vm1543_vm9, %v4807_v3, %v4808_v18  ;;  %v4488_v25 = vrot.slane %v4486_v62, 1  ;;  %v8940_v56 = vld [vmem:[#allocation2 + $0xb4] sm:$0xfe]   ;;  %v4765_v42 = vrot.slane %v8960_v0, 1 }
 0x2b3   : > { %v3793_v27 = vsel %vm9340_vm4, %v3785_v20, %v3792_v59  ;;  %v3953_v22 = vsel %vm9352_vm8, %v3794_v33, %v3952_v23  ;;  %5321 = vmatprep.mubr.bf16.mxu0 %v10340_v44  ;;  %8187 = vmatmul.mubr.bf16.gmra.mrb[120].mxu1 %v10343_v41  ;;  %v8941_v38 = vld [vmem:[#allocation2 + $0xbc] ss:$0 sps:$4 sm:$0x11]   ;;  %v8945_v2 = vld [vmem:[#allocation2 + $0xb4] sm:$0xff]   ;;  %v4493_v57 = vrot.slane %v4491_v31, 1  ;;  %v4810_v45 = vrot.slane %v8940_v56, 1 }
 0x2b4   : > { %3951 = vst [vmem:[#allocation2 + $0xc4] sm:$0xf] %v3793_v27  ;;  %3954 = vst [vmem:[#allocation2 + $0xc8] sm:$0x1] %v3953_v22  ;;  %v4489_v47 = vor.u32 %v4488_v25, %v4484_v14  ;;  %v4811_v48 = vrot.slane %v8941_v38, 1  ;;  %v4498_v63 = vshll.u32 %v8945_v2, 16 }
 0x2b5   : > { %v8961_v49 = vld [vmem:[#allocation2 + $0x8] ss:$0 sps:$4 sm:$0x11]   ;;  %v8946_v17 = vld [vmem:[#allocation2 + $0xbc] ss:$0 sps:$4 sm:$0x11]  }
 0x2b6   : > { %v10354_v40 = vsel %vm1092_vm7, %v4489_v47, %v4493_v57  ;;  %v10358_v35 = vsel %vm1543_vm9, %v4810_v45, %v4811_v48  ;;  %v4496_v15 = vshrl.u32 %v8945_v2, 16  ;;  %v4500_v1 = vrot.slane %v4498_v63, 1  ;;  %v8966_v18 = vld [vmem:[#allocation2] sm:$0xff]   ;;  %v10362_v14 = vld [vmem:[#allocation2 + $0xa8] sm:$0xff]   ;;  %v10374_v47 = vld [vmem:[#allocation2 + $0xb4] sm:$0xff]  }
 0x2b7   : > { %5322 = vmatmul.mubr.bf16.gmra.mrb[208].mxu0 %v10351_v36  ;;  %8190 = vmatprep.mubr.bf16.mxu1 %v10358_v35  ;;  %v4503_v23 = vshll.u32 %v8946_v17, 16  ;;  %v4766_v39 = vrot.slane %v8961_v49, 1  ;;  %v8967_v38 = vld [vmem:[#allocation2 + $0x8] ss:$0 sps:$4 sm:$0x11]   ;;  %v4318_v2 = vshll.u32 %v8966_v18, 16 }
 0x2b8   : > { %5329 = vmatprep.mubr.bf16.mxu0 %v10354_v40  ;;  %v4501_v9 = vor.u32 %v4500_v1, %v4496_v15  ;;  %v8964_v49 = vld [vmem:[#allocation7 + $0x3c0] sm:$0xff]   ;;  %v4316_v45 = vshrl.u32 %v8966_v18, 16  ;;  %v4323_v63 = vshll.u32 %v8967_v38, 16  ;;  %v8969_v17 = vld [vmem:[#allocation7 + $0x408] sm:$0xff]   ;;  %v10963_v15 = vld [vmem:[#allocation24_spill] sm:$0xff] }
 0x2b9   : > { %v4505_v20 = vrot.slane %v4503_v23, 1  ;;  %v4767_v27 = vsel %vm1543_vm9, %v4765_v42, %v4766_v39  ;;  %v4320_v48 = vrot.slane %v4318_v2, 1  ;;  %v10964_v1 = vld [vmem:[#allocation14_spill] sm:$0xff]  ;;  %v8974_v18 = vld [vmem:[#allocation7 + $0x3d8] sm:$0xff]  }
 0x2ba   : > { %v8970_v42 = vld [vmem:[#allocation7 + $0x3c8] sm:$0xff]   ;;  %v8981_v38 = vld [vmem:[#allocation7 + $0x438] sm:$0xff]  }
 0x2bb   : > { %v8955_v37 = vld [vmem:[#allocation2 + $0xc0] sm:$0xff]   ;;  %v8951_v3 = vld [vmem:[#allocation2 + $0xc8] ss:$0 sps:$4 sm:$0x11]   ;;  %v10365_v29 = vsel %vm1092_vm7, %v4501_v9, %v4505_v20  ;;  %v4321_v23 = vor.u32 %v4320_v48, %v4316_v45  ;;  %v4325_v9 = vrot.slane %v4323_v63, 1  ;;  %v9012_v2 = vld [vmem:[#allocation2 + $0xc] sm:$0xff]  }
 0x2bc   : > { %v8950_v21 = vld [vmem:[#allocation2 + $0xc0] sm:$0xfe]   ;;  %v4510_v8 = vshll.u32 %v8955_v37, 16  ;;  %v4814_v33 = vrot.slane %v8951_v3, 1  ;;  %v4508_v25 = vshrl.u32 %v8955_v37, 16  ;;  %v8971_v37 = vld [vmem:[#allocation7 + $0x410] sm:$0xff]  }
 0x2bd   : > { %v4813_v59 = vrot.slane %v8950_v21, 1  ;;  %v8956_v53 = vld [vmem:[#allocation2 + $0xc8] ss:$0 sps:$4 sm:$0x11]   ;;  %v10383_v39 = vld [vmem:[#allocation2 + $0xc0] sm:$0xff]   ;;  %v4326_v20 = vsel %vm1092_vm7, %v4321_v23, %v4325_v9  ;;  %v8973_v3 = vld [vmem:[#allocation7 + $0x418] sm:$0xff]  }
 0x2be   : > { %v4512_v62 = vrot.slane %v4510_v8, 1  ;;  %v4515_v31 = vshll.u32 %v8956_v53, 16  ;;  %v8972_v21 = vld [vmem:[#allocation7 + $0x3d0] sm:$0xff]   ;;  %v10965_v8 = vld [vmem:[#allocation29_spill] sm:$0xff]  ;;  %v8984_v23 = vld [vmem:[#allocation7 + $0x448] sm:$0xff]  }
 0x2bf   : > { %5330 = vmatmul.mubr.bf16.gmra.mrb[212].mxu0 %v10362_v14  ;;  %v10370_v22 = vsel %vm1543_vm9, %v4813_v59, %v4814_v33  ;;  %v8975_v59 = vld [vmem:[#allocation7 + $0x420] sm:$0xff]   ;;  %v8968_v33 = vld [vmem:[#allocation2] sm:$0xff]   ;;  %v9017_v9 = vld [vmem:[#allocation2 + $0x48] sm:$0xff]  }
 0x2c0   : > { %5337 = vmatprep.mubr.bf16.mxu0 %v10365_v29  ;;  %8191 = vmatmul.mubr.bf16.gmra.mrb[124].mxu1 %v10370_v22  ;;  %v4513_v56 = vor.u32 %v4512_v62, %v4508_v25  ;;  %v4517_v0 = vrot.slane %v4515_v31, 1  ;;  %v8976_v53 = vld [vmem:[#allocation7 + $0x3e0] sm:$0xff]   ;;  %v8977_v62 = vld [vmem:[#allocation7 + $0x428] sm:$0xff]   ;;  %v8979_v31 = vld [vmem:[#allocation7 + $0x430] sm:$0xff]  }
 0x2c1   : > { %8210 = vmatprep.mubr.bf16.mxu1 %v4767_v27  ;;  %v10966_v27 = vld [vmem:[#allocation25_spill] sm:$0xff]  ;;  %v8978_v25 = vld [vmem:[#allocation7 + $0x3e8] sm:$0xff]  }
 0x2c2   : > { %v10377_v57 = vsel %vm1092_vm7, %v4513_v56, %v4517_v0  ;;  %v8980_v56 = vld [vmem:[#allocation7 + $0x3f0] sm:$0xff]   ;;  %v10967_v0 = vld [vmem:[#allocation13_spill] sm:$0xff] }
 0x2c3   : > { %v8983_v45 = vld [vmem:[#allocation7 + $0x440] sm:$0xff]   ;;  %v9014_v63 = vld [vmem:[#allocation2 + $0x24] sm:$0xff]  }
 0x2c4   : > { %v9013_v48 = vld [vmem:[#allocation2 + $0x18] sm:$0xff]  }
 0x2c7   : > { %5338 = vmatmul.mubr.bf16.gmra.mrb[216].mxu0 %v10374_v47 }
 0x2c8   : > { %5345 = vmatprep.mubr.bf16.mxu0 %v10377_v57  ;;  %8211 = vmatmul.mubr.bf16.vlgmr.msra.gmra.mrb[96].mxu1 %v10963_v15  ;;  %v9016_v15 = vld [vmem:[#allocation2 + $0x3c] sm:$0xff]  }
 0x2c9   : > { %8214 = vmatprep.mubr.bf16.mxu1 %v10964_v1  ;;  %7867 = vmatpush3.bf16.msra.mxu1 %v8964_v49  ;;  %v8982_v49 = vld [vmem:[#allocation7 + $0x3f8] sm:$0xff]  }
 0x2ca   : > { %7868 = vmatprep.subr.bf16.mxu1 %v8969_v17  ;;  %v9015_v17 = vld [vmem:[#allocation2 + $0x30] sm:$0xff]  }
 0x2cd   : > { %7869 = vmatpush3.bf16.msra.mxu1 %v8970_v42  ;;  %v8985_v42 = vld [vmem:[#allocation7 + $0x450] sm:$0xff]  }
 0x2ce   : > { %7870 = vmatprep.subr.bf16.mxu1 %v8971_v37  ;;  %v8986_v37 = vld [vmem:[#allocation7 + $0x458] sm:$0xff]  }
 0x2cf   : > { %5346 = vmatmul.mubr.bf16.gmra.mrb[220].mxu0 %v10383_v39 }
 0x2d0   : > { %5691 = vmatprep.mubr.bf16.mxu0 %v4326_v20  ;;  %8215 = vmatmul.mubr.bf16.gmra.mrb[100].mxu1 %v10965_v8  ;;  %v8987_v20 = vld [vmem:[#allocation7 + $0x460] sm:$0xff]  }
 0x2d1   : > { %8218 = vmatprep.mubr.bf16.mxu1 %v10124_v34  ;;  %7871 = vmatpush3.bf16.msra.mxu1 %v8972_v21  ;;  %v8988_v21 = vld [vmem:[#allocation7 + $0x468] sm:$0xff]  }
 0x2d2   : > { %7872 = vmatprep.subr.bf16.mxu1 %v8973_v3 }
 0x2d5   : > { %7873 = vmatpush3.bf16.msra.mxu1 %v8974_v18 }
 0x2d6   : > { %7874 = vmatprep.subr.bf16.mxu1 %v8975_v59 }
 0x2d7   : > { %5692 = vmatmul.mubr.bf16.vlgmr.msra.gmra.mrb[224].mxu0 %v8968_v33 }
 0x2d8   : > { %5699 = vmatprep.mubr.bf16.mxu0 %v10966_v27  ;;  %8219 = vmatmul.mubr.bf16.gmra.mrb[104].mxu1 %v10144_v43 }
 0x2d9   : > { %8222 = vmatprep.mubr.bf16.mxu1 %v10171_v10  ;;  %7875 = vmatpush3.bf16.msra.mxu1 %v8976_v53 }
 0x2da   : > { %7876 = vmatprep.subr.bf16.mxu1 %v8977_v62 }
 0x2dd   : > { %7877 = vmatpush3.bf16.msra.mxu1 %v8978_v25 }
 0x2de   : > { %7878 = vmatprep.subr.bf16.mxu1 %v8979_v31 }
 0x2df   : > { %5700 = vmatmul.mubr.bf16.gmra.mrb[228].mxu0 %v9012_v2 }
 0x2e0   : > { %5707 = vmatprep.mubr.bf16.mxu0 %v10967_v0  ;;  %8223 = vmatmul.mubr.bf16.gmra.mrb[108].mxu1 %v10190_v46 }
 0x2e1   : > { %8226 = vmatprep.mubr.bf16.mxu1 %v10210_v13  ;;  %7879 = vmatpush3.bf16.msra.mxu1 %v8980_v56 }
 0x2e2   : > { %7880 = vmatprep.subr.bf16.mxu1 %v8981_v38 }
 0x2e5   : > { %7881 = vmatpush3.bf16.msra.mxu1 %v8982_v49 }
 0x2e6   : > { %8242 = vmatprep.subr.bf16.mxu1 %v8983_v45 }
 0x2e7   : > { %5708 = vmatmul.mubr.bf16.gmra.mrb[232].mxu0 %v9013_v48 }
 0x2e8   : > { %5715 = vmatprep.mubr.bf16.mxu0 %v10110_v61  ;;  %8227 = vmatmul.mubr.bf16.gmra.mrb[112].mxu1 %v10243_v54 }
 0x2e9   : > { %8230 = vmatprep.mubr.bf16.mxu1 %v10266_v11 }
 0x2ef   : > { %5716 = vmatmul.mubr.bf16.gmra.mrb[236].mxu0 %v9014_v63 }
 0x2f0   : > { %5723 = vmatprep.mubr.bf16.mxu0 %v10138_v58  ;;  %8231 = vmatmul.mubr.bf16.gmra.mrb[116].mxu1 %v10283_v4 }
 0x2f1   : > { %8234 = vmatprep.mubr.bf16.mxu1 %v10316_v55 }
 0x2f7   : > { %5724 = vmatmul.mubr.bf16.gmra.mrb[240].mxu0 %v9015_v17 }
 0x2f8   : > { %5731 = vmatprep.mubr.bf16.mxu0 %v10154_v26  ;;  %8235 = vmatmul.mubr.bf16.gmra.mrb[120].mxu1 %v10333_v6 }
 0x2f9   : > { %8238 = vmatprep.mubr.bf16.mxu1 %v10343_v41 }
 0x2ff   : > { %5732 = vmatmul.mubr.bf16.gmra.mrb[244].mxu0 %v9016_v15 }
 0x300   : > { %5739 = vmatprep.mubr.bf16.mxu0 %v10182_v24  ;;  %8239 = vmatmul.mubr.bf16.gmra.mrb[124].mxu1 %v10358_v35 }
 0x301   : > { %6254 = vmatprep.mubr.bf16.mxu1 %v10967_v0 }
 0x307   : > { %5740 = vmatmul.mubr.bf16.gmra.mrb[248].mxu0 %v9017_v9 }
 0x308   : > { %5747 = vmatprep.mubr.bf16.mxu0 %v10204_v28  ;;  %6255 = vmatmul.mubr.bf16.vlgmr.msra.gmra.mrb[128].mxu1 %v9013_v48 }
 0x309   : > { %6262 = vmatprep.mubr.bf16.mxu1 %v10110_v61  ;;  %8243 = vmatpush3.bf16.msra.mxu1 %v8983_v45  ;;  %v8989_v61 = vld [vmem:[#allocation7 + $0x470] sm:$0xff]  }
 0x30a   : > { %8244 = vmatprep.subr.bf16.mxu1 %v8984_v23 }
 0x30d   : > { %8245 = vmatpush3.bf16.msra.mxu1 %v8984_v23 }
 0x30e   : > { %8246 = vmatprep.subr.bf16.mxu1 %v8985_v42 }
 0x30f   : > { %5748 = vmatmul.mubr.bf16.gmra.mrb[252].mxu0 %v10206_v5 }
 0x310   : > { %5755 = vmatprep.mubr.bf16.mxu0 %v10232_v32  ;;  %6263 = vmatmul.mubr.bf16.gmra.mrb[132].mxu1 %v9014_v63 }
 0x311   : > { %6270 = vmatprep.mubr.bf16.mxu1 %v10138_v58  ;;  %8247 = vmatpush3.bf16.msra.mxu1 %v8985_v42  ;;  %v8990_v58 = vld [vmem:[#allocation7 + $0x478] sm:$0xff]  }
 0x312   : > { %8248 = vmatprep.subr.bf16.mxu1 %v8986_v37 }
 0x315   : > { %8249 = vmatpush3.bf16.msra.mxu1 %v8986_v37 }
 0x316   : > { %8250 = vmatprep.subr.bf16.mxu1 %v8987_v20 }
 0x317   : > { %5756 = vmatmul.mubr.bf16.gmra.mrb[0].mxu0 %v10226_v19 }
 0x318   : > { %5763 = vmatprep.mubr.bf16.mxu0 %v10259_v12  ;;  %6271 = vmatmul.mubr.bf16.gmra.mrb[136].mxu1 %v9015_v17 }
 0x319   : > { %6278 = vmatprep.mubr.bf16.mxu1 %v10154_v26  ;;  %8251 = vmatpush3.bf16.msra.mxu1 %v8987_v20 }
 0x31a   : > { %8252 = vmatprep.subr.bf16.mxu1 %v8988_v21 }
 0x31d   : > { %v7610_v5 = vpop.f32.mrb[160].mxu0  ;;  %8253 = vmatpush3.bf16.msra.mxu1 %v8988_v21 }
 0x31e   : > { %v7611_v3 = vpop.f32.mrb[161].mxu0  ;;  %8254 = vmatprep.subr.bf16.mxu1 %v8989_v61 }
 0x31f   : > { %5764 = vmatmul.mubr.bf16.gmra.mrb[4].mxu0 %v10262_v16  ;;  %v10416_v18 = vadd.f32 %v7611_v3, %v7610_v5  ;;  %v7613_v59 = vpop.f32.mrb[162].mxu0 }
 0x320   : > { %5771 = vmatprep.mubr.bf16.mxu0 %v10289_v52  ;;  %6279 = vmatmul.mubr.bf16.gmra.mrb[140].mxu1 %v9016_v15  ;;  %v7614_v33 = vpop.f32.mrb[163].mxu0 }
 0x321   : > { %6286 = vmatprep.mubr.bf16.mxu1 %v10182_v24  ;;  %v10420_v26 = vadd.f32 %v7614_v33, %v7613_v59  ;;  %8255 = vmatpush3.bf16.msra.mxu1 %v8989_v61  ;;  %v9018_v24 = vld [vmem:[#allocation2 + $0x54] sm:$0xff]  }
 0x322   : > { %8256 = vmatprep.subr.bf16.mxu1 %v8990_v58 }
 0x325   : > { %8257 = vmatpush3.bf16.msra.mxu1 %v8990_v58 }
 0x327   : > { %5772 = vmatmul.mubr.bf16.gmra.mrb[8].mxu0 %v10292_v51 }
 0x328   : > { %5779 = vmatprep.mubr.bf16.mxu0 %v10299_v30  ;;  %6287 = vmatmul.mubr.bf16.gmra.mrb[144].mxu1 %v9017_v9 }
 0x329   : > { %v7616_v53 = vpop.f32.mrb[164].mxu0  ;;  %6294 = vmatprep.mubr.bf16.mxu1 %v10204_v28 }
 0x32a   : > { %v7617_v62 = vpop.f32.mrb[165].mxu0 }
 0x32b   : > { %v10425_v27 = vadd.f32 %v7617_v62, %v7616_v53  ;;  %v7619_v25 = vpop.f32.mrb[166].mxu0 }
 0x32c   : > { %v7620_v31 = vpop.f32.mrb[167].mxu0 }
 0x32d   : > { %v10427_v56 = vadd.f32 %v7620_v31, %v7619_v25 }
 0x32f   : > { %5780 = vmatmul.mubr.bf16.gmra.mrb[12].mxu0 %v10311_v50 }
 0x330   : > { %5787 = vmatprep.mubr.bf16.mxu0 %v10329_v7  ;;  %6295 = vmatmul.mubr.bf16.gmra.mrb[148].mxu1 %v9018_v24 }
 0x331   : > { %6302 = vmatprep.mubr.bf16.mxu1 %v10232_v32 }
 0x332   : > { %v7622_v38 = vpop.f32.mrb[168].mxu0 }
 0x333   : > { %v7623_v2 = vpop.f32.mrb[169].mxu0 }
 0x334   : > { %v10432_v0 = vadd.f32 %v7623_v2, %v7622_v38  ;;  %v7625_v49 = vpop.f32.mrb[170].mxu0  ;;  %v8991_v38 = vld [vmem:[#allocation2 + $0xcc] sm:$0xff]  }
 0x335   : > { %v7626_v28 = vpop.f32.mrb[171].mxu0 }
 0x336   : > { %v10434_v45 = vadd.f32 %v7626_v28, %v7625_v49  ;;  %v4522_v49 = vshll.u32 %v8991_v38, 16 }
 0x337   : > { %5788 = vmatmul.mubr.bf16.gmra.mrb[16].mxu0 %v10326_v60 }
 0x338   : > { %5795 = vmatprep.mubr.bf16.mxu0 %v10340_v44  ;;  %6303 = vmatmul.mubr.bf16.gmra.mrb[152].mxu1 %v10226_v19 }
 0x339   : > { %6310 = vmatprep.mubr.bf16.mxu1 %v10259_v12 }
 0x33c   : > { %v7628_v48 = vpop.f32.mrb[172].mxu0 }
 0x33d   : > { %v7629_v63 = vpop.f32.mrb[173].mxu0 }
 0x33e   : > { %v10440_v17 = vadd.f32 %v7629_v63, %v7628_v48  ;;  %v7631_v32 = vpop.f32.mrb[174].mxu0 }
 0x33f   : > { %v7632_v15 = vpop.f32.mrb[175].mxu0  ;;  %5796 = vmatmul.mubr.bf16.gmra.mrb[20].mxu0 %v10351_v36 }
 0x340   : > { %v10443_v23 = vadd.f32 %v7632_v15, %v7631_v32  ;;  %5803 = vmatprep.mubr.bf16.mxu0 %v10354_v40  ;;  %6311 = vmatmul.mubr.bf16.gmra.mrb[156].mxu1 %v10262_v16  ;;  %v4524_v15 = vrot.slane %v4522_v49, 1 }
 0x341   : > { %6318 = vmatprep.mubr.bf16.mxu1 %v10289_v52 }
 0x344   : > { %v7634_v9 = vpop.f32.mrb[176].mxu0 }
 0x345   : > { %v7635_v19 = vpop.f32.mrb[177].mxu0 }
 0x346   : > { %v10448_v42 = vadd.f32 %v7635_v19, %v7634_v9  ;;  %v7637_v12 = vpop.f32.mrb[178].mxu0 }
 0x347   : > { %v7638_v37 = vpop.f32.mrb[179].mxu0  ;;  %5804 = vmatmul.mubr.bf16.gmra.mrb[24].mxu0 %v10362_v14 }
 0x348   : > { %v10451_v20 = vadd.f32 %v7638_v37, %v7637_v12  ;;  %5811 = vmatprep.mubr.bf16.mxu0 %v10365_v29  ;;  %6319 = vmatmul.mubr.bf16.gmra.mrb[160].mxu1 %v10292_v51 }
 0x349   : > { %6326 = vmatprep.mubr.bf16.mxu1 %v10299_v30 }
 0x34c   : > { %v7640_v21 = vpop.f32.mrb[180].mxu0 }
 0x34d   : > { %v7641_v16 = vpop.f32.mrb[181].mxu0 }
 0x34e   : > { %v10456_v61 = vadd.f32 %v7641_v16, %v7640_v21  ;;  %v7643_v52 = vpop.f32.mrb[182].mxu0 }
 0x34f   : > { %5812 = vmatmul.mubr.bf16.gmra.mrb[28].mxu0 %v10374_v47  ;;  %v7644_v5 = vpop.f32.mrb[183].mxu0 }
 0x350   : > { %v10459_v3 = vadd.f32 %v7644_v5, %v7643_v52  ;;  %6327 = vmatmul.mubr.bf16.gmra.mrb[164].mxu1 %v10311_v50 }
 0x351   : > { %6334 = vmatprep.mubr.bf16.mxu1 %v10329_v7 }
 0x356   : > { %v7646_v58 = vpop.f32.mrb[184].mxu0 }
 0x357   : > { %v7647_v59 = vpop.f32.mrb[185].mxu0 }
 0x358   : > { %v10463_v33 = vadd.f32 %v7647_v59, %v7646_v58  ;;  %v7649_v51 = vpop.f32.mrb[186].mxu0  ;;  %6335 = vmatmul.mubr.bf16.gmra.mrb[168].mxu1 %v10326_v60  ;;  %v8993_v59 = vld [vmem:[#allocation2 + $0xcc] sm:$0xff]  }
 0x359   : > { %v7650_v30 = vpop.f32.mrb[187].mxu0  ;;  %6342 = vmatprep.mubr.bf16.mxu1 %v10340_v44  ;;  %v8992_v44 = vld [vmem:[#allocation2 + $0xd4] ss:$0 sps:$4 sm:$0x11]  }
 0x35a   : > { %v10466_v53 = vadd.f32 %v7650_v30, %v7649_v51  ;;  %v4527_v9 = vshll.u32 %v8992_v44, 16 }
 0x35c   : > { %v4529_v19 = vrot.slane %v4527_v9, 1 }
 0x35e   : > { %v7652_v62 = vpop.f32.mrb[188].mxu0 }
 0x35f   : > { %v7653_v25 = vpop.f32.mrb[189].mxu0 }
 0x360   : > { %v10469_v31 = vadd.f32 %v7653_v25, %v7652_v62  ;;  %v7655_v24 = vpop.f32.mrb[190].mxu0  ;;  %6343 = vmatmul.mubr.bf16.gmra.mrb[172].mxu1 %v10351_v36  ;;  %v4520_v36 = vshrl.u32 %v8991_v38, 16 }
 0x361   : > { %v7656_v50 = vpop.f32.mrb[191].mxu0  ;;  %6350 = vmatprep.mubr.bf16.mxu1 %v10354_v40 }
 0x362   : > { %v10472_v7 = vadd.f32 %v7656_v50, %v7655_v24 }
 0x368   : > { %6351 = vmatmul.mubr.bf16.gmra.mrb[176].mxu1 %v10362_v14  ;;  %v4525_v14 = vor.u32 %v4524_v15, %v4520_v36 }
 0x369   : > { %6358 = vmatprep.mubr.bf16.mxu1 %v10365_v29 }
 0x36a   : > { %v7658_v60 = vpop.f32.mrb[192].mxu0  ;;  %v4530_v52 = vsel %vm1092_vm7, %v4525_v14, %v4529_v19 }
 0x36b   : > { %v7659_v2 = vpop.f32.mrb[193].mxu0 }
 0x36c   : > { %v10477_v28 = vadd.f32 %v7659_v2, %v7658_v60  ;;  %v7661_v48 = vpop.f32.mrb[194].mxu0 }
 0x36d   : > { %v7662_v63 = vpop.f32.mrb[195].mxu0 }
 0x36e   : > { %v10479_v32 = vadd.f32 %v7662_v63, %v7661_v48 }
 0x370   : > { %6359 = vmatmul.mubr.bf16.gmra.mrb[180].mxu1 %v10374_v47 }
 0x371   : > { %6366 = vmatprep.mubr.bf16.mxu1 %v10377_v57 }
 0x372   : > { %v7664_v40 = vpop.f32.mrb[196].mxu0 }
 0x373   : > { %v7665_v29 = vpop.f32.mrb[197].mxu0 }
 0x374   : > { %v10483_v12 = vadd.f32 %v7665_v29, %v7664_v40  ;;  %v7667_v37 = vpop.f32.mrb[198].mxu0 }
 0x375   : > { %v7668_v21 = vpop.f32.mrb[199].mxu0 }
 0x376   : > { %v10485_v16 = vadd.f32 %v7668_v21, %v7667_v37 }
 0x378   : > { %6367 = vmatmul.mubr.bf16.gmra.mrb[184].mxu1 %v10383_v39 }
 0x379   : > { %6374 = vmatprep.mubr.bf16.mxu1 %v4530_v52 }
 0x37a   : > { %v7670_v5 = vpop.f32.mrb[200].mxu0 }
 0x37b   : > { %v7671_v58 = vpop.f32.mrb[201].mxu0 }
 0x37c   : > { %v10489_v47 = vadd.f32 %v7671_v58, %v7670_v5  ;;  %v7673_v57 = vpop.f32.mrb[202].mxu0 }
 0x37d   : > { %v7674_v51 = vpop.f32.mrb[203].mxu0 }
 0x37e   : > { %v10491_v30 = vadd.f32 %v7674_v51, %v7673_v57 }
 0x380   : > { %6375 = vmatmul.mubr.bf16.gmra.mrb[188].mxu1 %v8993_v59 }
 0x381   : > { %8258 = vmatprep.mubr.bf16.mxu1 %v10964_v1 }
 0x382   : > { %v7676_v62 = vpop.f32.mrb[204].mxu0 }
 0x383   : > { %v7677_v25 = vpop.f32.mrb[205].mxu0 }
 0x384   : > { %v10494_v24 = vadd.f32 %v7677_v25, %v7676_v62  ;;  %v7679_v50 = vpop.f32.mrb[206].mxu0 }
 0x385   : > { %v7680_v38 = vpop.f32.mrb[207].mxu0 }
 0x386   : > { %v10496_v39 = vadd.f32 %v7680_v38, %v7679_v50 }
 0x388   : > { %8259 = vmatmul.mubr.bf16.vlgmr.msra.gmra.mrb[96].mxu1 %v10965_v8 }
 0x389   : > { %8262 = vmatprep.mubr.bf16.mxu1 %v10124_v34 }
 0x38a   : > { %v7682_v60 = vpop.f32.mrb[208].mxu0 }
 0x38b   : > { %v7683_v2 = vpop.f32.mrb[209].mxu0 }
 0x38c   : > { %v10500_v44 = vadd.f32 %v7683_v2, %v7682_v60  ;;  %v7685_v49 = vpop.f32.mrb[210].mxu0  ;;  %v8994_v2 = vld [vmem:[#allocation2 + $0xcc] sm:$0xfe]  }
 0x38d   : > { %v7686_v48 = vpop.f32.mrb[211].mxu0 }
 0x38e   : > { %v10502_v63 = vadd.f32 %v7686_v48, %v7685_v49  ;;  %v8995_v49 = vld [vmem:[#allocation2 + $0xd4] ss:$0 sps:$4 sm:$0x11]  }
 0x390   : > { %8263 = vmatmul.mubr.bf16.gmra.mrb[100].mxu1 %v10144_v43 }
 0x391   : > { %8266 = vmatprep.mubr.bf16.mxu1 %v10171_v10 }
 0x392   : > { %v7688_v1 = vpop.f32.mrb[212].mxu0 }
 0x393   : > { %v7689_v36 = vpop.f32.mrb[213].mxu0 }
 0x394   : > { %v10506_v15 = vadd.f32 %v7689_v36, %v7688_v1  ;;  %v7691_v9 = vpop.f32.mrb[214].mxu0 }
 0x395   : > { %v7692_v8 = vpop.f32.mrb[215].mxu0 }
 0x396   : > { %v10508_v40 = vadd.f32 %v7692_v8, %v7691_v9 }
 0x398   : > { %8267 = vmatmul.mubr.bf16.gmra.mrb[104].mxu1 %v10190_v46 }
 0x399   : > { %8270 = vmatprep.mubr.bf16.mxu1 %v10210_v13 }
 0x39a   : > { %v7694_v34 = vpop.f32.mrb[216].mxu0 }
 0x39b   : > { %v7695_v14 = vpop.f32.mrb[217].mxu0 }
 0x39c   : > { %v10512_v19 = vadd.f32 %v7695_v14, %v7694_v34  ;;  %v7697_v29 = vpop.f32.mrb[218].mxu0 }
 0x39d   : > { %v7698_v43 = vpop.f32.mrb[219].mxu0 }
 0x39e   : > { %v10514_v37 = vadd.f32 %v7698_v43, %v7697_v29 }
 0x3a0   : > { %8271 = vmatmul.mubr.bf16.gmra.mrb[108].mxu1 %v10243_v54 }
 0x3a1   : > { %8274 = vmatprep.mubr.bf16.mxu1 %v10266_v11 }
 0x3a2   : > { %v7700_v10 = vpop.f32.mrb[220].mxu0 }
 0x3a3   : > { %v7701_v21 = vpop.f32.mrb[221].mxu0 }
 0x3a4   : > { %v10518_v52 = vadd.f32 %v7701_v21, %v7700_v10  ;;  %v7703_v5 = vpop.f32.mrb[222].mxu0 }
 0x3a5   : > { %v7704_v46 = vpop.f32.mrb[223].mxu0 }
 0x3a6   : > { %v10520_v58 = vadd.f32 %v7704_v46, %v7703_v5 }
 0x3a8   : > { %8275 = vmatmul.mubr.bf16.gmra.mrb[112].mxu1 %v10283_v4 }
 0x3a9   : > { %8278 = vmatprep.mubr.bf16.mxu1 %v10316_v55 }
 0x3aa   : > { %v7746_v13 = vpop.f32.mrb[224].mxu0 }
 0x3ab   : > { %v7747_v57 = vpop.f32.mrb[225].mxu0 }
 0x3ac   : > { %v7748_v59 = vadd.f32 %v7747_v57, %v7746_v13  ;;  %v7749_v51 = vpop.f32.mrb[226].mxu0 }
 0x3ad   : > { %v7750_v62 = vpop.f32.mrb[227].mxu0 }
 0x3ae   : > { %v10525_v54 = vadd.f32 %v7748_v59, %v10416_v18  ;;  %v7751_v11 = vadd.f32 %v7750_v62, %v7749_v51 }
 0x3b0   : > { %v10528_v25 = vadd.f32 %v7751_v11, %v10420_v26  ;;  %8279 = vmatmul.mubr.bf16.gmra.mrb[116].mxu1 %v10333_v6  ;;  %v4816_v6 = vrot.slane %v8994_v2, 1 }
 0x3b1   : > { %8282 = vmatprep.mubr.bf16.mxu1 %v10343_v41  ;;  %v4817_v41 = vrot.slane %v8995_v49, 1 }
 0x3b2   : > { %v7752_v50 = vpop.f32.mrb[228].mxu0 }
 0x3b3   : > { %v7753_v4 = vpop.f32.mrb[229].mxu0  ;;  %v4818_v14 = vsel %vm1543_vm9, %v4816_v6, %v4817_v41 }
 0x3b4   : > { %v7754_v38 = vadd.f32 %v7753_v4, %v7752_v50  ;;  %v7755_v55 = vpop.f32.mrb[230].mxu0 }
 0x3b5   : > { %v7756_v60 = vpop.f32.mrb[231].mxu0 }
 0x3b6   : > { %v10533_v48 = vadd.f32 %v7754_v38, %v10425_v27  ;;  %v7757_v18 = vadd.f32 %v7756_v60, %v7755_v55 }
 0x3b8   : > { %v10536_v1 = vadd.f32 %v7757_v18, %v10427_v56  ;;  %8283 = vmatmul.mubr.bf16.gmra.mrb[120].mxu1 %v10358_v35 }
 0x3b9   : > { %8286 = vmatprep.mubr.bf16.mxu1 %v10370_v22 }
 0x3ba   : > { %v7758_v26 = vpop.f32.mrb[232].mxu0 }
 0x3bb   : > { %v7759_v36 = vpop.f32.mrb[233].mxu0 }
 0x3bc   : > { %v7760_v9 = vadd.f32 %v7759_v36, %v7758_v26  ;;  %v7761_v8 = vpop.f32.mrb[234].mxu0 }
 0x3bd   : > { %v7762_v34 = vpop.f32.mrb[235].mxu0 }
 0x3be   : > { %v10542_v27 = vadd.f32 %v7760_v9, %v10432_v0  ;;  %v7763_v29 = vadd.f32 %v7762_v34, %v7761_v8 }
 0x3c0   : > { %v10545_v56 = vadd.f32 %v7763_v29, %v10434_v45  ;;  %8287 = vmatmul.mubr.bf16.gmra.mrb[124].mxu1 %v4818_v14 }
 0x3c2   : > { %v7764_v35 = vpop.f32.mrb[236].mxu0 }
 0x3c3   : > { %v7765_v43 = vpop.f32.mrb[237].mxu0 }
 0x3c4   : > { %v7766_v22 = vadd.f32 %v7765_v43, %v7764_v35  ;;  %v7767_v10 = vpop.f32.mrb[238].mxu0 }
 0x3c5   : > { %v7768_v21 = vpop.f32.mrb[239].mxu0 }
 0x3c6   : > { %v10548_v5 = vadd.f32 %v7766_v22, %v10440_v17  ;;  %v7769_v46 = vadd.f32 %v7768_v21, %v7767_v10 }
 0x3c8   : > { %v10551_v13 = vadd.f32 %v7769_v46, %v10443_v23 }
 0x3ca   : > { %v7770_v57 = vpop.f32.mrb[240].mxu0 }
 0x3cb   : > { %v7771_v0 = vpop.f32.mrb[241].mxu0 }
 0x3cc   : > { %v7772_v59 = vadd.f32 %v7771_v0, %v7770_v57  ;;  %v7773_v51 = vpop.f32.mrb[242].mxu0 }
 0x3cd   : > { %v7774_v62 = vpop.f32.mrb[243].mxu0 }
 0x3ce   : > { %v10554_v45 = vadd.f32 %v7772_v59, %v10448_v42  ;;  %v7775_v11 = vadd.f32 %v7774_v62, %v7773_v51 }
 0x3d0   : > { %v10557_v50 = vadd.f32 %v7775_v11, %v10451_v20 }
 0x3d2   : > { %v7776_v4 = vpop.f32.mrb[244].mxu0 }
 0x3d3   : > { %v7777_v38 = vpop.f32.mrb[245].mxu0 }
 0x3d4   : > { %v7778_v17 = vadd.f32 %v7777_v38, %v7776_v4  ;;  %v7779_v55 = vpop.f32.mrb[246].mxu0 }
 0x3d5   : > { %v7780_v60 = vpop.f32.mrb[247].mxu0 }
 0x3d6   : > { %v10560_v23 = vadd.f32 %v7778_v17, %v10456_v61  ;;  %v7781_v2 = vadd.f32 %v7780_v60, %v7779_v55 }
 0x3d8   : > { %v10563_v49 = vadd.f32 %v7781_v2, %v10459_v3 }
 0x3da   : > { %v7782_v18 = vpop.f32.mrb[248].mxu0 }
 0x3db   : > { %v7783_v6 = vpop.f32.mrb[249].mxu0  ;;  %v7882_v42 = vpop.f32.mrb[128].mxu1 }
 0x3dc   : > { %v7784_v41 = vadd.f32 %v7783_v6, %v7782_v18  ;;  %v7785_v26 = vpop.f32.mrb[250].mxu0  ;;  %v7883_v36 = vpop.f32.mrb[129].mxu1 }
 0x3dd   : > { %v7786_v20 = vpop.f32.mrb[251].mxu0  ;;  %v7884_v9 = vadd.f32 %v7883_v36, %v7882_v42  ;;  %v7885_v8 = vpop.f32.mrb[130].mxu1 }
 0x3de   : > { %v10566_v34 = vadd.f32 %v7784_v41, %v10463_v33  ;;  %v7787_v14 = vadd.f32 %v7786_v20, %v7785_v26  ;;  %v7886_v29 = vpop.f32.mrb[131].mxu1 }
 0x3df   : > { %v7887_v61 = vadd.f32 %v7886_v29, %v7885_v8  ;;  %v10569_v35 = vadd.f32 %v10525_v54, %v7884_v9 }
 0x3e0   : > { %v10572_v3 = vadd.f32 %v7787_v14, %v10466_v53 }
 0x3e1   : > { %v10575_v43 = vadd.f32 %v10528_v25, %v7887_v61 }
 0x3e2   : > { %v7788_v22 = vpop.f32.mrb[252].mxu0 }
 0x3e3   : > { %v7789_v10 = vpop.f32.mrb[253].mxu0  ;;  %v7888_v21 = vpop.f32.mrb[132].mxu1 }
 0x3e4   : > { %v7790_v46 = vadd.f32 %v7789_v10, %v7788_v22  ;;  %v7791_v57 = vpop.f32.mrb[254].mxu0  ;;  %v7889_v0 = vpop.f32.mrb[133].mxu1 }
 0x3e5   : > { %v7792_v33 = vpop.f32.mrb[255].mxu0  ;;  %v7890_v59 = vadd.f32 %v7889_v0, %v7888_v21  ;;  %v7891_v51 = vpop.f32.mrb[134].mxu1 }
 0x3e6   : > { %v10578_v62 = vadd.f32 %v7790_v46, %v10469_v31  ;;  %v7793_v54 = vadd.f32 %v7792_v33, %v7791_v57  ;;  %v7892_v11 = vpop.f32.mrb[135].mxu1 }
 0x3e7   : > { %v7893_v4 = vadd.f32 %v7892_v11, %v7891_v51  ;;  %v10581_v53 = vadd.f32 %v10533_v48, %v7890_v59 }
 0x3e8   : > { %v10584_v25 = vadd.f32 %v7793_v54, %v10472_v7 }
 0x3e9   : > { %v10587_v38 = vadd.f32 %v10536_v1, %v7893_v4 }
 0x3ea   : > { %v7794_v17 = vpop.f32.mrb[0].mxu0 }
 0x3eb   : > { %v7795_v55 = vpop.f32.mrb[1].mxu0  ;;  %v7894_v60 = vpop.f32.mrb[136].mxu1 }
 0x3ec   : > { %v7796_v2 = vadd.f32 %v7795_v55, %v7794_v17  ;;  %v7797_v18 = vpop.f32.mrb[2].mxu0  ;;  %v7895_v6 = vpop.f32.mrb[137].mxu1 }
 0x3ed   : > { %v7798_v31 = vpop.f32.mrb[3].mxu0  ;;  %v7896_v42 = vadd.f32 %v7895_v6, %v7894_v60  ;;  %v7897_v41 = vpop.f32.mrb[138].mxu1 }
 0x3ee   : > { %v10590_v26 = vadd.f32 %v7796_v2, %v10477_v28  ;;  %v7799_v48 = vadd.f32 %v7798_v31, %v7797_v18  ;;  %v7898_v36 = vpop.f32.mrb[139].mxu1 }
 0x3ef   : > { %v7899_v20 = vadd.f32 %v7898_v36, %v7897_v41  ;;  %v10593_v7 = vadd.f32 %v10542_v27, %v7896_v42 }
 0x3f0   : > { %v10596_v1 = vadd.f32 %v7799_v48, %v10479_v32 }
 0x3f1   : > { %v10599_v9 = vadd.f32 %v10545_v56, %v7899_v20 }
 0x3f2   : > { %v7800_v8 = vpop.f32.mrb[4].mxu0 }
 0x3f3   : > { %v7801_v14 = vpop.f32.mrb[5].mxu0  ;;  %v7900_v29 = vpop.f32.mrb[140].mxu1 }
 0x3f4   : > { %v7802_v61 = vadd.f32 %v7801_v14, %v7800_v8  ;;  %v7803_v22 = vpop.f32.mrb[6].mxu0  ;;  %v7901_v10 = vpop.f32.mrb[141].mxu1 }
 0x3f5   : > { %v7804_v28 = vpop.f32.mrb[7].mxu0  ;;  %v7902_v21 = vadd.f32 %v7901_v10, %v7900_v29  ;;  %v7903_v46 = vpop.f32.mrb[142].mxu1 }
 0x3f6   : > { %v10602_v57 = vadd.f32 %v7802_v61, %v10483_v12  ;;  %v7805_v27 = vadd.f32 %v7804_v28, %v7803_v22  ;;  %v7904_v0 = vpop.f32.mrb[143].mxu1 }
 0x3f7   : > { %v7905_v33 = vadd.f32 %v7904_v0, %v7903_v46  ;;  %v10605_v32 = vadd.f32 %v10548_v5, %v7902_v21 }
 0x3f8   : > { %v10608_v56 = vadd.f32 %v7805_v27, %v10485_v16 }
 0x3f9   : > { %v10611_v59 = vadd.f32 %v10551_v13, %v7905_v33 }
 0x3fa   : > { %v7806_v51 = vpop.f32.mrb[8].mxu0 }
 0x3fb   : > { %v7807_v54 = vpop.f32.mrb[9].mxu0  ;;  %v7906_v11 = vpop.f32.mrb[144].mxu1 }
 0x3fc   : > { %v7808_v4 = vadd.f32 %v7807_v54, %v7806_v51  ;;  %v7809_v17 = vpop.f32.mrb[10].mxu0  ;;  %v7907_v55 = vpop.f32.mrb[145].mxu1 }
 0x3fd   : > { %v7810_v12 = vpop.f32.mrb[11].mxu0  ;;  %v7908_v60 = vadd.f32 %v7907_v55, %v7906_v11  ;;  %v7909_v2 = vpop.f32.mrb[146].mxu1 }
 0x3fe   : > { %v10614_v18 = vadd.f32 %v7808_v4, %v10489_v47  ;;  %v7811_v5 = vadd.f32 %v7810_v12, %v7809_v17  ;;  %v7910_v6 = vpop.f32.mrb[147].mxu1 }
 0x3ff   : > { %v7911_v31 = vadd.f32 %v7910_v6, %v7909_v2  ;;  %v10617_v16 = vadd.f32 %v10554_v45, %v7908_v60 }
 0x400   : > { %v10620_v13 = vadd.f32 %v7811_v5, %v10491_v30 }
 0x401   : > { %v10623_v42 = vadd.f32 %v10557_v50, %v7911_v31 }
 0x402   : > { %v7812_v41 = vpop.f32.mrb[12].mxu0 }
 0x403   : > { %v7813_v48 = vpop.f32.mrb[13].mxu0  ;;  %v7912_v36 = vpop.f32.mrb[148].mxu1 }
 0x404   : > { %v7814_v20 = vadd.f32 %v7813_v48, %v7812_v41  ;;  %v7815_v8 = vpop.f32.mrb[14].mxu0  ;;  %v7913_v14 = vpop.f32.mrb[149].mxu1 }
 0x405   : > { %v7816_v47 = vpop.f32.mrb[15].mxu0  ;;  %v7914_v29 = vadd.f32 %v7913_v14, %v7912_v36  ;;  %v7915_v61 = vpop.f32.mrb[150].mxu1 }
 0x406   : > { %v10626_v22 = vadd.f32 %v7814_v20, %v10494_v24  ;;  %v7817_v45 = vadd.f32 %v7816_v47, %v7815_v8  ;;  %v7916_v10 = vpop.f32.mrb[151].mxu1 }
 0x407   : > { %v7917_v28 = vadd.f32 %v7916_v10, %v7915_v61  ;;  %v10629_v30 = vadd.f32 %v10560_v23, %v7914_v29 }
 0x408   : > { %v10632_v50 = vadd.f32 %v7817_v45, %v10496_v39 }
 0x409   : > { %v10635_v21 = vadd.f32 %v10563_v49, %v7917_v28 }
 0x40a   : > { %v7818_v46 = vpop.f32.mrb[16].mxu0 }
 0x40b   : > { %v7819_v27 = vpop.f32.mrb[17].mxu0  ;;  %v7918_v0 = vpop.f32.mrb[152].mxu1 }
 0x40c   : > { %v7820_v33 = vadd.f32 %v7819_v27, %v7818_v46  ;;  %v7821_v51 = vpop.f32.mrb[18].mxu0  ;;  %v7919_v54 = vpop.f32.mrb[153].mxu1 }
 0x40d   : > { %v7822_v24 = vpop.f32.mrb[19].mxu0  ;;  %v7920_v11 = vadd.f32 %v7919_v54, %v7918_v0  ;;  %v7921_v4 = vpop.f32.mrb[154].mxu1 }
 0x40e   : > { %v10638_v17 = vadd.f32 %v7820_v33, %v10500_v44  ;;  %v7823_v23 = vadd.f32 %v7822_v24, %v7821_v51  ;;  %v7922_v55 = vpop.f32.mrb[155].mxu1 }
 0x40f   : > { %v7923_v12 = vadd.f32 %v7922_v55, %v7921_v4  ;;  %v10641_v39 = vadd.f32 %v10566_v34, %v7920_v11 }
 0x410   : > { %v10644_v49 = vadd.f32 %v7823_v23, %v10502_v63 }
 0x411   : > { %v10647_v60 = vadd.f32 %v10572_v3, %v7923_v12 }
 0x412   : > { %v7824_v2 = vpop.f32.mrb[20].mxu0 }
 0x413   : > { %v7825_v5 = vpop.f32.mrb[21].mxu0  ;;  %v7924_v6 = vpop.f32.mrb[156].mxu1 }
 0x414   : > { %v7826_v31 = vadd.f32 %v7825_v5, %v7824_v2  ;;  %v7827_v41 = vpop.f32.mrb[22].mxu0  ;;  %v7925_v48 = vpop.f32.mrb[157].mxu1 }
 0x415   : > { %v7828_v44 = vpop.f32.mrb[23].mxu0  ;;  %v7926_v36 = vadd.f32 %v7925_v48, %v7924_v6  ;;  %v7927_v20 = vpop.f32.mrb[158].mxu1 }
 0x416   : > { %v10650_v8 = vadd.f32 %v7826_v31, %v10506_v15  ;;  %v7829_v34 = vadd.f32 %v7828_v44, %v7827_v41  ;;  %v7928_v14 = vpop.f32.mrb[159].mxu1 }
 0x417   : > { %v7929_v47 = vadd.f32 %v7928_v14, %v7927_v20  ;;  %v10653_v63 = vadd.f32 %v10578_v62, %v7926_v36 }
 0x418   : > { %v10656_v3 = vadd.f32 %v7829_v34, %v10508_v40 }
 0x419   : > { %v10659_v29 = vadd.f32 %v10584_v25, %v7929_v47 }
 0x41a   : > { %v7830_v61 = vpop.f32.mrb[24].mxu0 }
 0x41b   : > { %v7831_v45 = vpop.f32.mrb[25].mxu0  ;;  %v7930_v10 = vpop.f32.mrb[160].mxu1 }
 0x41c   : > { %v7832_v28 = vadd.f32 %v7831_v45, %v7830_v61  ;;  %v7833_v46 = vpop.f32.mrb[26].mxu0  ;;  %v7931_v27 = vpop.f32.mrb[161].mxu1 }
 0x41d   : > { %v7834_v15 = vpop.f32.mrb[27].mxu0  ;;  %v7932_v0 = vadd.f32 %v7931_v27, %v7930_v10  ;;  %v7933_v33 = vpop.f32.mrb[162].mxu1 }
 0x41e   : > { %v8505_v51 = vadd.f32 %v7832_v28, %v10512_v19  ;;  %v7835_v54 = vadd.f32 %v7834_v15, %v7833_v46  ;;  %v7934_v62 = vpop.f32.mrb[163].mxu1 }
 0x41f   : > { %v7935_v24 = vadd.f32 %v7934_v62, %v7933_v33  ;;  %v10663_v40 = vadd.f32 %v10590_v26, %v7932_v0 }
 0x420   : > { %v8511_v25 = vadd.f32 %v7835_v54, %v10514_v37 }
 0x421   : > { %v10667_v11 = vadd.f32 %v10596_v1, %v7935_v24 }
 0x422   : > { %v7836_v4 = vpop.f32.mrb[28].mxu0 }
 0x423   : > { %v7837_v23 = vpop.f32.mrb[29].mxu0  ;;  %v7936_v55 = vpop.f32.mrb[164].mxu1 }
 0x424   : > { %v7838_v12 = vadd.f32 %v7837_v23, %v7836_v4  ;;  %v7839_v2 = vpop.f32.mrb[30].mxu0  ;;  %v7937_v5 = vpop.f32.mrb[165].mxu1 }
 0x425   : > { %v7840_v6 = vpop.f32.mrb[31].mxu0  ;;  %v7938_v31 = vadd.f32 %v7937_v5, %v7936_v55  ;;  %v7939_v19 = vpop.f32.mrb[166].mxu1 }
 0x426   : > { %v8502_v41 = vadd.f32 %v7838_v12, %v10518_v52  ;;  %v7841_v48 = vadd.f32 %v7840_v6, %v7839_v2  ;;  %v7940_v44 = vpop.f32.mrb[167].mxu1 }
 0x427   : > { %v7941_v26 = vadd.f32 %v7940_v44, %v7939_v19  ;;  %v10671_v36 = vadd.f32 %v10602_v57, %v7938_v31 }
 0x428   : > { %v8508_v37 = vadd.f32 %v7841_v48, %v10520_v58 }
 0x429   : > { %v10675_v1 = vadd.f32 %v10608_v56, %v7941_v26 }
 0x42b   : > { %v7942_v20 = vpop.f32.mrb[168].mxu1 }
 0x42c   : > { %v7943_v34 = vpop.f32.mrb[169].mxu1 }
 0x42d   : > { %v7944_v14 = vadd.f32 %v7943_v34, %v7942_v20  ;;  %v7945_v47 = vpop.f32.mrb[170].mxu1 }
 0x42e   : > { %v7946_v61 = vpop.f32.mrb[171].mxu1 }
 0x42f   : > { %v7947_v45 = vadd.f32 %v7946_v61, %v7945_v47  ;;  %v10678_v10 = vadd.f32 %v10614_v18, %v7944_v14 }
 0x431   : > { %v10681_v52 = vadd.f32 %v10620_v13, %v7947_v45 }
 0x433   : > { %v7948_v28 = vpop.f32.mrb[172].mxu1 }
 0x434   : > { %v7949_v57 = vpop.f32.mrb[173].mxu1 }
 0x435   : > { %v7950_v46 = vadd.f32 %v7949_v57, %v7948_v28  ;;  %v7951_v27 = vpop.f32.mrb[174].mxu1 }
 0x436   : > { %v7952_v58 = vpop.f32.mrb[175].mxu1 }
 0x437   : > { %v7953_v15 = vadd.f32 %v7952_v58, %v7951_v27  ;;  %v10684_v56 = vadd.f32 %v10626_v22, %v7950_v46  ;;  %v10712_v27 = vld [vmem:[%s10866_s2 + $0x1] ss:$0 sm:$0xff] }
 0x439   : > { %v10687_v0 = vadd.f32 %v10632_v50, %v7953_v15 }
 0x43b   : > { %v7954_v33 = vpop.f32.mrb[176].mxu1 }
 0x43c   : > { %v7955_v54 = vpop.f32.mrb[177].mxu1 }
 0x43d   : > { %v7956_v62 = vadd.f32 %v7955_v54, %v7954_v33  ;;  %v7957_v18 = vpop.f32.mrb[178].mxu1 }
 0x43e   : > { %v7958_v24 = vpop.f32.mrb[179].mxu1 }
 0x43f   : > { %v7959_v4 = vadd.f32 %v7958_v24, %v7957_v18  ;;  %v10690_v13 = vadd.f32 %v10638_v17, %v7956_v62 }
 0x441   : > { %v10693_v23 = vadd.f32 %v10644_v49, %v7959_v4 }
 0x443   : > { %v7960_v55 = vpop.f32.mrb[180].mxu1 }
 0x444   : > { %v7961_v12 = vpop.f32.mrb[181].mxu1 }
 0x445   : > { %v7962_v2 = vadd.f32 %v7961_v12, %v7960_v55  ;;  %v7963_v22 = vpop.f32.mrb[182].mxu1 }
 0x446   : > { %v7964_v5 = vpop.f32.mrb[183].mxu1 }
 0x447   : > { %v7965_v6 = vadd.f32 %v7964_v5, %v7963_v22  ;;  %v10696_v50 = vadd.f32 %v10650_v8, %v7962_v2 }
 0x449   : > { %v10699_v31 = vadd.f32 %v10656_v3, %v7965_v6 }
 0x44b   : > { %v7966_v19 = vpop.f32.mrb[184].mxu1 }
 0x44c   : > { %v7967_v48 = vpop.f32.mrb[185].mxu1 }
 0x44d   : > { %v7968_v44 = vadd.f32 %v7967_v48, %v7966_v19  ;;  %v7969_v17 = vpop.f32.mrb[186].mxu1 }
 0x44e   : > { %v7970_v26 = vpop.f32.mrb[187].mxu1 }
 0x44f   : > { %v7971_v49 = vadd.f32 %v7970_v26, %v7969_v17  ;;  %v10701_v20 = vadd.f32 %v8505_v51, %v7968_v44 }
 0x451   : > { %v10703_v34 = vadd.f32 %v8511_v25, %v7971_v49 }
 0x453   : > { %v7972_v14 = vpop.f32.mrb[188].mxu1 }
 0x454   : > { %v7973_v47 = vpop.f32.mrb[189].mxu1 }
 0x455   : > { %v7974_v61 = vadd.f32 %v7973_v47, %v7972_v14  ;;  %v7975_v45 = vpop.f32.mrb[190].mxu1 }
 0x456   : > { %v7976_v8 = vpop.f32.mrb[191].mxu1 }
 0x457   : > { %v7977_v28 = vadd.f32 %v7976_v8, %v7975_v45  ;;  %v10705_v57 = vadd.f32 %v8502_v41, %v7974_v61 }
 0x459   : > { %v10707_v3 = vadd.f32 %v8508_v37, %v7977_v28 }
 0x45b   : > { %v8260_v46 = vpop.f32.mrb[96].mxu1 }
 0x45c   : > { %v8420_v51 = vadd.f32 %v10581_v53, %v8260_v46  ;;  %v6417_v25 = vpop.f32.mrb[97].mxu1 }
 0x45d   : > { %v8423_v58 = vadd.f32 %v10569_v35, %v6417_v25  ;;  %v8261_v15 = vpop.f32.mrb[98].mxu1 }
 0x45e   : > { %v6586_v33 = vadd.f32 %v8420_v51, %v10712_v27  ;;  %v8426_v41 = vadd.f32 %v10587_v38, %v8261_v15  ;;  %v6420_v54 = vpop.f32.mrb[99].mxu1 }
 0x45f   : > { %v6584_v37 = vadd.f32 %v8423_v58, %v10712_v27  ;;  %v8429_v62 = vadd.f32 %v10575_v43, %v6420_v54 }
 0x460   : > { %v6618_v18 = vmax.f32 %v6586_v33, 0.0  ;;  %v6587_v24 = vadd.f32 %v8426_v41, %v10712_v27 }
 0x461   : > { %v6616_v4 = vmax.f32 %v6584_v37, 0.0  ;;  %v6585_v55 = vadd.f32 %v8429_v62, %v10712_v27 }
 0x462   : > { %6650 = vst [vmem:[%s10723_s5 + $0x10] sm:$0xff] %v6618_v18  ;;  %v6619_v35 = vmax.f32 %v6587_v24, 0.0 }
 0x463   : > { %6648 = vst [vmem:[%s10723_s5] sm:$0xff] %v6616_v4  ;;  %v6617_v53 = vmax.f32 %v6585_v55, 0.0  ;;  %v8264_v38 = vpop.f32.mrb[100].mxu1 }
 0x464   : > { %6651 = vst [vmem:[%s10723_s5 + $0x18] sm:$0xff] %v6619_v35  ;;  %v8432_v43 = vadd.f32 %v10605_v32, %v8264_v38  ;;  %v6433_v12 = vpop.f32.mrb[101].mxu1 }
 0x465   : > { %6649 = vst [vmem:[%s10723_s5 + $0x8] sm:$0xff] %v6617_v53  ;;  %v8435_v2 = vadd.f32 %v10593_v7, %v6433_v12  ;;  %v8265_v22 = vpop.f32.mrb[102].mxu1 }
 0x466   : > { %v6590_v5 = vadd.f32 %v8432_v43, %v10712_v27  ;;  %v8438_v6 = vadd.f32 %v10611_v59, %v8265_v22  ;;  %v6436_v19 = vpop.f32.mrb[103].mxu1 }
 0x467   : > { %v6588_v48 = vadd.f32 %v8435_v2, %v10712_v27  ;;  %v8441_v44 = vadd.f32 %v10599_v9, %v6436_v19 }
 0x468   : > { %v6622_v17 = vmax.f32 %v6590_v5, 0.0  ;;  %v6591_v32 = vadd.f32 %v8438_v6, %v10712_v27 }
 0x469   : > { %v6620_v26 = vmax.f32 %v6588_v48, 0.0  ;;  %v6589_v49 = vadd.f32 %v8441_v44, %v10712_v27 }
 0x46a   : > { %6654 = vst [vmem:[%s10723_s5 + $0x30] sm:$0xff] %v6622_v17  ;;  %v6623_v7 = vmax.f32 %v6591_v32, 0.0 }
 0x46b   : > { %6652 = vst [vmem:[%s10723_s5 + $0x20] sm:$0xff] %v6620_v26  ;;  %v6621_v14 = vmax.f32 %v6589_v49, 0.0  ;;  %v8268_v47 = vpop.f32.mrb[104].mxu1 }
 0x46c   : > { %6655 = vst [vmem:[%s10723_s5 + $0x38] sm:$0xff] %v6623_v7  ;;  %v8444_v59 = vadd.f32 %v10629_v30, %v8268_v47  ;;  %v6449_v61 = vpop.f32.mrb[105].mxu1 }
 0x46d   : > { %6653 = vst [vmem:[%s10723_s5 + $0x28] sm:$0xff] %v6621_v14  ;;  %v8447_v9 = vadd.f32 %v10617_v16, %v6449_v61  ;;  %v8269_v45 = vpop.f32.mrb[106].mxu1 }
 0x46e   : > { %v6594_v8 = vadd.f32 %v8444_v59, %v10712_v27  ;;  %v8450_v28 = vadd.f32 %v10635_v21, %v8269_v45  ;;  %v6452_v46 = vpop.f32.mrb[107].mxu1 }
 0x46f   : > { %v6592_v51 = vadd.f32 %v8447_v9, %v10712_v27  ;;  %v8453_v25 = vadd.f32 %v10623_v42, %v6452_v46 }
 0x470   : > { %v6626_v58 = vmax.f32 %v6594_v8, 0.0  ;;  %v6595_v30 = vadd.f32 %v8450_v28, %v10712_v27 }
 0x471   : > { %v6624_v15 = vmax.f32 %v6592_v51, 0.0  ;;  %v6593_v33 = vadd.f32 %v8453_v25, %v10712_v27 }
 0x472   : > { %6658 = vst [vmem:[%s10723_s5 + $0x50] sm:$0xff] %v6626_v58  ;;  %v6627_v16 = vmax.f32 %v6595_v30, 0.0 }
 0x473   : > { %6656 = vst [vmem:[%s10723_s5 + $0x40] sm:$0xff] %v6624_v15  ;;  %v6625_v41 = vmax.f32 %v6593_v33, 0.0  ;;  %v8272_v54 = vpop.f32.mrb[108].mxu1 }
 0x474   : > { %6659 = vst [vmem:[%s10723_s5 + $0x58] sm:$0xff] %v6627_v16  ;;  %v8456_v21 = vadd.f32 %v10653_v63, %v8272_v54  ;;  %v6465_v37 = vpop.f32.mrb[109].mxu1 }
 0x475   : > { %6657 = vst [vmem:[%s10723_s5 + $0x48] sm:$0xff] %v6625_v41  ;;  %v8459_v42 = vadd.f32 %v10641_v39, %v6465_v37  ;;  %v8273_v62 = vpop.f32.mrb[110].mxu1 }
 0x476   : > { %v6598_v18 = vadd.f32 %v8456_v21, %v10712_v27  ;;  %v8462_v24 = vadd.f32 %v10659_v29, %v8273_v62  ;;  %v6468_v4 = vpop.f32.mrb[111].mxu1 }
 0x477   : > { %v6596_v55 = vadd.f32 %v8459_v42, %v10712_v27  ;;  %v8465_v35 = vadd.f32 %v10647_v60, %v6468_v4 }
 0x478   : > { %v6630_v53 = vmax.f32 %v6598_v18, 0.0  ;;  %v6599_v63 = vadd.f32 %v8462_v24, %v10712_v27 }
 0x479   : > { %v6628_v38 = vmax.f32 %v6596_v55, 0.0  ;;  %v6597_v43 = vadd.f32 %v8465_v35, %v10712_v27 }
 0x47a   : > { %6662 = vst [vmem:[%s10723_s5 + $0x70] sm:$0xff] %v6630_v53  ;;  %v6631_v39 = vmax.f32 %v6599_v63, 0.0 }
 0x47b   : > { %6660 = vst [vmem:[%s10723_s5 + $0x60] sm:$0xff] %v6628_v38  ;;  %v6629_v12 = vmax.f32 %v6597_v43, 0.0  ;;  %v8276_v2 = vpop.f32.mrb[112].mxu1 }
 0x47c   : > { %6663 = vst [vmem:[%s10723_s5 + $0x78] sm:$0xff] %v6631_v39  ;;  %v8468_v29 = vadd.f32 %v10671_v36, %v8276_v2  ;;  %v6481_v22 = vpop.f32.mrb[113].mxu1 }
 0x47d   : > { %6661 = vst [vmem:[%s10723_s5 + $0x68] sm:$0xff] %v6629_v12  ;;  %v8471_v60 = vadd.f32 %v10663_v40, %v6481_v22  ;;  %v8277_v5 = vpop.f32.mrb[114].mxu1 }
 0x47e   : > { %v6602_v6 = vadd.f32 %v8468_v29, %v10712_v27  ;;  %v8474_v19 = vadd.f32 %v10675_v1, %v8277_v5  ;;  %v6484_v48 = vpop.f32.mrb[115].mxu1 }
 0x47f   : > { %v6600_v44 = vadd.f32 %v8471_v60, %v10712_v27  ;;  %v8477_v17 = vadd.f32 %v10667_v11, %v6484_v48 }
 0x480   : > { %v6634_v32 = vmax.f32 %v6602_v6, 0.0  ;;  %v6603_v36 = vadd.f32 %v8474_v19, %v10712_v27 }
 0x481   : > { %v6632_v26 = vmax.f32 %v6600_v44, 0.0  ;;  %v6601_v49 = vadd.f32 %v8477_v17, %v10712_v27 }
 0x482   : > { %6666 = vst [vmem:[%s10723_s5 + $0x90] sm:$0xff] %v6634_v32  ;;  %v6635_v40 = vmax.f32 %v6603_v36, 0.0 }
 0x483   : > { %6664 = vst [vmem:[%s10723_s5 + $0x80] sm:$0xff] %v6632_v26  ;;  %v6633_v7 = vmax.f32 %v6601_v49, 0.0  ;;  %v8280_v14 = vpop.f32.mrb[116].mxu1 }
 0x484   : > { %6667 = vst [vmem:[%s10723_s5 + $0x98] sm:$0xff] %v6635_v40  ;;  %v8480_v1 = vadd.f32 %v10684_v56, %v8280_v14  ;;  %v6497_v47 = vpop.f32.mrb[117].mxu1 }
 0x485   : > { %6665 = vst [vmem:[%s10723_s5 + $0x88] sm:$0xff] %v6633_v7  ;;  %v8483_v11 = vadd.f32 %v10678_v10, %v6497_v47  ;;  %v8281_v59 = vpop.f32.mrb[118].mxu1 }
 0x486   : > { %v6606_v61 = vadd.f32 %v8480_v1, %v10712_v27  ;;  %v8486_v9 = vadd.f32 %v10687_v0, %v8281_v59  ;;  %v6500_v45 = vpop.f32.mrb[119].mxu1 }
 0x487   : > { %v6604_v8 = vadd.f32 %v8483_v11, %v10712_v27  ;;  %v8489_v28 = vadd.f32 %v10681_v52, %v6500_v45 }
 0x488   : > { %v6638_v46 = vmax.f32 %v6606_v61, 0.0  ;;  %v6607_v56 = vadd.f32 %v8486_v9, %v10712_v27 }
 0x489   : > { %v6636_v51 = vmax.f32 %v6604_v8, 0.0  ;;  %v6605_v25 = vadd.f32 %v8489_v28, %v10712_v27 }
 0x48a   : > { %6670 = vst [vmem:[%s10723_s5 + $0xb0] sm:$0xff] %v6638_v46  ;;  %v6639_v10 = vmax.f32 %v6607_v56, 0.0 }
 0x48b   : > { %6668 = vst [vmem:[%s10723_s5 + $0xa0] sm:$0xff] %v6636_v51  ;;  %v6637_v58 = vmax.f32 %v6605_v25, 0.0  ;;  %v8284_v30 = vpop.f32.mrb[120].mxu1 }
 0x48c   : > { %6671 = vst [vmem:[%s10723_s5 + $0xb8] sm:$0xff] %v6639_v10  ;;  %v8492_v0 = vadd.f32 %v10696_v50, %v8284_v30  ;;  %v6513_v15 = vpop.f32.mrb[121].mxu1 }
 0x48d   : > { %6669 = vst [vmem:[%s10723_s5 + $0xa8] sm:$0xff] %v6637_v58  ;;  %v8495_v52 = vadd.f32 %v10690_v13, %v6513_v15  ;;  %v8285_v33 = vpop.f32.mrb[122].mxu1 }
 0x48e   : > { %v6610_v16 = vadd.f32 %v8492_v0, %v10712_v27  ;;  %v8498_v41 = vadd.f32 %v10699_v31, %v8285_v33  ;;  %v6516_v54 = vpop.f32.mrb[123].mxu1 }
 0x48f   : > { %v6608_v21 = vadd.f32 %v8495_v52, %v10712_v27  ;;  %v8501_v37 = vadd.f32 %v10693_v23, %v6516_v54 }
 0x490   : > { %v6642_v42 = vmax.f32 %v6610_v16, 0.0  ;;  %v6611_v50 = vadd.f32 %v8498_v41, %v10712_v27 }
 0x491   : > { %v6640_v62 = vmax.f32 %v6608_v21, 0.0  ;;  %v6609_v18 = vadd.f32 %v8501_v37, %v10712_v27 }
 0x492   : > { %6674 = vst [vmem:[%s10723_s5 + $0xd0] sm:$0xff] %v6642_v42  ;;  %v6643_v13 = vmax.f32 %v6611_v50, 0.0 }
 0x493   : > { %6672 = vst [vmem:[%s10723_s5 + $0xc0] sm:$0xff] %v6640_v62  ;;  %v6641_v24 = vmax.f32 %v6609_v18, 0.0  ;;  %v8288_v4 = vpop.f32.mrb[124].mxu1 }
 0x494   : > { %6675 = vst [vmem:[%s10723_s5 + $0xd8] sm:$0xff] %v6643_v13  ;;  %v8504_v31 = vadd.f32 %v10705_v57, %v8288_v4  ;;  %v6529_v55 = vpop.f32.mrb[125].mxu1 }
 0x495   : > { %6673 = vst [vmem:[%s10723_s5 + $0xc8] sm:$0xff] %v6641_v24  ;;  %v8507_v23 = vadd.f32 %v10701_v20, %v6529_v55  ;;  %v8289_v35 = vpop.f32.mrb[126].mxu1 }
 0x496   : > { %v6614_v53 = vadd.f32 %v8504_v31, %v10712_v27  ;;  %v8510_v63 = vadd.f32 %v10707_v3, %v8289_v35  ;;  %v6532_v38 = vpop.f32.mrb[127].mxu1 }
 0x497   : > { %v6612_v43 = vadd.f32 %v8507_v23, %v10712_v27  ;;  %v8513_v39 = vadd.f32 %v10703_v34, %v6532_v38 }
 0x498   : > { %v6646_v57 = vmax.f32 %v6614_v53, 0.0  ;;  %v6615_v20 = vadd.f32 %v8510_v63, %v10712_v27 }
 0x499   : > { %v6644_v12 = vmax.f32 %v6612_v43, 0.0  ;;  %v6613_v2 = vadd.f32 %v8513_v39, %v10712_v27 }
 0x49a   : > { %6678 = vst [vmem:[%s10723_s5 + $0xf0] sm:$0xff] %v6646_v57  ;;  %v6647_v29 = vmax.f32 %v6615_v20, 0.0 }
 0x49b   : > { %6676 = vst [vmem:[%s10723_s5 + $0xe0] sm:$0xff] %v6644_v12  ;;  %v6645_v34 = vmax.f32 %v6613_v2, 0.0 }
 0x49c   : > { %6679 = vst [vmem:[%s10723_s5 + $0xf8] sm:$0xff] %v6647_v29 }
 0x49d   : > { %6677 = vst [vmem:[%s10723_s5 + $0xe8] sm:$0xff] %v6645_v34 }
 0x49e   : > { %9090 = shalt.err (!%p9087_p7)
}
 0x49f   : > { %s9091_s18 = scalar_lea.hbm %s10815_s30, 4096  ;;  %s9095_s9 = scalar_lea.hbm %s10867_s3, 8192 }
 0x4a0   : > { %p9092_p9 = scmp.ne.s32.totalorder %s10815_s30, %s9091_s18  ;;  %p9096_p5 = scmp.lt.u32.totalorder %s10815_s30, %s10867_s3 }
 0x4a1   : > { %p9097_p11 = scmp.lt.u32.totalorder %s9095_s9, %s9091_s18  ;;  %p9099_p4 = scmp.lt.u32.totalorder %s9091_s18, %s10815_s30 }
 0x4a2   : > { %p9093_p1 = pnand %p9092_p9, %p9271_p12 }
 0x4a3   : > { %p9098_p2 = por %p9097_p11, %p9096_p5 }
 0x4a4   : > { %p9094_p0 = pneg %p9093_p1 }
 0x4a5   : > { %p9100_p6 = por %p9099_p4, %p9098_p2 }
 0x4a7   : > { %p9101_p8 = pnand %p9100_p6, %p9094_p0 }
 0x4a9   : > { %9104 = shalt.err (!%p9101_p8)
}
 0x4aa   : > { %s9155_s26 = smov 128   ;;  %s9156_s5 = smov 8  }
 0x4ab   : > { %8616 = dma.vmem_to_hbm [thread:$0]  (%p9271_p12), %s10817_s28, 4096, %s10815_s30, %s6681_s16, %s9155_s26, %s9155_s26, %s9156_s5  }
 0x4ac PF: > { %s6709_s27 = sand.u32 1, %s9135_s12   ;;  %p10968_p10 = scmp.ne.s32.totalorder %s10886_s19, 0 }
 0x4ad   : > { %p10969_p13 = scmp.ge.s32.totalorder %s9147_s15, 2  ;;  %s6710_s23 = scalar_lea.sflag [#allocation6], %s6709_s27 }
 0x4af   : > { %p8627_p3 = pnand %p10969_p13, %p10968_p10 }
 0x4b1   : > { %9130 = dma.done.wait (!%p8627_p3), %s6710_s23, 4096  }
 0x4b2   : > { %9132 = vsyncadd (!%p8627_p3), %s6710_s23, 4294963200  ;;  %p17_p7 = scmp.ge.s32.totalorder %s9233_s24, 4   ;;  %s10970_s12 = smov %s9139_s13 }
 0x4b3   : > { %s10971_s13 = smov %s9143_s14  ;;  %s10972_s14 = smov %s9267_s17 }
 0x4b4   : > { %s10973_s15 = smov %s9233_s24  ;;  %19 = sbr.rel (!%p17_p7) target bundleno = 6 (0x6), region = 90 }
 0x4bb   :  { %6715 = vsyncpa [#allocation5], 1 }
 0x4bc   :  { %6717 = vsyncpa [#allocation5 + $0x1], 1 }
 0x4bd   :  { %6718 = vsyncpa [#allocation8], 1 }
 0x4be   :  { %6719 = vsyncpa [#allocation6], 1 }
 0x4bf   :  { %6721 = vsyncpa [#allocation6 + $0x1], 1 }

</bundles_post_ra>
